<compile_context>
chip_gen: v7x
topology: tpu7x:2x2x1
jax: 0.10.0
libtpu: 0.0.40
codegen_flags: <defaults>
</compile_context>

<pallas_src>
import functools
import math

import jax
import jax.numpy as jnp
from jax.experimental import pallas as pl
from jax.experimental.pallas import tpu as pltpu


# ------------------------------ in-kernel helpers ------------------------------

def _layer_norm(z, g, b, eps):
    """f32 LayerNorm over the last dim (biased variance, like torch.nn.LayerNorm)."""
    mu = jnp.mean(z, axis=-1, keepdims=True)
    var = jnp.mean((z - mu) ** 2, axis=-1, keepdims=True)
    return (z - mu) * jax.lax.rsqrt(var + eps) * g + b


def _mha_core(q, k, v, nhead, scale):
    """Multi-head attention for one batch element.

    q: (L, D) f32, k/v: (S, D) f32 -> (L, D) f32.  All heads go through a single
    batched contraction (no per-head python loop, no lane-axis concatenate)."""
    L, D = q.shape
    S = k.shape[0]
    hd = D // nhead
    # (L, D) -> (H, L, hd); bf16 operands, f32 accumulation on the MXU.
    q3 = jnp.transpose((q * scale).reshape(L, nhead, hd), (1, 0, 2)).astype(jnp.bfloat16)
    k3 = jnp.transpose(k.reshape(S, nhead, hd), (1, 0, 2)).astype(jnp.bfloat16)
    v3 = jnp.transpose(v.reshape(S, nhead, hd), (1, 0, 2)).astype(jnp.bfloat16)
    s = jnp.einsum('hqd,hkd->hqk', q3, k3, preferred_element_type=jnp.float32)   # (H, L, S)
    m = jnp.max(s, axis=-1, keepdims=True)
    p = jnp.exp(s - m)                                                            # f32 softmax
    p = p * pl.reciprocal(jnp.sum(p, axis=-1, keepdims=True), approx=True)        # EUP slot
    o3 = jnp.einsum('hqk,hkd->hqd', p.astype(jnp.bfloat16), v3,
                    preferred_element_type=jnp.float32)                           # (H, L, hd)
    return jnp.transpose(o3, (1, 0, 2)).reshape(L, D)


# --------------------------------- fused kernel ---------------------------------

def _decoder_layer_kernel(*refs, nhead, scale, eps, batch, has_qpos, has_pos):
    it = iter(refs)
    tgt_ref = next(it)                                   # (T, B, D)
    mem_ref = next(it)                                   # (S, B, D)
    qpos_ref = next(it) if has_qpos else None            # (T, B, D)
    pos_ref = next(it) if has_pos else None              # (S, B, D)
    # self-attention block params
    wqk_s, wv_s, wo_s, bqk_s, bv_s, bo_s, g1, be1 = [next(it) for _ in range(8)]
    # cross-attention block params
    wq_c, wk_c, wv_c, wo_c, bq_c, bk_c, bv_c, bo_c, g2, be2 = [next(it) for _ in range(10)]
    # FFN block params
    w1, bf1, w2, bf2, g3, be3 = [next(it) for _ in range(6)]
    o_ref = next(it)                                     # (T, B, D)

    D = tgt_ref.shape[-1]

    tgt = tgt_ref[...]                                   # f32, loaded once
    mem = mem_ref[...]
    qpos = qpos_ref[...] if has_qpos else None
    pos = pos_ref[...] if has_pos else None

    def proj(x, w, b):
        return jnp.dot(x.astype(jnp.bfloat16), w[...],
                       preferred_element_type=jnp.float32) + b[...]

    outs = []
    for b in range(batch):                               # static unroll over (small) batch
        x = tgt[:, b, :]                                 # (T, D) f32, also residual
        mb = mem[:, b, :]                                 # (S, D)
        qp = None if qpos is None else qpos[:, b, :]
        pp = None if pos is None else pos[:, b, :]

        # ---- self-attention + residual + norm1 -----------------------------------
        qk_in = x if qp is None else x + qp              # q == k input (deduplicated)
        qk = proj(qk_in, wqk_s, bqk_s)                   # fused Q|K projection -> (T, 2D)
        attn = _mha_core(qk[:, :D], qk[:, D:], proj(x, wv_s, bv_s), nhead, scale)
        y = _layer_norm(x + proj(attn, wo_s, bo_s), g1[...], be1[...], eps)

        # ---- cross-attention + residual + norm2 -----------------------------------
        q_in = y if qp is None else y + qp
        k_in = mb if pp is None else mb + pp
        attn = _mha_core(proj(q_in, wq_c, bq_c), proj(k_in, wk_c, bk_c),
                         proj(mb, wv_c, bv_c), nhead, scale)
        y = _layer_norm(y + proj(attn, wo_c, bo_c), g2[...], be2[...], eps)

        # ---- FFN + residual + norm3 ------------------------------------------------
        h = jnp.maximum(proj(y, w1, bf1), 0.0).astype(jnp.bfloat16)   # relu, bf16 hidden
        f = jnp.dot(h, w2[...], preferred_element_type=jnp.float32) + bf2[...]
        outs.append(_layer_norm(y + f, g3[...], be3[...], eps))

    # Single full-block writeback in the native (T, B, D) layout.
    o_ref[...] = jnp.stack(outs, axis=1).astype(o_ref.dtype)


# -------------------------------- module forward --------------------------------

def transformer_decoder_layer_forward(tgt, memory, kparams, nhead,
                                      pos=None, query_pos=None, eps=1e-5):
    """forward_post of TransformerDecoderLayer (dropout = identity, masks = None).
    tgt: (T, B, D), memory: (S, B, D) -> (T, B, D)."""
    T, B, D = tgt.shape
    S = memory.shape[0]
    scale = 1.0 / math.sqrt(D // nhead)
    has_qpos = query_pos is not None
    has_pos = pos is not None

    sa, ca, ff = kparams["self_attn"], kparams["cross_attn"], kparams["ffn"]
    F = ff["w1"].shape[1]

    inputs = [tgt, memory]
    if has_qpos:
        inputs.append(query_pos)
    if has_pos:
        inputs.append(pos)
    inputs += [sa["wqk"], sa["wv"], sa["wo"], sa["bqk"], sa["bv"], sa["bo"],
               sa["ln_g"], sa["ln_b"],
               ca["wq"], ca["wk"], ca["wv"], ca["wo"],
               ca["bq"], ca["bk"], ca["bv"], ca["bo"],
               ca["ln_g"], ca["ln_b"],
               ff["w1"], ff["b1"], ff["w2"], ff["b2"], ff["ln_g"], ff["ln_b"]]

    flops = int(2 * B * (T * D * 2 * D + 2 * T * D * D + 2 * T * T * D      # self-attn
                         + 2 * T * D * D + 2 * S * D * D + 2 * T * S * D    # cross-attn
                         + 2 * T * D * F))                                  # FFN
    transcendentals = int(B * nhead * T * (T + S))
    bytes_accessed = int(4 * B * D * (3 * T + 2 * S)                        # activations in+out
                         + 2 * (8 * D * D + 2 * D * F) + 4 * (12 * D + F))  # weights + biases

    kernel = functools.partial(_decoder_layer_kernel, nhead=nhead, scale=scale,
                               eps=eps, batch=B, has_qpos=has_qpos, has_pos=has_pos)
    return pl.pallas_call(
        kernel,
        out_shape=jax.ShapeDtypeStruct((T, B, D), jnp.float32),
        compiler_params=pltpu.CompilerParams(vmem_limit_bytes=32 * 1024 * 1024),
        cost_estimate=pl.CostEstimate(flops=flops, transcendentals=transcendentals,
                                      bytes_accessed=bytes_accessed),
    )(*inputs)


# --------------------------------- param handling --------------------------------

def init_params(key, d_model, nhead, dim_feedforward):
    """PyTorch-layout parameters (weights stored as (out, in), packed in_proj)."""
    ks = jax.random.split(key, 12)
    u = lambda k, shape, s=0.1: jax.random.uniform(k, shape, jnp.float32, -s, s)

    def mha_params(k1, k2, k3, k4):
        return {
            "in_proj_weight": u(k1, (3 * d_model, d_model)),
            "in_proj_bias": u(k2, (3 * d_model,)),
            "out_proj_weight": u(k3, (d_model, d_model)),
            "out_proj_bias": u(k4, (d_model,)),
        }

    return {
        "self_attn": mha_params(ks[0], ks[1], ks[2], ks[3]),
        "cross_attn": mha_params(ks[4], ks[5], ks[6], ks[7]),
        "linear1_w": u(ks[8], (dim_feedforward, d_model)),
        "linear1_b": u(ks[9], (dim_feedforward,)),
        "linear2_w": u(ks[10], (d_model, dim_feedforward)),
        "linear2_b": u(ks[11], (d_model,)),
        "norm1_w": jnp.ones((d_model,), jnp.float32),
        "norm1_b": jnp.zeros((d_model,), jnp.float32),
        "norm2_w": jnp.ones((d_model,), jnp.float32),
        "norm2_b": jnp.zeros((d_model,), jnp.float32),
        "norm3_w": jnp.ones((d_model,), jnp.float32),
        "norm3_b": jnp.zeros((d_model,), jnp.float32),
    }


def prepare_params(p):
    """One-time conversion to kernel layout: (in, out) bf16 weights, (1, N) f32 biases/LN.
    The self-attention Q and K projections are packed into a single (D, 2D) weight."""
    row = lambda v: jnp.asarray(v).reshape(1, -1).astype(jnp.float32)
    t16 = lambda w: jnp.asarray(w).T.astype(jnp.bfloat16)

    def prep_self(mp, gamma, beta):
        wq, wk, wv = jnp.split(mp["in_proj_weight"], 3, axis=0)
        bq, bk, bv = jnp.split(mp["in_proj_bias"], 3)
        return {
            "wqk": jnp.concatenate([wq.T, wk.T], axis=1).astype(jnp.bfloat16),   # (D, 2D)
            "wv": t16(wv), "wo": t16(mp["out_proj_weight"]),
            "bqk": jnp.concatenate([bq, bk]).reshape(1, -1).astype(jnp.float32),
            "bv": row(bv), "bo": row(mp["out_proj_bias"]),
            "ln_g": row(gamma), "ln_b": row(beta),
        }

    def prep_cross(mp, gamma, beta):
        wq, wk, wv = jnp.split(mp["in_proj_weight"], 3, axis=0)
        bq, bk, bv = jnp.split(mp["in_proj_bias"], 3)
        return {
            "wq": t16(wq), "wk": t16(wk), "wv": t16(wv),
            "wo": t16(mp["out_proj_weight"]),
            "bq": row(bq), "bk": row(bk), "bv": row(bv),
            "bo": row(mp["out_proj_bias"]),
            "ln_g": row(gamma), "ln_b": row(beta),
        }

    return {
        "self_attn": prep_self(p["self_attn"], p["norm1_w"], p["norm1_b"]),
        "cross_attn": prep_cross(p["cross_attn"], p["norm2_w"], p["norm2_b"]),
        "ffn": {
            "w1": t16(p["linear1_w"]), "b1": row(p["linear1_b"]),
            "w2": t16(p["linear2_w"]), "b2": row(p["linear2_b"]),
            "ln_g": row(p["norm3_w"]), "ln_b": row(p["norm3_b"]),
        },
    }


# -------------------------- pure-JAX reference (f32) -----------------------------

def _ref_mha(q_in, k_in, v_in, mp, nhead):
    L, B, D = q_in.shape
    S = k_in.shape[0]
    hd = D // nhead
    wq, wk, wv = jnp.split(mp["in_proj_weight"], 3, axis=0)
    bq, bk, bv = jnp.split(mp["in_proj_bias"], 3)
    q = q_in @ wq.T + bq
    k = k_in @ wk.T + bk
    v = v_in @ wv.T + bv
    q = q.reshape(L, B, nhead, hd).transpose(1, 2, 0, 3)        # (B, H, L, hd)
    k = k.reshape(S, B, nhead, hd).transpose(1, 2, 0, 3)
    v = v.reshape(S, B, nhead, hd).transpose(1, 2, 0, 3)
    s = jnp.einsum('bhld,bhsd->bhls', q, k) / math.sqrt(hd)
    p = jax.nn.softmax(s, axis=-1)
    o = jnp.einsum('bhls,bhsd->bhld', p, v)
    o = o.transpose(2, 0, 1, 3).reshape(L, B, D)
    return o @ mp["out_proj_weight"].T + mp["out_proj_bias"]


def _reference_forward(tgt, memory, p, nhead, pos=None, query_pos=None, eps=1e-5):
    def ln(x, w, b):
        mu = x.mean(-1, keepdims=True)
        var = ((x - mu) ** 2).mean(-1, keepdims=True)
        return (x - mu) / jnp.sqrt(var + eps) * w + b
    add = lambda t, e: t if e is None else t + e
    q = add(tgt, query_pos)
    x = ln(tgt + _ref_mha(q, q, tgt, p["self_attn"], nhead), p["norm1_w"], p["norm1_b"])
    x = ln(x + _ref_mha(add(x, query_pos), add(memory, pos), memory,
                        p["cross_attn"], nhead), p["norm2_w"], p["norm2_b"])
    h = jax.nn.relu(x @ p["linear1_w"].T + p["linear1_b"])
    x = ln(x + h @ p["linear2_w"].T + p["linear2_b"], p["norm3_w"], p["norm3_b"])
    return x


# --------------------------------------- main ------------------------------------

if __name__ == "__main__":
    d_model, nhead, dim_feedforward = 32, 4, 64
    T, S, B = 8, 16, 2

    key = jax.random.PRNGKey(0)
    k_tgt, k_mem, k_qpos, k_pos, k_par = jax.random.split(key, 5)

    tgt = jax.random.normal(k_tgt, (T, B, d_model), jnp.float32)
    memory = jax.random.normal(k_mem, (S, B, d_model), jnp.float32)
    query_pos = jax.random.normal(k_qpos, (T, B, d_model), jnp.float32)
    pos = jax.random.normal(k_pos, (S, B, d_model), jnp.float32)

    params = init_params(k_par, d_model, nhead, dim_feedforward)
    kparams = prepare_params(params)

    fwd = jax.jit(functools.partial(transformer_decoder_layer_forward, nhead=nhead))
    out = fwd(tgt, memory, kparams, pos=pos, query_pos=query_pos)
    jax.block_until_ready(out)

    assert out.shape == (T, B, d_model) and out.dtype == jnp.float32
    assert bool(jnp.all(jnp.isfinite(out)))

    # Loose-tolerance parity check vs. an f32 pure-JAX reference (kernel uses bf16
    # weights/operands with f32 accumulation, so exact match is not expected).
    ref = _reference_forward(tgt, memory, params, nhead, pos=pos, query_pos=query_pos)
    max_err = float(jnp.max(jnp.abs(out - ref)))
    assert max_err < 0.2, f"max abs err vs f32 reference too large: {max_err}"

    # TODO(synk): attn_mask / key_padding_mask branches and dropout (train mode) are not
    #             implemented — they are None / identity in the reference forward_post call.
    print("KERNEL_OK")
</pallas_src>

<mosaic_0001>
module attributes {stable_mosaic.version = 11 : i64} {
  func.func @_decoder_layer_kernel(%arg0: memref<8x2x32xf32, #tpu.memory_space<vmem>>, %arg1: memref<16x2x32xf32, #tpu.memory_space<vmem>>, %arg2: memref<8x2x32xf32, #tpu.memory_space<vmem>>, %arg3: memref<16x2x32xf32, #tpu.memory_space<vmem>>, %arg4: memref<32x64xbf16, #tpu.memory_space<vmem>>, %arg5: memref<32x32xbf16, #tpu.memory_space<vmem>>, %arg6: memref<32x32xbf16, #tpu.memory_space<vmem>>, %arg7: memref<1x64xf32, #tpu.memory_space<vmem>>, %arg8: memref<1x32xf32, #tpu.memory_space<vmem>>, %arg9: memref<1x32xf32, #tpu.memory_space<vmem>>, %arg10: memref<1x32xf32, #tpu.memory_space<vmem>>, %arg11: memref<1x32xf32, #tpu.memory_space<vmem>>, %arg12: memref<32x32xbf16, #tpu.memory_space<vmem>>, %arg13: memref<32x32xbf16, #tpu.memory_space<vmem>>, %arg14: memref<32x32xbf16, #tpu.memory_space<vmem>>, %arg15: memref<32x32xbf16, #tpu.memory_space<vmem>>, %arg16: memref<1x32xf32, #tpu.memory_space<vmem>>, %arg17: memref<1x32xf32, #tpu.memory_space<vmem>>, %arg18: memref<1x32xf32, #tpu.memory_space<vmem>>, %arg19: memref<1x32xf32, #tpu.memory_space<vmem>>, %arg20: memref<1x32xf32, #tpu.memory_space<vmem>>, %arg21: memref<1x32xf32, #tpu.memory_space<vmem>>, %arg22: memref<32x64xbf16, #tpu.memory_space<vmem>>, %arg23: memref<1x64xf32, #tpu.memory_space<vmem>>, %arg24: memref<64x32xbf16, #tpu.memory_space<vmem>>, %arg25: memref<1x32xf32, #tpu.memory_space<vmem>>, %arg26: memref<1x32xf32, #tpu.memory_space<vmem>>, %arg27: memref<1x32xf32, #tpu.memory_space<vmem>>, %arg28: memref<8x2x32xf32, #tpu.memory_space<vmem>>) attributes {dimension_semantics = [], scalar_prefetch = 0 : i64, scratch_operands = 0 : i64, tpu.core_type = #tpu.core_type<tc>} {
    %c0 = arith.constant 0 : index
    %c0_0 = arith.constant 0 : index
    %c0_1 = arith.constant 0 : index
    %0 = vector.load %arg0[%c0, %c0_0, %c0_1] : memref<8x2x32xf32, #tpu.memory_space<vmem>>, vector<8x2x32xf32>
    %c0_2 = arith.constant 0 : index
    %c0_3 = arith.constant 0 : index
    %c0_4 = arith.constant 0 : index
    %1 = vector.load %arg1[%c0_2, %c0_3, %c0_4] : memref<16x2x32xf32, #tpu.memory_space<vmem>>, vector<16x2x32xf32>
    %c0_5 = arith.constant 0 : index
    %c0_6 = arith.constant 0 : index
    %c0_7 = arith.constant 0 : index
    %2 = vector.load %arg2[%c0_5, %c0_6, %c0_7] : memref<8x2x32xf32, #tpu.memory_space<vmem>>, vector<8x2x32xf32>
    %c0_8 = arith.constant 0 : index
    %c0_9 = arith.constant 0 : index
    %c0_10 = arith.constant 0 : index
    %3 = vector.load %arg3[%c0_8, %c0_9, %c0_10] : memref<16x2x32xf32, #tpu.memory_space<vmem>>, vector<16x2x32xf32>
    %4 = vector.extract_strided_slice %0 {offsets = [0, 0, 0], sizes = [8, 1, 32], strides = [1, 1, 1]} : vector<8x2x32xf32> to vector<8x1x32xf32>
    %5 = vector.shape_cast %4 : vector<8x1x32xf32> to vector<8x32xf32>
    %6 = vector.extract_strided_slice %1 {offsets = [0, 0, 0], sizes = [16, 1, 32], strides = [1, 1, 1]} : vector<16x2x32xf32> to vector<16x1x32xf32>
    %7 = vector.shape_cast %6 : vector<16x1x32xf32> to vector<16x32xf32>
    %8 = vector.extract_strided_slice %2 {offsets = [0, 0, 0], sizes = [8, 1, 32], strides = [1, 1, 1]} : vector<8x2x32xf32> to vector<8x1x32xf32>
    %9 = vector.shape_cast %8 : vector<8x1x32xf32> to vector<8x32xf32>
    %10 = vector.extract_strided_slice %3 {offsets = [0, 0, 0], sizes = [16, 1, 32], strides = [1, 1, 1]} : vector<16x2x32xf32> to vector<16x1x32xf32>
    %11 = vector.shape_cast %10 : vector<16x1x32xf32> to vector<16x32xf32>
    %12 = arith.addf %5, %9 : vector<8x32xf32>
    %13 = arith.truncf %12 : vector<8x32xf32> to vector<8x32xbf16>
    %c0_11 = arith.constant 0 : index
    %c0_12 = arith.constant 0 : index
    %14 = vector.load %arg4[%c0_11, %c0_12] : memref<32x64xbf16, #tpu.memory_space<vmem>>, vector<32x64xbf16>
    %cst = arith.constant dense<0.000000e+00> : vector<8x64xf32>
    %15 = tpu.matmul %13, %14, %cst {dimension_numbers = #tpu.dot_dimension_numbers<[1], [0], [0], [1], [0, 0, 1, 1], [], []>} : vector<8x32xbf16>, vector<32x64xbf16>, vector<8x64xf32> -> vector<8x64xf32>
    %c0_13 = arith.constant 0 : index
    %c0_14 = arith.constant 0 : index
    %16 = vector.load %arg7[%c0_13, %c0_14] : memref<1x64xf32, #tpu.memory_space<vmem>>, vector<1x64xf32>
    %17 = vector.broadcast %16 : vector<1x64xf32> to vector<8x64xf32>
    %18 = arith.addf %15, %17 : vector<8x64xf32>
    %19 = vector.extract_strided_slice %18 {offsets = [0, 0], sizes = [8, 32], strides = [1, 1]} : vector<8x64xf32> to vector<8x32xf32>
    %20 = vector.extract_strided_slice %18 {offsets = [0, 32], sizes = [8, 32], strides = [1, 1]} : vector<8x64xf32> to vector<8x32xf32>
    %21 = arith.truncf %5 : vector<8x32xf32> to vector<8x32xbf16>
    %c0_15 = arith.constant 0 : index
    %c0_16 = arith.constant 0 : index
    %22 = vector.load %arg5[%c0_15, %c0_16] : memref<32x32xbf16, #tpu.memory_space<vmem>>, vector<32x32xbf16>
    %cst_17 = arith.constant dense<0.000000e+00> : vector<8x32xf32>
    %23 = tpu.matmul %21, %22, %cst_17 {dimension_numbers = #tpu.dot_dimension_numbers<[1], [0], [0], [1], [0, 0, 1, 1], [], []>} : vector<8x32xbf16>, vector<32x32xbf16>, vector<8x32xf32> -> vector<8x32xf32>
    %c0_18 = arith.constant 0 : index
    %c0_19 = arith.constant 0 : index
    %24 = vector.load %arg8[%c0_18, %c0_19] : memref<1x32xf32, #tpu.memory_space<vmem>>, vector<1x32xf32>
    %25 = vector.broadcast %24 : vector<1x32xf32> to vector<8x32xf32>
    %26 = arith.addf %23, %25 : vector<8x32xf32>
    %cst_20 = arith.constant 0.353553385 : f32
    %27 = vector.broadcast %cst_20 : f32 to vector<8x32xf32>
    %28 = arith.mulf %19, %27 : vector<8x32xf32>
    %29 = vector.shape_cast %28 : vector<8x32xf32> to vector<8x4x8xf32>
    %30 = tpu.transpose %29, [1, 0, 2] : vector<8x4x8xf32> -> vector<4x8x8xf32>
    %31 = arith.truncf %30 : vector<4x8x8xf32> to vector<4x8x8xbf16>
    %32 = vector.shape_cast %20 : vector<8x32xf32> to vector<8x4x8xf32>
    %33 = tpu.transpose %32, [1, 0, 2] : vector<8x4x8xf32> -> vector<4x8x8xf32>
    %34 = arith.truncf %33 : vector<4x8x8xf32> to vector<4x8x8xbf16>
    %35 = vector.shape_cast %26 : vector<8x32xf32> to vector<8x4x8xf32>
    %36 = tpu.transpose %35, [1, 0, 2] : vector<8x4x8xf32> -> vector<4x8x8xf32>
    %37 = arith.truncf %36 : vector<4x8x8xf32> to vector<4x8x8xbf16>
    "tpu.trace_start"() <{level = 10 : i32, message = "hqd,hkd->hqk"}> : () -> ()
    %cst_21 = arith.constant dense<0.000000e+00> : vector<4x8x8xf32>
    %38 = tpu.matmul %31, %34, %cst_21 {dimension_numbers = #tpu.dot_dimension_numbers<[2], [2], [1], [1], [0, 0, 0, 1, 1, 1], [0], [0]>} : vector<4x8x8xbf16>, vector<4x8x8xbf16>, vector<4x8x8xf32> -> vector<4x8x8xf32>
    "tpu.trace_stop"() : () -> ()
    %cst_22 = arith.constant dense<0xFF800000> : vector<4x8xf32>
    %39 = vector.multi_reduction <maximumf>, %38, %cst_22 [2] : vector<4x8x8xf32> to vector<4x8xf32>
    %40 = vector.shape_cast %39 : vector<4x8xf32> to vector<4x8x1xf32>
    %41 = vector.broadcast %40 : vector<4x8x1xf32> to vector<4x8x8xf32>
    %42 = arith.subf %38, %41 : vector<4x8x8xf32>
    %43 = math.exp %42 : vector<4x8x8xf32>
    %cst_23 = arith.constant dense<0.000000e+00> : vector<4x8xf32>
    %44 = vector.multi_reduction <add>, %43, %cst_23 [2] : vector<4x8x8xf32> to vector<4x8xf32>
    %45 = vector.shape_cast %44 : vector<4x8xf32> to vector<4x8x1xf32>
    %46 = tpu.reciprocal %45 {approx = true} : vector<4x8x1xf32> -> vector<4x8x1xf32>
    %47 = vector.broadcast %46 : vector<4x8x1xf32> to vector<4x8x8xf32>
    %48 = arith.mulf %43, %47 : vector<4x8x8xf32>
    %49 = arith.truncf %48 : vector<4x8x8xf32> to vector<4x8x8xbf16>
    "tpu.trace_start"() <{level = 10 : i32, message = "hqk,hkd->hqd"}> : () -> ()
    %cst_24 = arith.constant dense<0.000000e+00> : vector<4x8x8xf32>
    %50 = tpu.matmul %49, %37, %cst_24 {dimension_numbers = #tpu.dot_dimension_numbers<[2], [1], [1], [2], [0, 0, 0, 1, 1, 2], [0], [0]>} : vector<4x8x8xbf16>, vector<4x8x8xbf16>, vector<4x8x8xf32> -> vector<4x8x8xf32>
    "tpu.trace_stop"() : () -> ()
    %51 = tpu.transpose %50, [1, 0, 2] : vector<4x8x8xf32> -> vector<8x4x8xf32>
    %52 = vector.shape_cast %51 : vector<8x4x8xf32> to vector<8x32xf32>
    %53 = arith.truncf %52 : vector<8x32xf32> to vector<8x32xbf16>
    %c0_25 = arith.constant 0 : index
    %c0_26 = arith.constant 0 : index
    %54 = vector.load %arg6[%c0_25, %c0_26] : memref<32x32xbf16, #tpu.memory_space<vmem>>, vector<32x32xbf16>
    %cst_27 = arith.constant dense<0.000000e+00> : vector<8x32xf32>
    %55 = tpu.matmul %53, %54, %cst_27 {dimension_numbers = #tpu.dot_dimension_numbers<[1], [0], [0], [1], [0, 0, 1, 1], [], []>} : vector<8x32xbf16>, vector<32x32xbf16>, vector<8x32xf32> -> vector<8x32xf32>
    %c0_28 = arith.constant 0 : index
    %c0_29 = arith.constant 0 : index
    %56 = vector.load %arg9[%c0_28, %c0_29] : memref<1x32xf32, #tpu.memory_space<vmem>>, vector<1x32xf32>
    %57 = vector.broadcast %56 : vector<1x32xf32> to vector<8x32xf32>
    %58 = arith.addf %55, %57 : vector<8x32xf32>
    %59 = arith.addf %5, %58 : vector<8x32xf32>
    %c0_30 = arith.constant 0 : index
    %c0_31 = arith.constant 0 : index
    %60 = vector.load %arg10[%c0_30, %c0_31] : memref<1x32xf32, #tpu.memory_space<vmem>>, vector<1x32xf32>
    %c0_32 = arith.constant 0 : index
    %c0_33 = arith.constant 0 : index
    %61 = vector.load %arg11[%c0_32, %c0_33] : memref<1x32xf32, #tpu.memory_space<vmem>>, vector<1x32xf32>
    %cst_34 = arith.constant dense<0.000000e+00> : vector<8xf32>
    %62 = vector.multi_reduction <add>, %59, %cst_34 [1] : vector<8x32xf32> to vector<8xf32>
    %63 = vector.shape_cast %62 : vector<8xf32> to vector<8x1xf32>
    %cst_35 = arith.constant 3.200000e+01 : f32
    %64 = vector.broadcast %cst_35 : f32 to vector<8x1xf32>
    %65 = arith.divf %63, %64 : vector<8x1xf32>
    %66 = vector.broadcast %65 : vector<8x1xf32> to vector<8x32xf32>
    %67 = arith.subf %59, %66 : vector<8x32xf32>
    %68 = arith.mulf %67, %67 : vector<8x32xf32>
    %cst_36 = arith.constant dense<0.000000e+00> : vector<8xf32>
    %69 = vector.multi_reduction <add>, %68, %cst_36 [1] : vector<8x32xf32> to vector<8xf32>
    %70 = vector.shape_cast %69 : vector<8xf32> to vector<8x1xf32>
    %cst_37 = arith.constant 3.200000e+01 : f32
    %71 = vector.broadcast %cst_37 : f32 to vector<8x1xf32>
    %72 = arith.divf %70, %71 : vector<8x1xf32>
    %73 = vector.broadcast %65 : vector<8x1xf32> to vector<8x32xf32>
    %74 = arith.subf %59, %73 : vector<8x32xf32>
    %cst_38 = arith.constant 9.99999974E-6 : f32
    %75 = vector.broadcast %cst_38 : f32 to vector<8x1xf32>
    %76 = arith.addf %72, %75 : vector<8x1xf32>
    %77 = math.rsqrt %76 : vector<8x1xf32>
    %78 = vector.broadcast %77 : vector<8x1xf32> to vector<8x32xf32>
    %79 = arith.mulf %74, %78 : vector<8x32xf32>
    %80 = vector.broadcast %60 : vector<1x32xf32> to vector<8x32xf32>
    %81 = arith.mulf %79, %80 : vector<8x32xf32>
    %82 = vector.broadcast %61 : vector<1x32xf32> to vector<8x32xf32>
    %83 = arith.addf %81, %82 : vector<8x32xf32>
    %84 = arith.addf %83, %9 : vector<8x32xf32>
    %85 = arith.addf %7, %11 : vector<16x32xf32>
    %86 = arith.truncf %84 : vector<8x32xf32> to vector<8x32xbf16>
    %c0_39 = arith.constant 0 : index
    %c0_40 = arith.constant 0 : index
    %87 = vector.load %arg12[%c0_39, %c0_40] : memref<32x32xbf16, #tpu.memory_space<vmem>>, vector<32x32xbf16>
    %cst_41 = arith.constant dense<0.000000e+00> : vector<8x32xf32>
    %88 = tpu.matmul %86, %87, %cst_41 {dimension_numbers = #tpu.dot_dimension_numbers<[1], [0], [0], [1], [0, 0, 1, 1], [], []>} : vector<8x32xbf16>, vector<32x32xbf16>, vector<8x32xf32> -> vector<8x32xf32>
    %c0_42 = arith.constant 0 : index
    %c0_43 = arith.constant 0 : index
    %89 = vector.load %arg16[%c0_42, %c0_43] : memref<1x32xf32, #tpu.memory_space<vmem>>, vector<1x32xf32>
    %90 = vector.broadcast %89 : vector<1x32xf32> to vector<8x32xf32>
    %91 = arith.addf %88, %90 : vector<8x32xf32>
    %92 = arith.truncf %85 : vector<16x32xf32> to vector<16x32xbf16>
    %c0_44 = arith.constant 0 : index
    %c0_45 = arith.constant 0 : index
    %93 = vector.load %arg13[%c0_44, %c0_45] : memref<32x32xbf16, #tpu.memory_space<vmem>>, vector<32x32xbf16>
    %cst_46 = arith.constant dense<0.000000e+00> : vector<16x32xf32>
    %94 = tpu.matmul %92, %93, %cst_46 {dimension_numbers = #tpu.dot_dimension_numbers<[1], [0], [0], [1], [0, 0, 1, 1], [], []>} : vector<16x32xbf16>, vector<32x32xbf16>, vector<16x32xf32> -> vector<16x32xf32>
    %c0_47 = arith.constant 0 : index
    %c0_48 = arith.constant 0 : index
    %95 = vector.load %arg17[%c0_47, %c0_48] : memref<1x32xf32, #tpu.memory_space<vmem>>, vector<1x32xf32>
    %96 = vector.broadcast %95 : vector<1x32xf32> to vector<16x32xf32>
    %97 = arith.addf %94, %96 : vector<16x32xf32>
    %98 = arith.truncf %7 : vector<16x32xf32> to vector<16x32xbf16>
    %c0_49 = arith.constant 0 : index
    %c0_50 = arith.constant 0 : index
    %99 = vector.load %arg14[%c0_49, %c0_50] : memref<32x32xbf16, #tpu.memory_space<vmem>>, vector<32x32xbf16>
    %cst_51 = arith.constant dense<0.000000e+00> : vector<16x32xf32>
    %100 = tpu.matmul %98, %99, %cst_51 {dimension_numbers = #tpu.dot_dimension_numbers<[1], [0], [0], [1], [0, 0, 1, 1], [], []>} : vector<16x32xbf16>, vector<32x32xbf16>, vector<16x32xf32> -> vector<16x32xf32>
    %c0_52 = arith.constant 0 : index
    %c0_53 = arith.constant 0 : index
    %101 = vector.load %arg18[%c0_52, %c0_53] : memref<1x32xf32, #tpu.memory_space<vmem>>, vector<1x32xf32>
    %102 = vector.broadcast %101 : vector<1x32xf32> to vector<16x32xf32>
    %103 = arith.addf %100, %102 : vector<16x32xf32>
    %cst_54 = arith.constant 0.353553385 : f32
    %104 = vector.broadcast %cst_54 : f32 to vector<8x32xf32>
    %105 = arith.mulf %91, %104 : vector<8x32xf32>
    %106 = vector.shape_cast %105 : vector<8x32xf32> to vector<8x4x8xf32>
    %107 = tpu.transpose %106, [1, 0, 2] : vector<8x4x8xf32> -> vector<4x8x8xf32>
    %108 = arith.truncf %107 : vector<4x8x8xf32> to vector<4x8x8xbf16>
    %109 = vector.shape_cast %97 : vector<16x32xf32> to vector<16x4x8xf32>
    %110 = tpu.transpose %109, [1, 0, 2] : vector<16x4x8xf32> -> vector<4x16x8xf32>
    %111 = arith.truncf %110 : vector<4x16x8xf32> to vector<4x16x8xbf16>
    %112 = vector.shape_cast %103 : vector<16x32xf32> to vector<16x4x8xf32>
    %113 = tpu.transpose %112, [1, 0, 2] : vector<16x4x8xf32> -> vector<4x16x8xf32>
    %114 = arith.truncf %113 : vector<4x16x8xf32> to vector<4x16x8xbf16>
    "tpu.trace_start"() <{level = 10 : i32, message = "hqd,hkd->hqk"}> : () -> ()
    %cst_55 = arith.constant dense<0.000000e+00> : vector<4x8x16xf32>
    %115 = tpu.matmul %108, %111, %cst_55 {dimension_numbers = #tpu.dot_dimension_numbers<[2], [2], [1], [1], [0, 0, 0, 1, 1, 1], [0], [0]>} : vector<4x8x8xbf16>, vector<4x16x8xbf16>, vector<4x8x16xf32> -> vector<4x8x16xf32>
    "tpu.trace_stop"() : () -> ()
    %cst_56 = arith.constant dense<0xFF800000> : vector<4x8xf32>
    %116 = vector.multi_reduction <maximumf>, %115, %cst_56 [2] : vector<4x8x16xf32> to vector<4x8xf32>
    %117 = vector.shape_cast %116 : vector<4x8xf32> to vector<4x8x1xf32>
    %118 = vector.broadcast %117 : vector<4x8x1xf32> to vector<4x8x16xf32>
    %119 = arith.subf %115, %118 : vector<4x8x16xf32>
    %120 = math.exp %119 : vector<4x8x16xf32>
    %cst_57 = arith.constant dense<0.000000e+00> : vector<4x8xf32>
    %121 = vector.multi_reduction <add>, %120, %cst_57 [2] : vector<4x8x16xf32> to vector<4x8xf32>
    %122 = vector.shape_cast %121 : vector<4x8xf32> to vector<4x8x1xf32>
    %123 = tpu.reciprocal %122 {approx = true} : vector<4x8x1xf32> -> vector<4x8x1xf32>
    %124 = vector.broadcast %123 : vector<4x8x1xf32> to vector<4x8x16xf32>
    %125 = arith.mulf %120, %124 : vector<4x8x16xf32>
    %126 = arith.truncf %125 : vector<4x8x16xf32> to vector<4x8x16xbf16>
    "tpu.trace_start"() <{level = 10 : i32, message = "hqk,hkd->hqd"}> : () -> ()
    %cst_58 = arith.constant dense<0.000000e+00> : vector<4x8x8xf32>
    %127 = tpu.matmul %126, %114, %cst_58 {dimension_numbers = #tpu.dot_dimension_numbers<[2], [1], [1], [2], [0, 0, 0, 1, 1, 2], [0], [0]>} : vector<4x8x16xbf16>, vector<4x16x8xbf16>, vector<4x8x8xf32> -> vector<4x8x8xf32>
    "tpu.trace_stop"() : () -> ()
    %128 = tpu.transpose %127, [1, 0, 2] : vector<4x8x8xf32> -> vector<8x4x8xf32>
    %129 = vector.shape_cast %128 : vector<8x4x8xf32> to vector<8x32xf32>
    %130 = arith.truncf %129 : vector<8x32xf32> to vector<8x32xbf16>
    %c0_59 = arith.constant 0 : index
    %c0_60 = arith.constant 0 : index
    %131 = vector.load %arg15[%c0_59, %c0_60] : memref<32x32xbf16, #tpu.memory_space<vmem>>, vector<32x32xbf16>
    %cst_61 = arith.constant dense<0.000000e+00> : vector<8x32xf32>
    %132 = tpu.matmul %130, %131, %cst_61 {dimension_numbers = #tpu.dot_dimension_numbers<[1], [0], [0], [1], [0, 0, 1, 1], [], []>} : vector<8x32xbf16>, vector<32x32xbf16>, vector<8x32xf32> -> vector<8x32xf32>
    %c0_62 = arith.constant 0 : index
    %c0_63 = arith.constant 0 : index
    %133 = vector.load %arg19[%c0_62, %c0_63] : memref<1x32xf32, #tpu.memory_space<vmem>>, vector<1x32xf32>
    %134 = vector.broadcast %133 : vector<1x32xf32> to vector<8x32xf32>
    %135 = arith.addf %132, %134 : vector<8x32xf32>
    %136 = arith.addf %83, %135 : vector<8x32xf32>
    %c0_64 = arith.constant 0 : index
    %c0_65 = arith.constant 0 : index
    %137 = vector.load %arg20[%c0_64, %c0_65] : memref<1x32xf32, #tpu.memory_space<vmem>>, vector<1x32xf32>
    %c0_66 = arith.constant 0 : index
    %c0_67 = arith.constant 0 : index
    %138 = vector.load %arg21[%c0_66, %c0_67] : memref<1x32xf32, #tpu.memory_space<vmem>>, vector<1x32xf32>
    %cst_68 = arith.constant dense<0.000000e+00> : vector<8xf32>
    %139 = vector.multi_reduction <add>, %136, %cst_68 [1] : vector<8x32xf32> to vector<8xf32>
    %140 = vector.shape_cast %139 : vector<8xf32> to vector<8x1xf32>
    %cst_69 = arith.constant 3.200000e+01 : f32
    %141 = vector.broadcast %cst_69 : f32 to vector<8x1xf32>
    %142 = arith.divf %140, %141 : vector<8x1xf32>
    %143 = vector.broadcast %142 : vector<8x1xf32> to vector<8x32xf32>
    %144 = arith.subf %136, %143 : vector<8x32xf32>
    %145 = arith.mulf %144, %144 : vector<8x32xf32>
    %cst_70 = arith.constant dense<0.000000e+00> : vector<8xf32>
    %146 = vector.multi_reduction <add>, %145, %cst_70 [1] : vector<8x32xf32> to vector<8xf32>
    %147 = vector.shape_cast %146 : vector<8xf32> to vector<8x1xf32>
    %cst_71 = arith.constant 3.200000e+01 : f32
    %148 = vector.broadcast %cst_71 : f32 to vector<8x1xf32>
    %149 = arith.divf %147, %148 : vector<8x1xf32>
    %150 = vector.broadcast %142 : vector<8x1xf32> to vector<8x32xf32>
    %151 = arith.subf %136, %150 : vector<8x32xf32>
    %cst_72 = arith.constant 9.99999974E-6 : f32
    %152 = vector.broadcast %cst_72 : f32 to vector<8x1xf32>
    %153 = arith.addf %149, %152 : vector<8x1xf32>
    %154 = math.rsqrt %153 : vector<8x1xf32>
    %155 = vector.broadcast %154 : vector<8x1xf32> to vector<8x32xf32>
    %156 = arith.mulf %151, %155 : vector<8x32xf32>
    %157 = vector.broadcast %137 : vector<1x32xf32> to vector<8x32xf32>
    %158 = arith.mulf %156, %157 : vector<8x32xf32>
    %159 = vector.broadcast %138 : vector<1x32xf32> to vector<8x32xf32>
    %160 = arith.addf %158, %159 : vector<8x32xf32>
    %161 = arith.truncf %160 : vector<8x32xf32> to vector<8x32xbf16>
    %c0_73 = arith.constant 0 : index
    %c0_74 = arith.constant 0 : index
    %162 = vector.load %arg22[%c0_73, %c0_74] : memref<32x64xbf16, #tpu.memory_space<vmem>>, vector<32x64xbf16>
    %cst_75 = arith.constant dense<0.000000e+00> : vector<8x64xf32>
    %163 = tpu.matmul %161, %162, %cst_75 {dimension_numbers = #tpu.dot_dimension_numbers<[1], [0], [0], [1], [0, 0, 1, 1], [], []>} : vector<8x32xbf16>, vector<32x64xbf16>, vector<8x64xf32> -> vector<8x64xf32>
    %c0_76 = arith.constant 0 : index
    %c0_77 = arith.constant 0 : index
    %164 = vector.load %arg23[%c0_76, %c0_77] : memref<1x64xf32, #tpu.memory_space<vmem>>, vector<1x64xf32>
    %165 = vector.broadcast %164 : vector<1x64xf32> to vector<8x64xf32>
    %166 = arith.addf %163, %165 : vector<8x64xf32>
    %cst_78 = arith.constant 0.000000e+00 : f32
    %167 = vector.broadcast %cst_78 : f32 to vector<8x64xf32>
    %168 = arith.maximumf %166, %167 : vector<8x64xf32>
    %169 = arith.truncf %168 : vector<8x64xf32> to vector<8x64xbf16>
    %c0_79 = arith.constant 0 : index
    %c0_80 = arith.constant 0 : index
    %170 = vector.load %arg24[%c0_79, %c0_80] : memref<64x32xbf16, #tpu.memory_space<vmem>>, vector<64x32xbf16>
    %cst_81 = arith.constant dense<0.000000e+00> : vector<8x32xf32>
    %171 = tpu.matmul %169, %170, %cst_81 {dimension_numbers = #tpu.dot_dimension_numbers<[1], [0], [0], [1], [0, 0, 1, 1], [], []>} : vector<8x64xbf16>, vector<64x32xbf16>, vector<8x32xf32> -> vector<8x32xf32>
    %c0_82 = arith.constant 0 : index
    %c0_83 = arith.constant 0 : index
    %172 = vector.load %arg25[%c0_82, %c0_83] : memref<1x32xf32, #tpu.memory_space<vmem>>, vector<1x32xf32>
    %173 = vector.broadcast %172 : vector<1x32xf32> to vector<8x32xf32>
    %174 = arith.addf %171, %173 : vector<8x32xf32>
    %175 = arith.addf %160, %174 : vector<8x32xf32>
    %c0_84 = arith.constant 0 : index
    %c0_85 = arith.constant 0 : index
    %176 = vector.load %arg26[%c0_84, %c0_85] : memref<1x32xf32, #tpu.memory_space<vmem>>, vector<1x32xf32>
    %c0_86 = arith.constant 0 : index
    %c0_87 = arith.constant 0 : index
    %177 = vector.load %arg27[%c0_86, %c0_87] : memref<1x32xf32, #tpu.memory_space<vmem>>, vector<1x32xf32>
    %cst_88 = arith.constant dense<0.000000e+00> : vector<8xf32>
    %178 = vector.multi_reduction <add>, %175, %cst_88 [1] : vector<8x32xf32> to vector<8xf32>
    %179 = vector.shape_cast %178 : vector<8xf32> to vector<8x1xf32>
    %cst_89 = arith.constant 3.200000e+01 : f32
    %180 = vector.broadcast %cst_89 : f32 to vector<8x1xf32>
    %181 = arith.divf %179, %180 : vector<8x1xf32>
    %182 = vector.broadcast %181 : vector<8x1xf32> to vector<8x32xf32>
    %183 = arith.subf %175, %182 : vector<8x32xf32>
    %184 = arith.mulf %183, %183 : vector<8x32xf32>
    %cst_90 = arith.constant dense<0.000000e+00> : vector<8xf32>
    %185 = vector.multi_reduction <add>, %184, %cst_90 [1] : vector<8x32xf32> to vector<8xf32>
    %186 = vector.shape_cast %185 : vector<8xf32> to vector<8x1xf32>
    %cst_91 = arith.constant 3.200000e+01 : f32
    %187 = vector.broadcast %cst_91 : f32 to vector<8x1xf32>
    %188 = arith.divf %186, %187 : vector<8x1xf32>
    %189 = vector.broadcast %181 : vector<8x1xf32> to vector<8x32xf32>
    %190 = arith.subf %175, %189 : vector<8x32xf32>
    %cst_92 = arith.constant 9.99999974E-6 : f32
    %191 = vector.broadcast %cst_92 : f32 to vector<8x1xf32>
    %192 = arith.addf %188, %191 : vector<8x1xf32>
    %193 = math.rsqrt %192 : vector<8x1xf32>
    %194 = vector.broadcast %193 : vector<8x1xf32> to vector<8x32xf32>
    %195 = arith.mulf %190, %194 : vector<8x32xf32>
    %196 = vector.broadcast %176 : vector<1x32xf32> to vector<8x32xf32>
    %197 = arith.mulf %195, %196 : vector<8x32xf32>
    %198 = vector.broadcast %177 : vector<1x32xf32> to vector<8x32xf32>
    %199 = arith.addf %197, %198 : vector<8x32xf32>
    %200 = vector.extract_strided_slice %0 {offsets = [0, 1, 0], sizes = [8, 1, 32], strides = [1, 1, 1]} : vector<8x2x32xf32> to vector<8x1x32xf32>
    %201 = vector.shape_cast %200 : vector<8x1x32xf32> to vector<8x32xf32>
    %202 = vector.extract_strided_slice %1 {offsets = [0, 1, 0], sizes = [16, 1, 32], strides = [1, 1, 1]} : vector<16x2x32xf32> to vector<16x1x32xf32>
    %203 = vector.shape_cast %202 : vector<16x1x32xf32> to vector<16x32xf32>
    %204 = vector.extract_strided_slice %2 {offsets = [0, 1, 0], sizes = [8, 1, 32], strides = [1, 1, 1]} : vector<8x2x32xf32> to vector<8x1x32xf32>
    %205 = vector.shape_cast %204 : vector<8x1x32xf32> to vector<8x32xf32>
    %206 = vector.extract_strided_slice %3 {offsets = [0, 1, 0], sizes = [16, 1, 32], strides = [1, 1, 1]} : vector<16x2x32xf32> to vector<16x1x32xf32>
    %207 = vector.shape_cast %206 : vector<16x1x32xf32> to vector<16x32xf32>
    %208 = arith.addf %201, %205 : vector<8x32xf32>
    %209 = arith.truncf %208 : vector<8x32xf32> to vector<8x32xbf16>
    %c0_93 = arith.constant 0 : index
    %c0_94 = arith.constant 0 : index
    %210 = vector.load %arg4[%c0_93, %c0_94] : memref<32x64xbf16, #tpu.memory_space<vmem>>, vector<32x64xbf16>
    %cst_95 = arith.constant dense<0.000000e+00> : vector<8x64xf32>
    %211 = tpu.matmul %209, %210, %cst_95 {dimension_numbers = #tpu.dot_dimension_numbers<[1], [0], [0], [1], [0, 0, 1, 1], [], []>} : vector<8x32xbf16>, vector<32x64xbf16>, vector<8x64xf32> -> vector<8x64xf32>
    %c0_96 = arith.constant 0 : index
    %c0_97 = arith.constant 0 : index
    %212 = vector.load %arg7[%c0_96, %c0_97] : memref<1x64xf32, #tpu.memory_space<vmem>>, vector<1x64xf32>
    %213 = vector.broadcast %212 : vector<1x64xf32> to vector<8x64xf32>
    %214 = arith.addf %211, %213 : vector<8x64xf32>
    %215 = vector.extract_strided_slice %214 {offsets = [0, 0], sizes = [8, 32], strides = [1, 1]} : vector<8x64xf32> to vector<8x32xf32>
    %216 = vector.extract_strided_slice %214 {offsets = [0, 32], sizes = [8, 32], strides = [1, 1]} : vector<8x64xf32> to vector<8x32xf32>
    %217 = arith.truncf %201 : vector<8x32xf32> to vector<8x32xbf16>
    %c0_98 = arith.constant 0 : index
    %c0_99 = arith.constant 0 : index
    %218 = vector.load %arg5[%c0_98, %c0_99] : memref<32x32xbf16, #tpu.memory_space<vmem>>, vector<32x32xbf16>
    %cst_100 = arith.constant dense<0.000000e+00> : vector<8x32xf32>
    %219 = tpu.matmul %217, %218, %cst_100 {dimension_numbers = #tpu.dot_dimension_numbers<[1], [0], [0], [1], [0, 0, 1, 1], [], []>} : vector<8x32xbf16>, vector<32x32xbf16>, vector<8x32xf32> -> vector<8x32xf32>
    %c0_101 = arith.constant 0 : index
    %c0_102 = arith.constant 0 : index
    %220 = vector.load %arg8[%c0_101, %c0_102] : memref<1x32xf32, #tpu.memory_space<vmem>>, vector<1x32xf32>
    %221 = vector.broadcast %220 : vector<1x32xf32> to vector<8x32xf32>
    %222 = arith.addf %219, %221 : vector<8x32xf32>
    %cst_103 = arith.constant 0.353553385 : f32
    %223 = vector.broadcast %cst_103 : f32 to vector<8x32xf32>
    %224 = arith.mulf %215, %223 : vector<8x32xf32>
    %225 = vector.shape_cast %224 : vector<8x32xf32> to vector<8x4x8xf32>
    %226 = tpu.transpose %225, [1, 0, 2] : vector<8x4x8xf32> -> vector<4x8x8xf32>
    %227 = arith.truncf %226 : vector<4x8x8xf32> to vector<4x8x8xbf16>
    %228 = vector.shape_cast %216 : vector<8x32xf32> to vector<8x4x8xf32>
    %229 = tpu.transpose %228, [1, 0, 2] : vector<8x4x8xf32> -> vector<4x8x8xf32>
    %230 = arith.truncf %229 : vector<4x8x8xf32> to vector<4x8x8xbf16>
    %231 = vector.shape_cast %222 : vector<8x32xf32> to vector<8x4x8xf32>
    %232 = tpu.transpose %231, [1, 0, 2] : vector<8x4x8xf32> -> vector<4x8x8xf32>
    %233 = arith.truncf %232 : vector<4x8x8xf32> to vector<4x8x8xbf16>
    "tpu.trace_start"() <{level = 10 : i32, message = "hqd,hkd->hqk"}> : () -> ()
    %cst_104 = arith.constant dense<0.000000e+00> : vector<4x8x8xf32>
    %234 = tpu.matmul %227, %230, %cst_104 {dimension_numbers = #tpu.dot_dimension_numbers<[2], [2], [1], [1], [0, 0, 0, 1, 1, 1], [0], [0]>} : vector<4x8x8xbf16>, vector<4x8x8xbf16>, vector<4x8x8xf32> -> vector<4x8x8xf32>
    "tpu.trace_stop"() : () -> ()
    %cst_105 = arith.constant dense<0xFF800000> : vector<4x8xf32>
    %235 = vector.multi_reduction <maximumf>, %234, %cst_105 [2] : vector<4x8x8xf32> to vector<4x8xf32>
    %236 = vector.shape_cast %235 : vector<4x8xf32> to vector<4x8x1xf32>
    %237 = vector.broadcast %236 : vector<4x8x1xf32> to vector<4x8x8xf32>
    %238 = arith.subf %234, %237 : vector<4x8x8xf32>
    %239 = math.exp %238 : vector<4x8x8xf32>
    %cst_106 = arith.constant dense<0.000000e+00> : vector<4x8xf32>
    %240 = vector.multi_reduction <add>, %239, %cst_106 [2] : vector<4x8x8xf32> to vector<4x8xf32>
    %241 = vector.shape_cast %240 : vector<4x8xf32> to vector<4x8x1xf32>
    %242 = tpu.reciprocal %241 {approx = true} : vector<4x8x1xf32> -> vector<4x8x1xf32>
    %243 = vector.broadcast %242 : vector<4x8x1xf32> to vector<4x8x8xf32>
    %244 = arith.mulf %239, %243 : vector<4x8x8xf32>
    %245 = arith.truncf %244 : vector<4x8x8xf32> to vector<4x8x8xbf16>
    "tpu.trace_start"() <{level = 10 : i32, message = "hqk,hkd->hqd"}> : () -> ()
    %cst_107 = arith.constant dense<0.000000e+00> : vector<4x8x8xf32>
    %246 = tpu.matmul %245, %233, %cst_107 {dimension_numbers = #tpu.dot_dimension_numbers<[2], [1], [1], [2], [0, 0, 0, 1, 1, 2], [0], [0]>} : vector<4x8x8xbf16>, vector<4x8x8xbf16>, vector<4x8x8xf32> -> vector<4x8x8xf32>
    "tpu.trace_stop"() : () -> ()
    %247 = tpu.transpose %246, [1, 0, 2] : vector<4x8x8xf32> -> vector<8x4x8xf32>
    %248 = vector.shape_cast %247 : vector<8x4x8xf32> to vector<8x32xf32>
    %249 = arith.truncf %248 : vector<8x32xf32> to vector<8x32xbf16>
    %c0_108 = arith.constant 0 : index
    %c0_109 = arith.constant 0 : index
    %250 = vector.load %arg6[%c0_108, %c0_109] : memref<32x32xbf16, #tpu.memory_space<vmem>>, vector<32x32xbf16>
    %cst_110 = arith.constant dense<0.000000e+00> : vector<8x32xf32>
    %251 = tpu.matmul %249, %250, %cst_110 {dimension_numbers = #tpu.dot_dimension_numbers<[1], [0], [0], [1], [0, 0, 1, 1], [], []>} : vector<8x32xbf16>, vector<32x32xbf16>, vector<8x32xf32> -> vector<8x32xf32>
    %c0_111 = arith.constant 0 : index
    %c0_112 = arith.constant 0 : index
    %252 = vector.load %arg9[%c0_111, %c0_112] : memref<1x32xf32, #tpu.memory_space<vmem>>, vector<1x32xf32>
    %253 = vector.broadcast %252 : vector<1x32xf32> to vector<8x32xf32>
    %254 = arith.addf %251, %253 : vector<8x32xf32>
    %255 = arith.addf %201, %254 : vector<8x32xf32>
    %c0_113 = arith.constant 0 : index
    %c0_114 = arith.constant 0 : index
    %256 = vector.load %arg10[%c0_113, %c0_114] : memref<1x32xf32, #tpu.memory_space<vmem>>, vector<1x32xf32>
    %c0_115 = arith.constant 0 : index
    %c0_116 = arith.constant 0 : index
    %257 = vector.load %arg11[%c0_115, %c0_116] : memref<1x32xf32, #tpu.memory_space<vmem>>, vector<1x32xf32>
    %cst_117 = arith.constant dense<0.000000e+00> : vector<8xf32>
    %258 = vector.multi_reduction <add>, %255, %cst_117 [1] : vector<8x32xf32> to vector<8xf32>
    %259 = vector.shape_cast %258 : vector<8xf32> to vector<8x1xf32>
    %cst_118 = arith.constant 3.200000e+01 : f32
    %260 = vector.broadcast %cst_118 : f32 to vector<8x1xf32>
    %261 = arith.divf %259, %260 : vector<8x1xf32>
    %262 = vector.broadcast %261 : vector<8x1xf32> to vector<8x32xf32>
    %263 = arith.subf %255, %262 : vector<8x32xf32>
    %264 = arith.mulf %263, %263 : vector<8x32xf32>
    %cst_119 = arith.constant dense<0.000000e+00> : vector<8xf32>
    %265 = vector.multi_reduction <add>, %264, %cst_119 [1] : vector<8x32xf32> to vector<8xf32>
    %266 = vector.shape_cast %265 : vector<8xf32> to vector<8x1xf32>
    %cst_120 = arith.constant 3.200000e+01 : f32
    %267 = vector.broadcast %cst_120 : f32 to vector<8x1xf32>
    %268 = arith.divf %266, %267 : vector<8x1xf32>
    %269 = vector.broadcast %261 : vector<8x1xf32> to vector<8x32xf32>
    %270 = arith.subf %255, %269 : vector<8x32xf32>
    %cst_121 = arith.constant 9.99999974E-6 : f32
    %271 = vector.broadcast %cst_121 : f32 to vector<8x1xf32>
    %272 = arith.addf %268, %271 : vector<8x1xf32>
    %273 = math.rsqrt %272 : vector<8x1xf32>
    %274 = vector.broadcast %273 : vector<8x1xf32> to vector<8x32xf32>
    %275 = arith.mulf %270, %274 : vector<8x32xf32>
    %276 = vector.broadcast %256 : vector<1x32xf32> to vector<8x32xf32>
    %277 = arith.mulf %275, %276 : vector<8x32xf32>
    %278 = vector.broadcast %257 : vector<1x32xf32> to vector<8x32xf32>
    %279 = arith.addf %277, %278 : vector<8x32xf32>
    %280 = arith.addf %279, %205 : vector<8x32xf32>
    %281 = arith.addf %203, %207 : vector<16x32xf32>
    %282 = arith.truncf %280 : vector<8x32xf32> to vector<8x32xbf16>
    %c0_122 = arith.constant 0 : index
    %c0_123 = arith.constant 0 : index
    %283 = vector.load %arg12[%c0_122, %c0_123] : memref<32x32xbf16, #tpu.memory_space<vmem>>, vector<32x32xbf16>
    %cst_124 = arith.constant dense<0.000000e+00> : vector<8x32xf32>
    %284 = tpu.matmul %282, %283, %cst_124 {dimension_numbers = #tpu.dot_dimension_numbers<[1], [0], [0], [1], [0, 0, 1, 1], [], []>} : vector<8x32xbf16>, vector<32x32xbf16>, vector<8x32xf32> -> vector<8x32xf32>
    %c0_125 = arith.constant 0 : index
    %c0_126 = arith.constant 0 : index
    %285 = vector.load %arg16[%c0_125, %c0_126] : memref<1x32xf32, #tpu.memory_space<vmem>>, vector<1x32xf32>
    %286 = vector.broadcast %285 : vector<1x32xf32> to vector<8x32xf32>
    %287 = arith.addf %284, %286 : vector<8x32xf32>
    %288 = arith.truncf %281 : vector<16x32xf32> to vector<16x32xbf16>
    %c0_127 = arith.constant 0 : index
    %c0_128 = arith.constant 0 : index
    %289 = vector.load %arg13[%c0_127, %c0_128] : memref<32x32xbf16, #tpu.memory_space<vmem>>, vector<32x32xbf16>
    %cst_129 = arith.constant dense<0.000000e+00> : vector<16x32xf32>
    %290 = tpu.matmul %288, %289, %cst_129 {dimension_numbers = #tpu.dot_dimension_numbers<[1], [0], [0], [1], [0, 0, 1, 1], [], []>} : vector<16x32xbf16>, vector<32x32xbf16>, vector<16x32xf32> -> vector<16x32xf32>
    %c0_130 = arith.constant 0 : index
    %c0_131 = arith.constant 0 : index
    %291 = vector.load %arg17[%c0_130, %c0_131] : memref<1x32xf32, #tpu.memory_space<vmem>>, vector<1x32xf32>
    %292 = vector.broadcast %291 : vector<1x32xf32> to vector<16x32xf32>
    %293 = arith.addf %290, %292 : vector<16x32xf32>
    %294 = arith.truncf %203 : vector<16x32xf32> to vector<16x32xbf16>
    %c0_132 = arith.constant 0 : index
    %c0_133 = arith.constant 0 : index
    %295 = vector.load %arg14[%c0_132, %c0_133] : memref<32x32xbf16, #tpu.memory_space<vmem>>, vector<32x32xbf16>
    %cst_134 = arith.constant dense<0.000000e+00> : vector<16x32xf32>
    %296 = tpu.matmul %294, %295, %cst_134 {dimension_numbers = #tpu.dot_dimension_numbers<[1], [0], [0], [1], [0, 0, 1, 1], [], []>} : vector<16x32xbf16>, vector<32x32xbf16>, vector<16x32xf32> -> vector<16x32xf32>
    %c0_135 = arith.constant 0 : index
    %c0_136 = arith.constant 0 : index
    %297 = vector.load %arg18[%c0_135, %c0_136] : memref<1x32xf32, #tpu.memory_space<vmem>>, vector<1x32xf32>
    %298 = vector.broadcast %297 : vector<1x32xf32> to vector<16x32xf32>
    %299 = arith.addf %296, %298 : vector<16x32xf32>
    %cst_137 = arith.constant 0.353553385 : f32
    %300 = vector.broadcast %cst_137 : f32 to vector<8x32xf32>
    %301 = arith.mulf %287, %300 : vector<8x32xf32>
    %302 = vector.shape_cast %301 : vector<8x32xf32> to vector<8x4x8xf32>
    %303 = tpu.transpose %302, [1, 0, 2] : vector<8x4x8xf32> -> vector<4x8x8xf32>
    %304 = arith.truncf %303 : vector<4x8x8xf32> to vector<4x8x8xbf16>
    %305 = vector.shape_cast %293 : vector<16x32xf32> to vector<16x4x8xf32>
    %306 = tpu.transpose %305, [1, 0, 2] : vector<16x4x8xf32> -> vector<4x16x8xf32>
    %307 = arith.truncf %306 : vector<4x16x8xf32> to vector<4x16x8xbf16>
    %308 = vector.shape_cast %299 : vector<16x32xf32> to vector<16x4x8xf32>
    %309 = tpu.transpose %308, [1, 0, 2] : vector<16x4x8xf32> -> vector<4x16x8xf32>
    %310 = arith.truncf %309 : vector<4x16x8xf32> to vector<4x16x8xbf16>
    "tpu.trace_start"() <{level = 10 : i32, message = "hqd,hkd->hqk"}> : () -> ()
    %cst_138 = arith.constant dense<0.000000e+00> : vector<4x8x16xf32>
    %311 = tpu.matmul %304, %307, %cst_138 {dimension_numbers = #tpu.dot_dimension_numbers<[2], [2], [1], [1], [0, 0, 0, 1, 1, 1], [0], [0]>} : vector<4x8x8xbf16>, vector<4x16x8xbf16>, vector<4x8x16xf32> -> vector<4x8x16xf32>
    "tpu.trace_stop"() : () -> ()
    %cst_139 = arith.constant dense<0xFF800000> : vector<4x8xf32>
    %312 = vector.multi_reduction <maximumf>, %311, %cst_139 [2] : vector<4x8x16xf32> to vector<4x8xf32>
    %313 = vector.shape_cast %312 : vector<4x8xf32> to vector<4x8x1xf32>
    %314 = vector.broadcast %313 : vector<4x8x1xf32> to vector<4x8x16xf32>
    %315 = arith.subf %311, %314 : vector<4x8x16xf32>
    %316 = math.exp %315 : vector<4x8x16xf32>
    %cst_140 = arith.constant dense<0.000000e+00> : vector<4x8xf32>
    %317 = vector.multi_reduction <add>, %316, %cst_140 [2] : vector<4x8x16xf32> to vector<4x8xf32>
    %318 = vector.shape_cast %317 : vector<4x8xf32> to vector<4x8x1xf32>
    %319 = tpu.reciprocal %318 {approx = true} : vector<4x8x1xf32> -> vector<4x8x1xf32>
    %320 = vector.broadcast %319 : vector<4x8x1xf32> to vector<4x8x16xf32>
    %321 = arith.mulf %316, %320 : vector<4x8x16xf32>
    %322 = arith.truncf %321 : vector<4x8x16xf32> to vector<4x8x16xbf16>
    "tpu.trace_start"() <{level = 10 : i32, message = "hqk,hkd->hqd"}> : () -> ()
    %cst_141 = arith.constant dense<0.000000e+00> : vector<4x8x8xf32>
    %323 = tpu.matmul %322, %310, %cst_141 {dimension_numbers = #tpu.dot_dimension_numbers<[2], [1], [1], [2], [0, 0, 0, 1, 1, 2], [0], [0]>} : vector<4x8x16xbf16>, vector<4x16x8xbf16>, vector<4x8x8xf32> -> vector<4x8x8xf32>
    "tpu.trace_stop"() : () -> ()
    %324 = tpu.transpose %323, [1, 0, 2] : vector<4x8x8xf32> -> vector<8x4x8xf32>
    %325 = vector.shape_cast %324 : vector<8x4x8xf32> to vector<8x32xf32>
    %326 = arith.truncf %325 : vector<8x32xf32> to vector<8x32xbf16>
    %c0_142 = arith.constant 0 : index
    %c0_143 = arith.constant 0 : index
    %327 = vector.load %arg15[%c0_142, %c0_143] : memref<32x32xbf16, #tpu.memory_space<vmem>>, vector<32x32xbf16>
    %cst_144 = arith.constant dense<0.000000e+00> : vector<8x32xf32>
    %328 = tpu.matmul %326, %327, %cst_144 {dimension_numbers = #tpu.dot_dimension_numbers<[1], [0], [0], [1], [0, 0, 1, 1], [], []>} : vector<8x32xbf16>, vector<32x32xbf16>, vector<8x32xf32> -> vector<8x32xf32>
    %c0_145 = arith.constant 0 : index
    %c0_146 = arith.constant 0 : index
    %329 = vector.load %arg19[%c0_145, %c0_146] : memref<1x32xf32, #tpu.memory_space<vmem>>, vector<1x32xf32>
    %330 = vector.broadcast %329 : vector<1x32xf32> to vector<8x32xf32>
    %331 = arith.addf %328, %330 : vector<8x32xf32>
    %332 = arith.addf %279, %331 : vector<8x32xf32>
    %c0_147 = arith.constant 0 : index
    %c0_148 = arith.constant 0 : index
    %333 = vector.load %arg20[%c0_147, %c0_148] : memref<1x32xf32, #tpu.memory_space<vmem>>, vector<1x32xf32>
    %c0_149 = arith.constant 0 : index
    %c0_150 = arith.constant 0 : index
    %334 = vector.load %arg21[%c0_149, %c0_150] : memref<1x32xf32, #tpu.memory_space<vmem>>, vector<1x32xf32>
    %cst_151 = arith.constant dense<0.000000e+00> : vector<8xf32>
    %335 = vector.multi_reduction <add>, %332, %cst_151 [1] : vector<8x32xf32> to vector<8xf32>
    %336 = vector.shape_cast %335 : vector<8xf32> to vector<8x1xf32>
    %cst_152 = arith.constant 3.200000e+01 : f32
    %337 = vector.broadcast %cst_152 : f32 to vector<8x1xf32>
    %338 = arith.divf %336, %337 : vector<8x1xf32>
    %339 = vector.broadcast %338 : vector<8x1xf32> to vector<8x32xf32>
    %340 = arith.subf %332, %339 : vector<8x32xf32>
    %341 = arith.mulf %340, %340 : vector<8x32xf32>
    %cst_153 = arith.constant dense<0.000000e+00> : vector<8xf32>
    %342 = vector.multi_reduction <add>, %341, %cst_153 [1] : vector<8x32xf32> to vector<8xf32>
    %343 = vector.shape_cast %342 : vector<8xf32> to vector<8x1xf32>
    %cst_154 = arith.constant 3.200000e+01 : f32
    %344 = vector.broadcast %cst_154 : f32 to vector<8x1xf32>
    %345 = arith.divf %343, %344 : vector<8x1xf32>
    %346 = vector.broadcast %338 : vector<8x1xf32> to vector<8x32xf32>
    %347 = arith.subf %332, %346 : vector<8x32xf32>
    %cst_155 = arith.constant 9.99999974E-6 : f32
    %348 = vector.broadcast %cst_155 : f32 to vector<8x1xf32>
    %349 = arith.addf %345, %348 : vector<8x1xf32>
    %350 = math.rsqrt %349 : vector<8x1xf32>
    %351 = vector.broadcast %350 : vector<8x1xf32> to vector<8x32xf32>
    %352 = arith.mulf %347, %351 : vector<8x32xf32>
    %353 = vector.broadcast %333 : vector<1x32xf32> to vector<8x32xf32>
    %354 = arith.mulf %352, %353 : vector<8x32xf32>
    %355 = vector.broadcast %334 : vector<1x32xf32> to vector<8x32xf32>
    %356 = arith.addf %354, %355 : vector<8x32xf32>
    %357 = arith.truncf %356 : vector<8x32xf32> to vector<8x32xbf16>
    %c0_156 = arith.constant 0 : index
    %c0_157 = arith.constant 0 : index
    %358 = vector.load %arg22[%c0_156, %c0_157] : memref<32x64xbf16, #tpu.memory_space<vmem>>, vector<32x64xbf16>
    %cst_158 = arith.constant dense<0.000000e+00> : vector<8x64xf32>
    %359 = tpu.matmul %357, %358, %cst_158 {dimension_numbers = #tpu.dot_dimension_numbers<[1], [0], [0], [1], [0, 0, 1, 1], [], []>} : vector<8x32xbf16>, vector<32x64xbf16>, vector<8x64xf32> -> vector<8x64xf32>
    %c0_159 = arith.constant 0 : index
    %c0_160 = arith.constant 0 : index
    %360 = vector.load %arg23[%c0_159, %c0_160] : memref<1x64xf32, #tpu.memory_space<vmem>>, vector<1x64xf32>
    %361 = vector.broadcast %360 : vector<1x64xf32> to vector<8x64xf32>
    %362 = arith.addf %359, %361 : vector<8x64xf32>
    %cst_161 = arith.constant 0.000000e+00 : f32
    %363 = vector.broadcast %cst_161 : f32 to vector<8x64xf32>
    %364 = arith.maximumf %362, %363 : vector<8x64xf32>
    %365 = arith.truncf %364 : vector<8x64xf32> to vector<8x64xbf16>
    %c0_162 = arith.constant 0 : index
    %c0_163 = arith.constant 0 : index
    %366 = vector.load %arg24[%c0_162, %c0_163] : memref<64x32xbf16, #tpu.memory_space<vmem>>, vector<64x32xbf16>
    %cst_164 = arith.constant dense<0.000000e+00> : vector<8x32xf32>
    %367 = tpu.matmul %365, %366, %cst_164 {dimension_numbers = #tpu.dot_dimension_numbers<[1], [0], [0], [1], [0, 0, 1, 1], [], []>} : vector<8x64xbf16>, vector<64x32xbf16>, vector<8x32xf32> -> vector<8x32xf32>
    %c0_165 = arith.constant 0 : index
    %c0_166 = arith.constant 0 : index
    %368 = vector.load %arg25[%c0_165, %c0_166] : memref<1x32xf32, #tpu.memory_space<vmem>>, vector<1x32xf32>
    %369 = vector.broadcast %368 : vector<1x32xf32> to vector<8x32xf32>
    %370 = arith.addf %367, %369 : vector<8x32xf32>
    %371 = arith.addf %356, %370 : vector<8x32xf32>
    %c0_167 = arith.constant 0 : index
    %c0_168 = arith.constant 0 : index
    %372 = vector.load %arg26[%c0_167, %c0_168] : memref<1x32xf32, #tpu.memory_space<vmem>>, vector<1x32xf32>
    %c0_169 = arith.constant 0 : index
    %c0_170 = arith.constant 0 : index
    %373 = vector.load %arg27[%c0_169, %c0_170] : memref<1x32xf32, #tpu.memory_space<vmem>>, vector<1x32xf32>
    %cst_171 = arith.constant dense<0.000000e+00> : vector<8xf32>
    %374 = vector.multi_reduction <add>, %371, %cst_171 [1] : vector<8x32xf32> to vector<8xf32>
    %375 = vector.shape_cast %374 : vector<8xf32> to vector<8x1xf32>
    %cst_172 = arith.constant 3.200000e+01 : f32
    %376 = vector.broadcast %cst_172 : f32 to vector<8x1xf32>
    %377 = arith.divf %375, %376 : vector<8x1xf32>
    %378 = vector.broadcast %377 : vector<8x1xf32> to vector<8x32xf32>
    %379 = arith.subf %371, %378 : vector<8x32xf32>
    %380 = arith.mulf %379, %379 : vector<8x32xf32>
    %cst_173 = arith.constant dense<0.000000e+00> : vector<8xf32>
    %381 = vector.multi_reduction <add>, %380, %cst_173 [1] : vector<8x32xf32> to vector<8xf32>
    %382 = vector.shape_cast %381 : vector<8xf32> to vector<8x1xf32>
    %cst_174 = arith.constant 3.200000e+01 : f32
    %383 = vector.broadcast %cst_174 : f32 to vector<8x1xf32>
    %384 = arith.divf %382, %383 : vector<8x1xf32>
    %385 = vector.broadcast %377 : vector<8x1xf32> to vector<8x32xf32>
    %386 = arith.subf %371, %385 : vector<8x32xf32>
    %cst_175 = arith.constant 9.99999974E-6 : f32
    %387 = vector.broadcast %cst_175 : f32 to vector<8x1xf32>
    %388 = arith.addf %384, %387 : vector<8x1xf32>
    %389 = math.rsqrt %388 : vector<8x1xf32>
    %390 = vector.broadcast %389 : vector<8x1xf32> to vector<8x32xf32>
    %391 = arith.mulf %386, %390 : vector<8x32xf32>
    %392 = vector.broadcast %372 : vector<1x32xf32> to vector<8x32xf32>
    %393 = arith.mulf %391, %392 : vector<8x32xf32>
    %394 = vector.broadcast %373 : vector<1x32xf32> to vector<8x32xf32>
    %395 = arith.addf %393, %394 : vector<8x32xf32>
    %396 = vector.shape_cast %199 : vector<8x32xf32> to vector<8x1x32xf32>
    %397 = vector.shape_cast %395 : vector<8x32xf32> to vector<8x1x32xf32>
    %398 = tpu.concatenate %396, %397 in 1 : vector<8x1x32xf32>, vector<8x1x32xf32> -> vector<8x2x32xf32>
    %c0_176 = arith.constant 0 : index
    %c0_177 = arith.constant 0 : index
    %c0_178 = arith.constant 0 : index
    %399 = vector.load %arg28[%c0_176, %c0_177, %c0_178] : memref<8x2x32xf32, #tpu.memory_space<vmem>>, vector<8x2x32xf32>
    tpu.vector_store %arg28[%c0_176, %c0_177, %c0_178], %398 {strides = array<i32>} : memref<8x2x32xf32, #tpu.memory_space<vmem>>, vector<8x2x32xf32>,
    return
  }
}

</mosaic_0001>

<bundles_post_ra>
// kernel: transformer_decoder_layer_forward.1
= control target key start
LH: loop header
LB: loop body
LE: loop exit
PB: predicated region body
PF: predicated region fallthrough
CT: control target
= control target key end

     0   :  { %s11652_s0 = inlined_call_operand.hbm [shape: f32[8,2,32], index: 0, kind: input, shape index: {}]   ;;  %s11653_s1 = inlined_call_operand.vmem [shape: f32[16,2,32], index: 1, kind: input, shape index: {}]   ;;  %s11654_s2 = inlined_call_operand.vmem [shape: f32[8,2,32], index: 2, kind: input, shape index: {}]   ;;  %s11655_s3 = inlined_call_operand.vmem [shape: f32[16,2,32], index: 3, kind: input, shape index: {}]   ;;  %s11656_s4 = inlined_call_operand.vmem [shape: bf16[32,64], index: 4, kind: input, shape index: {}]   ;;  %s11657_s5 = inlined_call_operand.vmem [shape: bf16[32,32], index: 5, kind: input, shape index: {}]   ;;  %s11658_s6 = inlined_call_operand.hbm [shape: bf16[32,32], index: 6, kind: input, shape index: {}]   ;;  %s11659_s7 = inlined_call_operand.vmem [shape: f32[1,64], index: 7, kind: input, shape index: {}]   ;;  %s11660_s8 = inlined_call_operand.vmem [shape: f32[1,32], index: 8, kind: input, shape index: {}]   ;;  %s11661_s9 = inlined_call_operand.vmem [shape: f32[1,32], index: 9, kind: input, shape index: {}]   ;;  %s11662_s10 = inlined_call_operand.hbm [shape: f32[1,32], index: 10, kind: input, shape index: {}]   ;;  %s11663_s11 = inlined_call_operand.hbm [shape: f32[1,32], index: 11, kind: input, shape index: {}]   ;;  %s11664_s12 = inlined_call_operand.hbm [shape: bf16[32,32], index: 12, kind: input, shape index: {}]   ;;  %s11665_s13 = inlined_call_operand.hbm [shape: bf16[32,32], index: 13, kind: input, shape index: {}]   ;;  %s11666_s14 = inlined_call_operand.hbm [shape: bf16[32,32], index: 14, kind: input, shape index: {}]   ;;  %s11667_s15 = inlined_call_operand.hbm [shape: bf16[32,32], index: 15, kind: input, shape index: {}]   ;;  %s11668_s16 = inlined_call_operand.hbm [shape: f32[1,32], index: 16, kind: input, shape index: {}]   ;;  %s11669_s17 = inlined_call_operand.hbm [shape: f32[1,32], index: 17, kind: input, shape index: {}]   ;;  %s11670_s18 = inlined_call_operand.hbm [shape: f32[1,32], index: 18, kind: input, shape index: {}]   ;;  %s11671_s19 = inlined_call_operand.hbm [shape: f32[1,32], index: 19, kind: input, shape index: {}]   ;;  %s11672_s20 = inlined_call_operand.hbm [shape: f32[1,32], index: 20, kind: input, shape index: {}]   ;;  %s11673_s21 = inlined_call_operand.hbm [shape: f32[1,32], index: 21, kind: input, shape index: {}]   ;;  %s11674_s22 = inlined_call_operand.hbm [shape: bf16[32,64], index: 22, kind: input, shape index: {}]   ;;  %s11675_s23 = inlined_call_operand.hbm [shape: f32[1,64], index: 23, kind: input, shape index: {}]   ;;  %s11676_s24 = inlined_call_operand.vmem [shape: bf16[64,32], index: 24, kind: input, shape index: {}]   ;;  %s11677_s25 = inlined_call_operand.hbm [shape: f32[1,32], index: 25, kind: input, shape index: {}]   ;;  %s11678_s26 = inlined_call_operand.hbm [shape: f32[1,32], index: 26, kind: input, shape index: {}]   ;;  %s11679_s27 = inlined_call_operand.hbm [shape: f32[1,32], index: 27, kind: input, shape index: {}]   ;;  %s11680_s28 = inlined_call_operand.hbm [shape: f32[8,2,32], index: 28, kind: output, shape index: {}]  }
   0x1   :  { %11724 = sst [smem:[#allocation69_spill]] %s11652_s0 }
   0x2   :  { %11725 = sst [smem:[#allocation70_spill]] %s11653_s1 }
   0x3   :  { %11726 = sst [smem:[#allocation71_spill]] %s11654_s2 }
   0x4   :  { %11727 = sst [smem:[#allocation72_spill]] %s11655_s3 }
   0x5   :  { %11728 = sst [smem:[#allocation73_spill]] %s11656_s4 }
   0x6   :  { %11729 = sst [smem:[#allocation74_spill]] %s11657_s5 }
   0x7   :  { %11730 = sst [smem:[#allocation75_spill]] %s11658_s6 }
   0x8   :  { %11731 = sst [smem:[#allocation76_spill]] %s11659_s7 }
   0x9   :  { %11732 = sst [smem:[#allocation77_spill]] %s11660_s8 }
   0xa   :  { %11733 = sst [smem:[#allocation78_spill]] %s11661_s9 }
   0xb   :  { %11734 = sst [smem:[#allocation79_spill]] %s11662_s10 }
   0xc   :  { %11735 = sst [smem:[#allocation80_spill]] %s11663_s11 }
   0xd   :  { %11736 = sst [smem:[#allocation81_spill]] %s11664_s12 }
   0xe   :  { %11737 = sst [smem:[#allocation82_spill]] %s11676_s24 }
   0xf   :  { %11738 = sst [smem:[#allocation83_spill]] %s11679_s27 }
  0x10   :  { %11739 = sst [smem:[#allocation84_spill]] %s11680_s28 }
  0x11   :  { %33 = vsyncpa [#allocation3], 0 }
  0x12   :  { %34 = vsyncpa [#allocation6], 0 }
  0x13   :  { %35 = vsyncpa [#allocation9], 0 }
  0x14   :  { %36 = vsyncpa [#allocation12], 0 }
  0x15   :  { %37 = vsyncpa [#allocation15], 0 }
  0x16   :  { %38 = vsyncpa [#allocation18], 0 }
  0x17   :  { %39 = vsyncpa [#allocation21], 0 }
  0x18   :  { %40 = vsyncpa [#allocation24], 0 }
  0x19   :  { %41 = vsyncpa [#allocation27], 0 }
  0x1a   :  { %42 = vsyncpa [#allocation30], 0 }
  0x1b   :  { %43 = vsyncpa [#allocation4], 0  ;;  %s9139_s8 = smov [#allocation5]   ;;  %s11740_s3 = sld [smem:[#allocation75_spill]] }
  0x1c   :  { %s71_s5 = sshll.u32 %s9139_s8, 4  ;;  %s72_s5 = int_to_ptr.vmem [resolvable:$true] %s71_s5 }
  0x21   :  { %s8677_s6 = scalar_lea.hbm %s11740_s3, 256 }
  0x22   :  { %p8678_p0 = scmp.ne.s32.totalorder %s11740_s3, %s8677_s6  ;;  %p8681_p1 = scmp.lt.u32.totalorder %s8677_s6, %s11740_s3 }
  0x24   :  { %p8683_p2 = pnand %p8681_p1, %p8678_p0 }
  0x26   :  { %8686 = shalt.err (!%p8683_p2)
}
  0x27   :  { %s8687_s2 = scalar_lea.vmem %s72_s5, 256  ;;  %p8692_p4 = scmp.lt.s32.totalorder %s72_s5, %s72_s5 }
  0x28   :  { %p8688_p3 = scmp.ne.s32.totalorder %s72_s5, %s8687_s2  ;;  %p8693_p5 = scmp.lt.s32.totalorder %s8687_s2, %s8687_s2 }
  0x2a   :  { %p8694_p6 = por %p8693_p5, %p8692_p4 }
  0x2c   :  { %p8695_p7 = pnand %p8694_p6, %p8688_p3 }
  0x2e   :  { %8698 = shalt.err (!%p8695_p7)
}
  0x2f   :  { %s9140_s7 = smov 64   ;;  %s9141_s12 = smov 4  }
  0x30   :  { %77 = dma.hbm_to_vmem [thread:$0]  %s11740_s3, 256, %s72_s5, [#allocation6], %s9140_s7, %s9140_s7, %s9141_s12  }
  0x31   :  { %s9142_s8 = smov [#allocation8]   ;;  %s9143_s30 = smov [#allocation11]  }
  0x32   :  { %s100_s9 = sshll.u32 %s9142_s8, 4  ;;  %s121_s6 = sshll.u32 %s9143_s30, 4  ;;  %s101_s9 = int_to_ptr.vmem [resolvable:$true] %s100_s9  ;;  %s122_s6 = int_to_ptr.vmem [resolvable:$true] %s121_s6 }
  0x33   :  { %s11741_s11 = sld [smem:[#allocation80_spill]] }
  0x39   :  { %s8699_s29 = scalar_lea.hbm %s11741_s11, 16 }
  0x3a   :  { %p8700_p8 = scmp.ne.s32.totalorder %s11741_s11, %s8699_s29  ;;  %p8703_p9 = scmp.lt.u32.totalorder %s8699_s29, %s11741_s11 }
  0x3c   :  { %p8705_p10 = pnand %p8703_p9, %p8700_p8 }
  0x3e   :  { %8708 = shalt.err (!%p8705_p10)
}
  0x3f   :  { %s8709_s5 = scalar_lea.vmem %s101_s9, 16  ;;  %s8713_s3 = scalar_lea.vmem %s101_s9, 32 }
  0x40   :  { %p8710_p11 = scmp.ne.s32.totalorder %s101_s9, %s8709_s5  ;;  %p8714_p12 = scmp.lt.s32.totalorder %s101_s9, %s101_s9 }
  0x41   :  { %p8715_p13 = scmp.lt.s32.totalorder %s8713_s3, %s8709_s5 }
  0x43   :  { %p8716_p0 = por %p8715_p13, %p8714_p12 }
  0x45   :  { %p8717_p1 = pnand %p8716_p0, %p8710_p11 }
  0x47   :  { %8720 = shalt.err (!%p8717_p1)
}
  0x48   :  { %103 = dma.hbm_to_vmem [thread:$0]  %s11741_s11, 16, %s101_s9, [#allocation9]  }
  0x49   :  { %s8721_s24 = scalar_lea.hbm %s11665_s13, 256 }
  0x4a   :  { %p8722_p2 = scmp.ne.s32.totalorder %s11665_s13, %s8721_s24  ;;  %p8725_p3 = scmp.lt.u32.totalorder %s8721_s24, %s11665_s13 }
  0x4c   :  { %p8727_p4 = pnand %p8725_p3, %p8722_p2 }
  0x4e   :  { %8730 = shalt.err (!%p8727_p4)
}
  0x4f   :  { %s8731_s29 = scalar_lea.vmem %s122_s6, 256  ;;  %p8736_p6 = scmp.lt.s32.totalorder %s122_s6, %s122_s6 }
  0x50   :  { %p8732_p5 = scmp.ne.s32.totalorder %s122_s6, %s8731_s29  ;;  %p8737_p7 = scmp.lt.s32.totalorder %s8731_s29, %s8731_s29 }
  0x52   :  { %p8738_p8 = por %p8737_p7, %p8736_p6 }
  0x54   :  { %p8739_p9 = pnand %p8738_p8, %p8732_p5 }
  0x56   :  { %8742 = shalt.err (!%p8739_p9)
}
  0x57   :  { %127 = dma.hbm_to_vmem [thread:$0]  %s11665_s13, 256, %s122_s6, [#allocation12], %s9140_s7, %s9140_s7, %s9141_s12  }
  0x58   :  { %s9144_s2 = smov [#allocation14]   ;;  %s9145_s3 = smov [#allocation17]  }
  0x59   :  { %s145_s5 = sshll.u32 %s9144_s2, 4  ;;  %s168_s1 = sshll.u32 %s9145_s3, 4  ;;  %s146_s5 = int_to_ptr.vmem [resolvable:$true] %s145_s5  ;;  %s169_s1 = int_to_ptr.vmem [resolvable:$true] %s168_s1 }
  0x5a   :  { %s8743_s8 = scalar_lea.hbm %s11667_s15, 256 }
  0x5b   :  { %p8744_p10 = scmp.ne.s32.totalorder %s11667_s15, %s8743_s8  ;;  %p8747_p11 = scmp.lt.u32.totalorder %s8743_s8, %s11667_s15 }
  0x5d   :  { %p8749_p12 = pnand %p8747_p11, %p8744_p10 }
  0x5f   :  { %8752 = shalt.err (!%p8749_p12)
}
  0x60   :  { %s8753_s13 = scalar_lea.vmem %s146_s5, 256  ;;  %p8758_p0 = scmp.lt.s32.totalorder %s146_s5, %s146_s5 }
  0x61   :  { %p8754_p13 = scmp.ne.s32.totalorder %s146_s5, %s8753_s13  ;;  %p8759_p1 = scmp.lt.s32.totalorder %s8753_s13, %s8753_s13 }
  0x63   :  { %p8760_p2 = por %p8759_p1, %p8758_p0 }
  0x65   :  { %p8761_p3 = pnand %p8760_p2, %p8754_p13 }
  0x67   :  { %8764 = shalt.err (!%p8761_p3)
}
  0x68   :  { %151 = dma.hbm_to_vmem [thread:$0]  %s11667_s15, 256, %s146_s5, [#allocation15], %s9140_s7, %s9140_s7, %s9141_s12  }
  0x69   :  { %s8765_s11 = scalar_lea.hbm %s11669_s17, 16 }
  0x6a   :  { %p8766_p4 = scmp.ne.s32.totalorder %s11669_s17, %s8765_s11  ;;  %p8769_p5 = scmp.lt.u32.totalorder %s8765_s11, %s11669_s17 }
  0x6c   :  { %p8771_p6 = pnand %p8769_p5, %p8766_p4 }
  0x6e   :  { %8774 = shalt.err (!%p8771_p6)
}
  0x6f   :  { %s8775_s8 = scalar_lea.vmem %s169_s1, 16  ;;  %s8779_s24 = scalar_lea.vmem %s169_s1, 32 }
  0x70   :  { %p8776_p7 = scmp.ne.s32.totalorder %s169_s1, %s8775_s8  ;;  %p8780_p8 = scmp.lt.s32.totalorder %s169_s1, %s169_s1 }
  0x71   :  { %p8781_p9 = scmp.lt.s32.totalorder %s8779_s24, %s8775_s8 }
  0x73   :  { %p8782_p10 = por %p8781_p9, %p8780_p8 }
  0x75   :  { %p8783_p11 = pnand %p8782_p10, %p8776_p7 }
  0x77   :  { %8786 = shalt.err (!%p8783_p11)
}
  0x78   :  { %171 = dma.hbm_to_vmem [thread:$0]  %s11669_s17, 16, %s169_s1, [#allocation18]  }
  0x79   :  { %s9146_s27 = smov [#allocation20]   ;;  %s9147_s10 = smov [#allocation23]  }
  0x7a   :  { %s188_s30 = sshll.u32 %s9146_s27, 4  ;;  %s208_s13 = sshll.u32 %s9147_s10, 4  ;;  %s189_s30 = int_to_ptr.vmem [resolvable:$true] %s188_s30  ;;  %s209_s13 = int_to_ptr.vmem [resolvable:$true] %s208_s13 }
  0x7b   :  { %s8787_s29 = scalar_lea.hbm %s11671_s19, 16 }
  0x7c   :  { %p8788_p12 = scmp.ne.s32.totalorder %s11671_s19, %s8787_s29  ;;  %p8791_p13 = scmp.lt.u32.totalorder %s8787_s29, %s11671_s19 }
  0x7e   :  { %p8793_p0 = pnand %p8791_p13, %p8788_p12 }
  0x80   :  { %8796 = shalt.err (!%p8793_p0)
}
  0x81   :  { %s8797_s17 = scalar_lea.vmem %s189_s30, 16  ;;  %s8801_s1 = scalar_lea.vmem %s189_s30, 32 }
  0x82   :  { %p8798_p1 = scmp.ne.s32.totalorder %s189_s30, %s8797_s17  ;;  %p8802_p2 = scmp.lt.s32.totalorder %s189_s30, %s189_s30 }
  0x83   :  { %p8803_p3 = scmp.lt.s32.totalorder %s8801_s1, %s8797_s17 }
  0x85   :  { %p8804_p4 = por %p8803_p3, %p8802_p2 }
  0x87   :  { %p8805_p5 = pnand %p8804_p4, %p8798_p1 }
  0x89   :  { %8808 = shalt.err (!%p8805_p5)
}
  0x8a   :  { %191 = dma.hbm_to_vmem [thread:$0]  %s11671_s19, 16, %s189_s30, [#allocation21]  }
  0x8b   :  { %s8809_s15 = scalar_lea.hbm %s11673_s21, 16 }
  0x8c   :  { %p8810_p6 = scmp.ne.s32.totalorder %s11673_s21, %s8809_s15  ;;  %p8813_p7 = scmp.lt.u32.totalorder %s8809_s15, %s11673_s21 }
  0x8e   :  { %p8815_p8 = pnand %p8813_p7, %p8810_p6 }
  0x90   :  { %8818 = shalt.err (!%p8815_p8)
}
  0x91   :  { %s8819_s0 = scalar_lea.vmem %s209_s13, 16  ;;  %s8823_s29 = scalar_lea.vmem %s209_s13, 32 }
  0x92   :  { %p8820_p9 = scmp.ne.s32.totalorder %s209_s13, %s8819_s0  ;;  %p8824_p10 = scmp.lt.s32.totalorder %s209_s13, %s209_s13 }
  0x93   :  { %p8825_p11 = scmp.lt.s32.totalorder %s8823_s29, %s8819_s0 }
  0x95   :  { %p8826_p12 = por %p8825_p11, %p8824_p10 }
  0x97   :  { %p8827_p13 = pnand %p8826_p12, %p8820_p9 }
  0x99   :  { %8830 = shalt.err (!%p8827_p13)
}
  0x9a   :  { %211 = dma.hbm_to_vmem [thread:$0]  %s11673_s21, 16, %s209_s13, [#allocation24]  }
  0x9b   :  { %s9148_s9 = smov [#allocation26]   ;;  %s9149_s2 = smov [#allocation29]  }
  0x9c   :  { %s230_s11 = sshll.u32 %s9148_s9, 4  ;;  %s252_s3 = sshll.u32 %s9149_s2, 4  ;;  %s231_s11 = int_to_ptr.vmem [resolvable:$true] %s230_s11  ;;  %s253_s3 = int_to_ptr.vmem [resolvable:$true] %s252_s3 }
  0x9d   :  { %s8831_s4 = scalar_lea.hbm %s11675_s23, 16 }
  0x9e   :  { %p8832_p0 = scmp.ne.s32.totalorder %s11675_s23, %s8831_s4  ;;  %p8835_p1 = scmp.lt.u32.totalorder %s8831_s4, %s11675_s23 }
  0xa0   :  { %p8837_p2 = pnand %p8835_p1, %p8832_p0 }
  0xa2   :  { %8840 = shalt.err (!%p8837_p2)
}
  0xa3   :  { %s8841_s21 = scalar_lea.vmem %s231_s11, 16  ;;  %s8845_s13 = scalar_lea.vmem %s231_s11, 32 }
  0xa4   :  { %p8842_p3 = scmp.ne.s32.totalorder %s231_s11, %s8841_s21  ;;  %p8846_p4 = scmp.lt.s32.totalorder %s231_s11, %s231_s11 }
  0xa5   :  { %p8847_p5 = scmp.lt.s32.totalorder %s8845_s13, %s8841_s21 }
  0xa7   :  { %p8848_p6 = por %p8847_p5, %p8846_p4 }
  0xa9   :  { %p8849_p7 = pnand %p8848_p6, %p8842_p3 }
  0xab   :  { %8852 = shalt.err (!%p8849_p7)
}
  0xac   :  { %233 = dma.hbm_to_vmem [thread:$0]  %s11675_s23, 16, %s231_s11, [#allocation27]  }
  0xad   :  { %s8853_s0 = scalar_lea.hbm %s11678_s26, 16 }
  0xae   :  { %p8854_p8 = scmp.ne.s32.totalorder %s11678_s26, %s8853_s0  ;;  %p8857_p9 = scmp.lt.u32.totalorder %s8853_s0, %s11678_s26 }
  0xb0   :  { %p8859_p10 = pnand %p8857_p9, %p8854_p8 }
  0xb2   :  { %8862 = shalt.err (!%p8859_p10)
}
  0xb3   :  { %s8863_s2 = scalar_lea.vmem %s253_s3, 16  ;;  %s8867_s17 = scalar_lea.vmem %s253_s3, 32 }
  0xb4   :  { %p8864_p11 = scmp.ne.s32.totalorder %s253_s3, %s8863_s2  ;;  %p8868_p12 = scmp.lt.s32.totalorder %s253_s3, %s253_s3 }
  0xb5   :  { %p8869_p13 = scmp.lt.s32.totalorder %s8867_s17, %s8863_s2 }
  0xb7   :  { %p8870_p0 = por %p8869_p13, %p8868_p12 }
  0xb9   :  { %p8871_p1 = pnand %p8870_p0, %p8864_p11 }
  0xbb   :  { %8874 = shalt.err (!%p8871_p1)
}
  0xbc   :  { %255 = dma.hbm_to_vmem [thread:$0]  %s11678_s26, 16, %s253_s3, [#allocation30]  }
  0xbd   :  { %s9150_s1 = smov [#allocation2]   ;;  %s11742_s24 = sld [smem:[#allocation69_spill]] }
  0xbe   :  { %s49_s4 = sshll.u32 %s9150_s1, 4  ;;  %s50_s4 = int_to_ptr.vmem [resolvable:$true] %s49_s4 }
  0xc3   :  { %s8875_s15 = scalar_lea.hbm %s11742_s24, 256 }
  0xc4   :  { %p8876_p2 = scmp.ne.s32.totalorder %s11742_s24, %s8875_s15  ;;  %p8879_p3 = scmp.lt.u32.totalorder %s8875_s15, %s11742_s24 }
  0xc6   :  { %p8881_p4 = pnand %p8879_p3, %p8876_p2 }
  0xc8   :  { %8884 = shalt.err (!%p8881_p4)
}
  0xc9   :  { %s8885_s10 = scalar_lea.vmem %s50_s4, 256  ;;  %p8890_p6 = scmp.lt.s32.totalorder %s50_s4, %s50_s4 }
  0xca   :  { %p8886_p5 = scmp.ne.s32.totalorder %s50_s4, %s8885_s10  ;;  %p8891_p7 = scmp.lt.s32.totalorder %s8885_s10, %s8885_s10 }
  0xcc   :  { %p8892_p8 = por %p8891_p7, %p8890_p6 }
  0xce   :  { %p8893_p9 = pnand %p8892_p8, %p8886_p5 }
  0xd0   :  { %8896 = shalt.err (!%p8893_p9)
}
  0xd1   :  { %s9151_s26 = smov 32   ;;  %s9152_s3 = smov 2  }
  0xd2   :  { %55 = dma.hbm_to_vmem [thread:$0]  %s11742_s24, 256, %s50_s4, [#allocation3], %s9151_s26, %s9151_s26, %s9152_s3  }
  0xd3   :  { %s9153_s29 = smov [#allocation7]   ;;  %s9154_s30 = smov [#allocation10]  }
  0xd4   :  { %s90_s19 = sshll.u32 %s9153_s29, 4  ;;  %s109_s9 = sshll.u32 %s9154_s30, 4  ;;  %s91_s19 = int_to_ptr.vmem [resolvable:$true] %s90_s19  ;;  %s9451_s9 = int_to_ptr.vmem [resolvable:$true] %s109_s9 }
  0xd5   :  { %s11743_s23 = sld [smem:[#allocation79_spill]] }
  0xdb   :  { %s8897_s11 = scalar_lea.hbm %s11743_s23, 16 }
  0xdc   :  { %p8898_p10 = scmp.ne.s32.totalorder %s11743_s23, %s8897_s11  ;;  %p8901_p11 = scmp.lt.u32.totalorder %s8897_s11, %s11743_s23 }
  0xde   :  { %p8903_p12 = pnand %p8901_p11, %p8898_p10 }
  0xe0   :  { %8906 = shalt.err (!%p8903_p12)
}
  0xe1   :  { %s8907_s4 = scalar_lea.vmem %s91_s19, 16  ;;  %s8911_s24 = scalar_lea.vmem %s91_s19, 32 }
  0xe2   :  { %p8908_p13 = scmp.ne.s32.totalorder %s91_s19, %s8907_s4  ;;  %p8912_p0 = scmp.lt.s32.totalorder %s91_s19, %s91_s19 }
  0xe3   :  { %p8913_p1 = scmp.lt.s32.totalorder %s8911_s24, %s8907_s4 }
  0xe5   :  { %p8914_p2 = por %p8913_p1, %p8912_p0 }
  0xe7   :  { %p8915_p3 = pnand %p8914_p2, %p8908_p13 }
  0xe9   :  { %8918 = shalt.err (!%p8915_p3)
}
  0xea   :  { %93 = dma.hbm_to_vmem [thread:$0]  %s11743_s23, 16, %s91_s19, [#allocation6]  }
  0xeb   :  { %s11744_s10 = sld [smem:[#allocation81_spill]] }
  0xf1   :  { %s8919_s6 = scalar_lea.hbm %s11744_s10, 256 }
  0xf2   :  { %p8920_p4 = scmp.ne.s32.totalorder %s11744_s10, %s8919_s6  ;;  %p8923_p5 = scmp.lt.u32.totalorder %s8919_s6, %s11744_s10 }
  0xf4   :  { %p8925_p6 = pnand %p8923_p5, %p8920_p4 }
  0xf6   :  { %8928 = shalt.err (!%p8925_p6)
}
  0xf7   :  { %s8929_s17 = scalar_lea.vmem %s9451_s9, 256  ;;  %p8934_p8 = scmp.lt.s32.totalorder %s9451_s9, %s9451_s9 }
  0xf8   :  { %p8930_p7 = scmp.ne.s32.totalorder %s9451_s9, %s8929_s17  ;;  %p8935_p9 = scmp.lt.s32.totalorder %s8929_s17, %s8929_s17 }
  0xfa   :  { %p8936_p10 = por %p8935_p9, %p8934_p8 }
  0xfc   :  { %p8937_p11 = pnand %p8936_p10, %p8930_p7 }
  0xfe   :  { %8940 = shalt.err (!%p8937_p11)
}
  0xff   :  { %115 = dma.hbm_to_vmem [thread:$0]  %s11744_s10, 256, %s9451_s9, [#allocation9], %s9140_s7, %s9140_s7, %s9141_s12  }
 0x100   :  { %s9155_s11 = smov [#allocation13]   ;;  %s9156_s28 = smov [#allocation16]  }
 0x101   :  { %s133_s1 = sshll.u32 %s9155_s11, 4  ;;  %s158_s8 = sshll.u32 %s9156_s28, 4  ;;  %s134_s1 = int_to_ptr.vmem [resolvable:$true] %s133_s1  ;;  %s159_s8 = int_to_ptr.vmem [resolvable:$true] %s158_s8 }
 0x102   :  { %s8941_s24 = scalar_lea.hbm %s11666_s14, 256 }
 0x103   :  { %p8942_p12 = scmp.ne.s32.totalorder %s11666_s14, %s8941_s24  ;;  %p8945_p13 = scmp.lt.u32.totalorder %s8941_s24, %s11666_s14 }
 0x105   :  { %p8947_p0 = pnand %p8945_p13, %p8942_p12 }
 0x107   :  { %8950 = shalt.err (!%p8947_p0)
}
 0x108   :  { %s8951_s9 = scalar_lea.vmem %s134_s1, 256  ;;  %p8956_p2 = scmp.lt.s32.totalorder %s134_s1, %s134_s1 }
 0x109   :  { %p8952_p1 = scmp.ne.s32.totalorder %s134_s1, %s8951_s9  ;;  %p8957_p3 = scmp.lt.s32.totalorder %s8951_s9, %s8951_s9 }
 0x10b   :  { %p8958_p4 = por %p8957_p3, %p8956_p2 }
 0x10d   :  { %p8959_p5 = pnand %p8958_p4, %p8952_p1 }
 0x10f   :  { %8962 = shalt.err (!%p8959_p5)
}
 0x110   :  { %139 = dma.hbm_to_vmem [thread:$0]  %s11666_s14, 256, %s134_s1, [#allocation12], %s9140_s7, %s9140_s7, %s9141_s12  }
 0x111   :  { %s8963_s30 = scalar_lea.hbm %s11668_s16, 16 }
 0x112   :  { %p8964_p6 = scmp.ne.s32.totalorder %s11668_s16, %s8963_s30  ;;  %p8967_p7 = scmp.lt.u32.totalorder %s8963_s30, %s11668_s16 }
 0x114   :  { %p8969_p8 = pnand %p8967_p7, %p8964_p6 }
 0x116   :  { %8972 = shalt.err (!%p8969_p8)
}
 0x117   :  { %s8973_s11 = scalar_lea.vmem %s159_s8, 16  ;;  %s8977_s28 = scalar_lea.vmem %s159_s8, 32 }
 0x118   :  { %p8974_p9 = scmp.ne.s32.totalorder %s159_s8, %s8973_s11  ;;  %p8978_p10 = scmp.lt.s32.totalorder %s159_s8, %s159_s8 }
 0x119   :  { %p8979_p11 = scmp.lt.s32.totalorder %s8977_s28, %s8973_s11 }
 0x11b   :  { %p8980_p12 = por %p8979_p11, %p8978_p10 }
 0x11d   :  { %p8981_p13 = pnand %p8980_p12, %p8974_p9 }
 0x11f   :  { %8984 = shalt.err (!%p8981_p13)
}
 0x120   :  { %161 = dma.hbm_to_vmem [thread:$0]  %s11668_s16, 16, %s159_s8, [#allocation15]  }
 0x121   :  { %s9157_s15 = smov [#allocation19]   ;;  %s9158_s24 = smov [#allocation22]  }
 0x122   :  { %s178_s4 = sshll.u32 %s9157_s15, 4  ;;  %s198_s21 = sshll.u32 %s9158_s24, 4  ;;  %s179_s4 = int_to_ptr.vmem [resolvable:$true] %s178_s4  ;;  %s199_s21 = int_to_ptr.vmem [resolvable:$true] %s198_s21 }
 0x123   :  { %s8985_s27 = scalar_lea.hbm %s11670_s18, 16 }
 0x124   :  { %p8986_p0 = scmp.ne.s32.totalorder %s11670_s18, %s8985_s27  ;;  %p8989_p1 = scmp.lt.u32.totalorder %s8985_s27, %s11670_s18 }
 0x126   :  { %p8991_p2 = pnand %p8989_p1, %p8986_p0 }
 0x128   :  { %8994 = shalt.err (!%p8991_p2)
}
 0x129   :  { %s8995_s16 = scalar_lea.vmem %s179_s4, 16  ;;  %s8999_s8 = scalar_lea.vmem %s179_s4, 32 }
 0x12a   :  { %p8996_p3 = scmp.ne.s32.totalorder %s179_s4, %s8995_s16  ;;  %p9000_p4 = scmp.lt.s32.totalorder %s179_s4, %s179_s4 }
 0x12b   :  { %p9001_p5 = scmp.lt.s32.totalorder %s8999_s8, %s8995_s16 }
 0x12d   :  { %p9002_p6 = por %p9001_p5, %p9000_p4 }
 0x12f   :  { %p9003_p7 = pnand %p9002_p6, %p8996_p3 }
 0x131   :  { %9006 = shalt.err (!%p9003_p7)
}
 0x132   :  { %181 = dma.hbm_to_vmem [thread:$0]  %s11670_s18, 16, %s179_s4, [#allocation18]  }
 0x133   :  { %s9007_s19 = scalar_lea.hbm %s11672_s20, 16 }
 0x134   :  { %p9008_p8 = scmp.ne.s32.totalorder %s11672_s20, %s9007_s19  ;;  %p9011_p9 = scmp.lt.u32.totalorder %s9007_s19, %s11672_s20 }
 0x136   :  { %p9013_p10 = pnand %p9011_p9, %p9008_p8 }
 0x138   :  { %9016 = shalt.err (!%p9013_p10)
}
 0x139   :  { %s9017_s1 = scalar_lea.vmem %s199_s21, 16  ;;  %s9021_s15 = scalar_lea.vmem %s199_s21, 32 }
 0x13a   :  { %p9018_p11 = scmp.ne.s32.totalorder %s199_s21, %s9017_s1  ;;  %p9022_p12 = scmp.lt.s32.totalorder %s199_s21, %s199_s21 }
 0x13b   :  { %p9023_p13 = scmp.lt.s32.totalorder %s9021_s15, %s9017_s1 }
 0x13d   :  { %p9024_p0 = por %p9023_p13, %p9022_p12 }
 0x13f   :  { %p9025_p1 = pnand %p9024_p0, %p9018_p11 }
 0x141   :  { %9028 = shalt.err (!%p9025_p1)
}
 0x142   :  { %201 = dma.hbm_to_vmem [thread:$0]  %s11672_s20, 16, %s199_s21, [#allocation21]  }
 0x143   :  { %s9159_s24 = smov [#allocation25]   ;;  %s9160_s5 = smov [#allocation28]  }
 0x144   :  { %s217_s13 = sshll.u32 %s9159_s24, 4  ;;  %s242_s27 = sshll.u32 %s9160_s5, 4  ;;  %s218_s13 = int_to_ptr.vmem [resolvable:$true] %s217_s13  ;;  %s243_s27 = int_to_ptr.vmem [resolvable:$true] %s242_s27 }
 0x145   :  { %s9029_s6 = scalar_lea.hbm %s11674_s22, 256 }
 0x146   :  { %p9030_p2 = scmp.ne.s32.totalorder %s11674_s22, %s9029_s6  ;;  %p9033_p3 = scmp.lt.u32.totalorder %s9029_s6, %s11674_s22 }
 0x148   :  { %p9035_p4 = pnand %p9033_p3, %p9030_p2 }
 0x14a   :  { %9038 = shalt.err (!%p9035_p4)
}
 0x14b   :  { %s9039_s20 = scalar_lea.vmem %s218_s13, 256  ;;  %p9044_p6 = scmp.lt.s32.totalorder %s218_s13, %s218_s13 }
 0x14c   :  { %p9040_p5 = scmp.ne.s32.totalorder %s218_s13, %s9039_s20  ;;  %p9045_p7 = scmp.lt.s32.totalorder %s9039_s20, %s9039_s20 }
 0x14e   :  { %p9046_p8 = por %p9045_p7, %p9044_p6 }
 0x150   :  { %p9047_p9 = pnand %p9046_p8, %p9040_p5 }
 0x152   :  { %9050 = shalt.err (!%p9047_p9)
}
 0x153   :  { %223 = dma.hbm_to_vmem [thread:$0]  %s11674_s22, 256, %s218_s13, [#allocation24], %s9140_s7, %s9140_s7, %s9141_s12  }
 0x154   :  { %s9051_s19 = scalar_lea.hbm %s11677_s25, 16 }
 0x155   :  { %p9052_p10 = scmp.ne.s32.totalorder %s11677_s25, %s9051_s19  ;;  %p9055_p11 = scmp.lt.u32.totalorder %s9051_s19, %s11677_s25 }
 0x157   :  { %p9057_p12 = pnand %p9055_p11, %p9052_p10 }
 0x159   :  { %9060 = shalt.err (!%p9057_p12)
}
 0x15a   :  { %s9061_s1 = scalar_lea.vmem %s243_s27, 16  ;;  %s9065_s15 = scalar_lea.vmem %s243_s27, 32 }
 0x15b   :  { %p9062_p13 = scmp.ne.s32.totalorder %s243_s27, %s9061_s1  ;;  %p9066_p0 = scmp.lt.s32.totalorder %s243_s27, %s243_s27 }
 0x15c   :  { %p9067_p1 = scmp.lt.s32.totalorder %s9065_s15, %s9061_s1 }
 0x15e   :  { %p9068_p2 = por %p9067_p1, %p9066_p0 }
 0x160   :  { %p9069_p3 = pnand %p9068_p2, %p9062_p13 }
 0x162   :  { %9072 = shalt.err (!%p9069_p3)
}
 0x163   :  { %245 = dma.hbm_to_vmem [thread:$0]  %s11677_s25, 16, %s243_s27, [#allocation27]  }
 0x164   :  { %s9161_s12 = smov [#allocation31]   ;;  %s11745_s13 = sld [smem:[#allocation83_spill]] }
 0x165   :  { %s262_s18 = sshll.u32 %s9161_s12, 4  ;;  %s263_s18 = int_to_ptr.vmem [resolvable:$true] %s262_s18 }
 0x16a   :  { %s9073_s5 = scalar_lea.hbm %s11745_s13, 16 }
 0x16b   :  { %p9074_p4 = scmp.ne.s32.totalorder %s11745_s13, %s9073_s5  ;;  %p9077_p5 = scmp.lt.u32.totalorder %s9073_s5, %s11745_s13 }
 0x16d   :  { %p9079_p6 = pnand %p9077_p5, %p9074_p4 }
 0x16f   :  { %9082 = shalt.err (!%p9079_p6)
}
 0x170   :  { %s9083_s16 = scalar_lea.vmem %s263_s18, 16  ;;  %s9087_s25 = scalar_lea.vmem %s263_s18, 32 }
 0x171   :  { %p9084_p7 = scmp.ne.s32.totalorder %s263_s18, %s9083_s16  ;;  %p9088_p8 = scmp.lt.s32.totalorder %s263_s18, %s263_s18 }
 0x172   :  { %p9089_p9 = scmp.lt.s32.totalorder %s9087_s25, %s9083_s16 }
 0x174   :  { %p9090_p10 = por %p9089_p9, %p9088_p8 }
 0x176   :  { %p9091_p11 = pnand %p9090_p10, %p9084_p7 }
 0x178   :  { %9094 = shalt.err (!%p9091_p11)
}
 0x179   :  { %265 = dma.hbm_to_vmem [thread:$0]  %s11745_s13, 16, %s263_s18, [#allocation30]  }
 0x17a   :  { %9117 = dma.done.wait [#allocation3], 256  }
 0x17b   :  { %9118 = vsyncadd [#allocation3], 4294967040 }
 0x17c   :  { %9119 = dma.done.wait [#allocation6], 272  }
 0x17d   :  { %9120 = vsyncadd [#allocation6], 4294967024 }
 0x17e   :  { %9121 = dma.done.wait [#allocation9], 272  }
 0x17f   :  { %9122 = vsyncadd [#allocation9], 4294967024 }
 0x180   :  { %9123 = dma.done.wait [#allocation12], 512  }
 0x181   :  { %9124 = vsyncadd [#allocation12], 4294966784 }
 0x182   :  { %9125 = dma.done.wait [#allocation15], 272  }
 0x183   :  { %9126 = vsyncadd [#allocation15], 4294967024 }
 0x184   :  { %9127 = dma.done.wait [#allocation18], 32  }
 0x185   :  { %9128 = vsyncadd [#allocation18], 4294967264 }
 0x186   :  { %9129 = dma.done.wait [#allocation21], 32  }
 0x187   :  { %9130 = vsyncadd [#allocation21], 4294967264 }
 0x188   :  { %9131 = dma.done.wait [#allocation24], 272  }
 0x189   :  { %9132 = vsyncadd [#allocation24], 4294967024 }
 0x18a   :  { %9133 = dma.done.wait [#allocation27], 32  }
 0x18b   :  { %9134 = vsyncadd [#allocation27], 4294967264 }
 0x18c   :  { %9135 = dma.done.wait [#allocation30], 32  }
 0x18d   :  { %9136 = vsyncadd [#allocation30], 4294967264  ;;  %v11697_v0 = vmov 0.0   ;;  %vm9163_vm0 = vmmov 0   ;;  %s11746_s21 = sld [smem:[#allocation73_spill]]  ;;  %vm416_vm1 = vcmask 1041409  }
 0x18e   :  { %8144 = vmatprep.subr.bf16.mxu1 %v11697_v0  ;;  %8148 = vmatprep.mubr.msk.bf16.mxu1 %vm9163_vm0, %v11697_v0  ;;  %v9587_v3 = vld [vmem:[#allocation2] sm:$0x3]  ;;  %v9589_v4 = vld [vmem:[#allocation2 + $0x2] sm:$0x3]  ;;  %v9591_v5 = vld [vmem:[#allocation2 + $0x4] sm:$0x3] }
 0x18f   :  { %8160 = vmatprep.subr.bf16.mxu0 %v11697_v0  ;;  %8162 = vmatprep.mubr.msk.bf16.mxu0 %vm9163_vm0, %v11697_v0  ;;  %v9594_v6 = vld [vmem:[#allocation2 + $0x6] sm:$0x3]  ;;  %v9596_v7 = vld [vmem:[#allocation2 + $0x8] sm:$0x3]  ;;  %v9598_v8 = vld [vmem:[#allocation2 + $0xa] sm:$0x3] }
 0x190   :  { %v9600_v9 = vld [vmem:[#allocation2 + $0xc] sm:$0x3]  ;;  %v9602_v10 = vld [vmem:[#allocation2 + $0xe] sm:$0x3]  ;;  %s11747_s23 = sld [smem:[#allocation71_spill]]  ;;  %vm419_vm2 = vcmask 1042434  }
 0x191   :  { %vm422_vm3 = vcmask 1043459   ;;  %vm425_vm4 = vcmask 1044484   ;;  %vm428_vm5 = vcmask 1045509   ;;  %vm431_vm6 = vcmask 1046534   ;;  %s11752_s0 = sld [smem:[#allocation76_spill]]  ;;  %s9164_s16 = smov 104  }
 0x192   :  { %vm434_vm7 = vcmask 1047559   ;;  %vm449_vm8 = vcmask 261120   ;;  %s9165_s25 = smov 120   ;;  %s9166_s27 = smov 96   ;;  %vm1058_vm9 = vcmask 64512   ;;  %vm1294_vm10 = vcmask 1043456  }
 0x193   :  { %v8523_v1 = vld [vmem:[%s11746_s21] sm:$0xff]   ;;  %v8524_v2 = vld [vmem:[%s11746_s21 + $0x8] sm:$0xff]   ;;  %s9167_s8 = smov 112   ;;  %s11755_s30 = sld [smem:[#allocation74_spill]]  ;;  %vm1625_vm11 = vcmask 130048   ;;  %vm1627_vm12 = vcmask 195584  }
 0x194   :  { %8145 = vmatpush3.bf16.msra.mxu1 %v8523_v1  ;;  %v494_v1 = vpack.c.bf16 %v9589_v4, %v9589_v4  ;;  %s11762_s28 = sld [smem:[#allocation77_spill]]  ;;  %s9170_s14 = smov 16   ;;  %vm3957_vm13 = vcmask 523264   ;;  %vm5476_vm14 = vcmask 253952   ;;  %vm5472_vm15 = vcmask 261121  }
 0x195   :  { %8146 = vmatprep.subr.bf16.mxu1 %v11697_v0  ;;  %s9171_s1 = smov 8   ;;  %s9172_s15 = smov 24  }
 0x196   :  { %v348_v11 = vld [vmem:[%s11747_s23] sm:$0x3]  ;;  %v349_v12 = vld [vmem:[%s11747_s23 + $0x2] sm:$0x3]  ;;  %v350_v13 = vld [vmem:[%s11747_s23 + $0x4] sm:$0x3] }
 0x197   :  { %v351_v14 = vld [vmem:[%s11747_s23 + $0x6] sm:$0x3]  ;;  %v372_v15 = vadd.f32 %v348_v11, %v9587_v3  ;;  %v352_v16 = vld [vmem:[%s11747_s23 + $0x8] sm:$0x3]  ;;  %v353_v17 = vld [vmem:[%s11747_s23 + $0xa] sm:$0x3]  ;;  %v373_v19 = vadd.f32 %v349_v12, %v9589_v4  ;;  %v374_v20 = vadd.f32 %v350_v13, %v9591_v5  ;;  %v493_v11 = vpack.c.bf16 %v9587_v3, %v9587_v3 }
 0x198   :  { %8147 = vmatpush3.bf16.msra.mxu1 %v8524_v2  ;;  %v354_v18 = vld [vmem:[%s11747_s23 + $0xc] sm:$0x3]  ;;  %v375_v21 = vadd.f32 %v351_v14, %v9594_v6  ;;  %v355_v22 = vld [vmem:[%s11747_s23 + $0xe] sm:$0x3]  ;;  %v376_v23 = vadd.f32 %v352_v16, %v9596_v7  ;;  %v377_v24 = vadd.f32 %v353_v17, %v9598_v8  ;;  %v7862_v58 = vld [vmem:[%s11752_s0] ss:$0 sm:$0xff]  ;;  %v495_v2 = vpack.c.bf16 %v9591_v5, %v9591_v5 }
 0x199   :  { %v378_v25 = vadd.f32 %v354_v18, %v9600_v9  ;;  %v380_v26 = vpack.c.bf16 %v372_v15, %v372_v15  ;;  %8152 = vmatprep.subr.bf16.mxu1 %v11697_v0  ;;  %v379_v27 = vadd.f32 %v355_v22, %v9602_v10  ;;  %v381_v28 = vpack.c.bf16 %v373_v19, %v373_v19  ;;  %v8525_v4 = vld [vmem:[%s11755_s30] sm:$0xff]   ;;  %s11763_s12 = sld [smem:[#allocation78_spill]]  ;;  %s11765_s13 = sld [smem:[#allocation72_spill]] }
 0x19a   :  { %v382_v29 = vpack.c.bf16 %v374_v20, %v374_v20  ;;  %v383_v30 = vpack.c.bf16 %v375_v21, %v375_v21  ;;  %v384_v31 = vpack.c.bf16 %v376_v23, %v376_v23  ;;  %v385_v32 = vpack.c.bf16 %v377_v24, %v377_v24  ;;  %s11764_s24 = sld [smem:[#allocation70_spill]]  ;;  %s11784_s6 = sld [smem:[#allocation82_spill]] }
 0x19b   :  { %v386_v33 = vpack.c.bf16 %v378_v25, %v378_v25  ;;  %v9637_v34 = vunpack.c.l.b16 %v380_v26  ;;  %v387_v35 = vpack.c.bf16 %v379_v27, %v379_v27  ;;  %v9639_v36 = vunpack.c.l.b16 %v381_v28  ;;  %v8526_v25 = vld [vmem:[%s11755_s30 + $0x8] sm:$0xff]  }
 0x19c   :  { %v9641_v37 = vunpack.c.l.b16 %v382_v29  ;;  %v9643_v38 = vunpack.c.l.b16 %v383_v30  ;;  %v9645_v39 = vunpack.c.l.b16 %v384_v31  ;;  %v9647_v40 = vunpack.c.l.b16 %v385_v32 }
 0x19d   :  { %11748 = vst [vmem:[#allocation44_spill] sm:$0xff] %v9639_v36  ;;  %v9649_v41 = vunpack.c.l.b16 %v386_v33  ;;  %v9651_v42 = vunpack.c.l.b16 %v387_v35  ;;  %v415_v43 = vrot.slane %v9639_v36, 7  ;;  %v496_v12 = vpack.c.bf16 %v9594_v6, %v9594_v6 }
 0x19e   :  { %11749 = vst [vmem:[#allocation45_spill] sm:$0xff] %v9647_v40  ;;  %v418_v44 = vrot.slane %v9641_v37, 6  ;;  %v421_v45 = vrot.slane %v9643_v38, 5  ;;  %v424_v46 = vrot.slane %v9645_v39, 4  ;;  %v427_v48 = vrot.slane %v9647_v40, 3 }
 0x19f   :  { %11750 = vst [vmem:[#allocation46_spill] sm:$0xff] %v9649_v41  ;;  %11751 = vst [vmem:[#allocation47_spill] sm:$0xff] %v9651_v42  ;;  %v417_v47 = vsel %vm416_vm1, %v415_v43, %v9637_v34  ;;  %v430_v50 = vrot.slane %v9649_v41, 2  ;;  %v433_v51 = vrot.slane %v9651_v42, 1  ;;  %v9686_v13 = vunpack.c.l.b16 %v494_v1 }
 0x1a0   :  { %v420_v49 = vsel %vm419_vm2, %v418_v44, %v417_v47  ;;  %v497_v14 = vpack.c.bf16 %v9596_v7, %v9596_v7  ;;  %v9690_v15 = vunpack.c.l.b16 %v495_v2  ;;  %v498_v5 = vpack.c.bf16 %v9598_v8, %v9598_v8 }
 0x1a1   :  { %v423_v52 = vsel %vm422_vm3, %v421_v45, %v420_v49  ;;  %11753 = vst [vmem:[#allocation48_spill] sm:$0xff] %v9686_v13  ;;  %v9697_v16 = vunpack.c.l.b16 %v493_v11  ;;  %v9699_v3 = vunpack.c.l.b16 %v496_v12  ;;  %v528_v6 = vrot.slane %v9686_v13, 7 }
 0x1a2   :  { %v426_v53 = vsel %vm425_vm4, %v424_v46, %v423_v52  ;;  %11754 = vst [vmem:[#allocation49_spill] sm:$0xff] %v9690_v15  ;;  %v499_v18 = vpack.c.bf16 %v9600_v9, %v9600_v9  ;;  %v9704_v7 = vunpack.c.l.b16 %v497_v14  ;;  %v530_v19 = vrot.slane %v9690_v15, 6 }
 0x1a3   :  { %v429_v54 = vsel %vm428_vm5, %v427_v48, %v426_v53  ;;  %11756 = vst [vmem:[#allocation50_spill] sm:$0xff] %v9697_v16  ;;  %11757 = vst [vmem:[#allocation51_spill] sm:$0xff] %v9699_v3  ;;  %v500_v8 = vpack.c.bf16 %v9602_v10, %v9602_v10  ;;  %v9710_v20 = vunpack.c.l.b16 %v498_v5  ;;  %v529_v21 = vsel %vm416_vm1, %v528_v6, %v9697_v16 }
 0x1a4   :  { %v432_v55 = vsel %vm431_vm6, %v430_v50, %v429_v54  ;;  %11758 = vst [vmem:[#allocation52_spill] sm:$0xff] %v9704_v7  ;;  %v532_v22 = vrot.slane %v9699_v3, 5  ;;  %v9716_v9 = vunpack.c.l.b16 %v499_v18  ;;  %v531_v23 = vsel %vm419_vm2, %v530_v19, %v529_v21 }
 0x1a5   :  { %v435_v56 = vsel %vm434_vm7, %v433_v51, %v432_v55  ;;  %11759 = vst [vmem:[#allocation53_spill] sm:$0xff] %v9710_v20  ;;  %v534_v24 = vrot.slane %v9704_v7, 4  ;;  %v9723_v10 = vunpack.c.l.b16 %v500_v8  ;;  %v536_v27 = vrot.slane %v9710_v20, 3 }
 0x1a6   :  { %v436_v57 = vpack.c.b16 %v435_v56, %v435_v56  ;;  %11760 = vst [vmem:[#allocation54_spill] sm:$0xff] %v9716_v9  ;;  %v533_v26 = vsel %vm422_vm3, %v532_v22, %v531_v23  ;;  %v538_v31 = vrot.slane %v9716_v9, 2  ;;  %v9168_v46 = vmov 1983009808  }
 0x1a7   :  { %11761 = vst [vmem:[#allocation55_spill] sm:$0xff] %v9723_v10  ;;  %v535_v30 = vsel %vm425_vm4, %v534_v24, %v533_v26  ;;  %v540_v33 = vrot.slane %v9723_v10, 1  ;;  %v612_v47 = vunpack.c.l.s4 %v9168_v46  ;;  %v614_v48 = vlaneseq }
 0x1a8   :  { %8149 = vmatmul.mubr.msk.bf16.vlgmr.msra.gmra.mrb[0].mxu1 %vm449_vm8, %v436_v57  ;;  %v537_v32 = vsel %vm428_vm5, %v536_v27, %v535_v30  ;;  %v9169_v49 = vmov 1934713408  }
 0x1a9   :  { %8156 = vmatprep.mubr.msk.bf16.mxu1 %vm9163_vm0, %v11697_v0  ;;  %8153 = vmatpush3.bf16.msra.mxu1 %v8525_v4  ;;  %v539_v35 = vsel %vm431_vm6, %v538_v31, %v537_v32  ;;  %v644_v50 = vunpack.c.l.s4 %v9169_v49  ;;  %v613_v51 = vunpack.c.0.s8 %v612_v47  ;;  %v615_v52 = vshrl.u32 %v614_v48, 7 }
 0x1aa   :  { %8154 = vmatprep.subr.bf16.mxu1 %v11697_v0  ;;  %v541_v44 = vsel %vm434_vm7, %v540_v33, %v539_v35 }
 0x1ab   :  { %v542_v45 = vpack.c.b16 %v541_v44, %v541_v44  ;;  %v645_v55 = vunpack.c.0.s8 %v644_v50  ;;  %v9742_v56 = vsub.s32 %v613_v51, %v615_v52 }
 0x1ad   :  { %8155 = vmatpush3.bf16.msra.mxu1 %v8526_v25 }
 0x1ae   :  { %8166 = vmatprep.subr.bf16.mxu1 %v11697_v0 }
 0x1b0   :  { %8157 = vmatmul.mubr.msk.bf16.vlgmr.msra.gmra.mrb[4].mxu1 %vm449_vm8, %v542_v45 }
 0x1b1   :  { %8168 = vmatprep.mubr.msk.bf16.mxu1 %vm9163_vm0, %v11697_v0 }
 0x27b   :  { %v487_v59 = vpop.f32.mrb[0].mxu1 }
 0x27c   :  { %v488_v60 = vadd.f32 %v7862_v58, %v487_v59  ;;  %v8150_v61 = vpop.f32.mrb[1].mxu1 }
 0x27d   :  { %v490_v62 = vpop.f32.mrb[2].mxu1 }
 0x27e   :  { %754 = vrot.lane.b32.xlu1 %v488_v60, %s9164_s16  ;;  %750 = vrot.lane.b32.xlu0 %v488_v60, %s9165_s25  ;;  %v8151_v63 = vpop.f32.mrb[3].mxu1  ;;  %v598_v43 = vmul.f32 0.35355338, %v488_v60 }
 0x27f   :  { %v9744_v63 = vsub.s32 %v645_v55, %v615_v52 }
 0x282   :  { %756 = vrot.lane.b32.xlu1 %v488_v60, %s9166_s27  ;;  %752 = vrot.lane.b32.xlu0 %v488_v60, %s9167_s8 }
 0x2f0   :  { %v751_v17 = vpop.permute.xlu0 %750  ;;  %v755_v28 = vpop.permute.xlu1 %754 }
 0x2f1   :  { %758 = vrot.lane.b32.xlu0 %v751_v17, %s9166_s27 }
 0x2f4   :  { %v753_v29 = vpop.permute.xlu0 %752  ;;  %v757_v53 = vpop.permute.xlu1 %756 }
 0x2f5   :  { %762 = vrot.lane.b32.xlu0 %v755_v28, %s9166_s27  ;;  %760 = vrot.lane.b32.xlu1 %v753_v29, %s9166_s27 }
 0x2f9   :  { %603 = vrot.lane.b32.xlu0 %v598_v43, %s9167_s8  ;;  %600 = vrot.lane.b32.xlu1 %v598_v43, %s9165_s25 }
 0x2fd   :  { %606 = vrot.lane.b32.xlu1 %v598_v43, %s9164_s16 }
 0x363   :  { %v759_v54 = vpop.permute.xlu0 %758 }
 0x367   :  { %v761_v57 = vpop.permute.xlu1 %760  ;;  %v763_v58 = vpop.permute.xlu0 %762 }
 0x368   :  { %v768_v59 = vcombine.low %v757_v53, %v761_v57  ;;  %v769_v60 = vcombine.high %v757_v53, %v761_v57  ;;  %v784_v61 = vcombine.low %v759_v54, %v763_v58  ;;  %v785_v62 = vcombine.high %v759_v54, %v763_v58 }
 0x36a   :  { %v776_v1 = vrot.slane %v768_v59, %v9742_v56  ;;  %v783_v2 = vrot.slane %v769_v60, %v9742_v56  ;;  %v792_v11 = vrot.slane %v784_v61, %v9742_v56  ;;  %v799_v12 = vrot.slane %v785_v62, %v9742_v56 }
 0x36b   :  { %v604_v14 = vpop.permute.xlu0 %603  ;;  %v601_v4 = vpop.permute.xlu1 %600 }
 0x36c   :  { %v800_v5 = vcombine.low %v776_v1, %v792_v11  ;;  %v801_v6 = vcombine.high %v776_v1, %v792_v11  ;;  %v816_v17 = vcombine.low %v783_v2, %v799_v12  ;;  %v817_v18 = vcombine.high %v783_v2, %v799_v12 }
 0x36d   :  { %v609_v19 = vcombine.low %v598_v43, %v604_v14  ;;  %v610_v8 = vcombine.high %v598_v43, %v604_v14 }
 0x36e   :  { %v808_v21 = vrot.slane %v800_v5, %v9744_v63  ;;  %v815_v22 = vrot.slane %v801_v6, %v9744_v63  ;;  %v824_v23 = vrot.slane %v816_v17, %v9744_v63  ;;  %v831_v24 = vrot.slane %v817_v18, %v9744_v63 }
 0x36f   :  { %v607_v25 = vpop.permute.xlu1 %606  ;;  %v617_v30 = vrot.slane %v609_v19, %v9742_v56  ;;  %v624_v31 = vrot.slane %v610_v8, %v9742_v56 }
 0x370   :  { %v625_v26 = vcombine.low %v601_v4, %v607_v25  ;;  %v626_v27 = vcombine.high %v601_v4, %v607_v25  ;;  %v836_v28 = vcombine.low %v808_v21, %v815_v22  ;;  %v7872_v29 = vcombine.high %v808_v21, %v815_v22 }
 0x371   :  { %v852_v32 = vcombine.low %v824_v23, %v831_v24  ;;  %v7873_v33 = vcombine.high %v824_v23, %v831_v24 }
 0x372   :  { %v633_v35 = vrot.slane %v625_v26, %v9742_v56  ;;  %v640_v43 = vrot.slane %v626_v27, %v9742_v56  ;;  %v843_v44 = vrot.slane %v836_v28, %v9742_v56  ;;  %v851_v45 = vrot.slane %v7872_v29, %v9742_v56 }
 0x373   :  { %v859_v46 = vrot.slane %v852_v32, %v9742_v56  ;;  %v867_v47 = vrot.slane %v7873_v33, %v9742_v56 }
 0x374   :  { %v641_v48 = vcombine.low %v617_v30, %v633_v35  ;;  %v642_v49 = vcombine.high %v617_v30, %v633_v35  ;;  %v657_v50 = vcombine.low %v624_v31, %v640_v43  ;;  %v658_v51 = vcombine.high %v624_v31, %v640_v43 }
 0x375   :  { %v868_v52 = vcombine.low %v843_v44, %v851_v45  ;;  %v884_v53 = vcombine.low %v859_v46, %v867_v47  ;;  %v869_v54 = vcombine.high %v843_v44, %v851_v45  ;;  %v885_v55 = vcombine.high %v859_v46, %v867_v47 }
 0x376   :  { %v649_v57 = vrot.slane %v641_v48, %v9744_v63  ;;  %v656_v58 = vrot.slane %v642_v49, %v9744_v63  ;;  %v665_v59 = vrot.slane %v657_v50, %v9744_v63  ;;  %v672_v60 = vrot.slane %v658_v51, %v9744_v63 }
 0x377   :  { %v876_v61 = vrot.slane %v868_v52, %v9744_v63  ;;  %v892_v62 = vrot.slane %v884_v53, %v9744_v63  ;;  %v883_v5 = vrot.slane %v869_v54, %v9744_v63  ;;  %v899_v6 = vrot.slane %v885_v55, %v9744_v63  ;;  %v592_v55 = vpop.f32.mrb[4].mxu1 }
 0x378   :  { %v677_v1 = vcombine.low %v649_v57, %v656_v58  ;;  %v7870_v2 = vcombine.high %v649_v57, %v656_v58  ;;  %v693_v11 = vcombine.low %v665_v59, %v672_v60  ;;  %v7871_v12 = vcombine.high %v665_v59, %v672_v60  ;;  %v8158_v57 = vpop.f32.mrb[5].mxu1 }
 0x379   :  { %v900_v14 = vcombine.low %v876_v61, %v892_v62  ;;  %v901_v4 = vcombine.high %v876_v61, %v892_v62  ;;  %v902_v27 = vcombine.low %v883_v5, %v899_v6  ;;  %v903_v28 = vcombine.high %v883_v5, %v899_v6  ;;  %v595_v58 = vpop.f32.mrb[6].mxu1 }
 0x37a   :  { %v684_v17 = vrot.slane %v677_v1, %v9742_v56  ;;  %v692_v18 = vrot.slane %v7870_v2, %v9742_v56  ;;  %v700_v19 = vrot.slane %v693_v11, %v9742_v56  ;;  %v708_v8 = vrot.slane %v7871_v12, %v9742_v56  ;;  %v8159_v59 = vpop.f32.mrb[7].mxu1 }
 0x37b   :  { %v904_v21 = vpack.c.bf16 %v900_v14, %v900_v14  ;;  %v905_v22 = vpack.c.bf16 %v901_v4, %v901_v4  ;;  %v906_v43 = vpack.c.bf16 %v902_v27, %v902_v27  ;;  %v907_v44 = vpack.c.bf16 %v903_v28, %v903_v28 }
 0x37c   :  { %v709_v23 = vcombine.low %v684_v17, %v692_v18  ;;  %v725_v24 = vcombine.low %v700_v19, %v708_v8  ;;  %v710_v31 = vcombine.high %v684_v17, %v692_v18  ;;  %v726_v32 = vcombine.high %v700_v19, %v708_v8 }
 0x37d   :  { %v1063_v25 = vsel %vm1058_vm9, %v904_v21, 0  ;;  %v1109_v26 = vsel %vm1058_vm9, %v905_v22, 0  ;;  %v1155_v49 = vsel %vm1058_vm9, %v906_v43, 0  ;;  %v1201_v50 = vsel %vm1058_vm9, %v907_v44, 0 }
 0x37e   :  { %8161 = vmatpush3.bf16.xpose.msra.mxu0 %v1063_v25  ;;  %8167 = vmatpush3.bf16.xpose.msra.mxu1 %v1109_v26  ;;  %v717_v29 = vrot.slane %v709_v23, %v9744_v63  ;;  %v733_v30 = vrot.slane %v725_v24, %v9744_v63  ;;  %v724_v47 = vrot.slane %v710_v31, %v9744_v63  ;;  %v7866_v26 = vld [vmem:[%s11762_s28] ss:$0 sm:$0xff] }
 0x37f   :  { %8172 = vmatprep.subr.bf16.mxu0 %v11697_v0  ;;  %8178 = vmatprep.subr.bf16.mxu1 %v11697_v0  ;;  %v740_v48 = vrot.slane %v726_v32, %v9744_v63  ;;  %v593_v27 = vadd.f32 %v7866_v26, %v592_v55 }
 0x380   :  { %v741_v33 = vcombine.low %v717_v29, %v733_v30  ;;  %v742_v35 = vcombine.high %v717_v29, %v733_v30 }
 0x381   :  { %v743_v51 = vcombine.low %v724_v47, %v740_v48  ;;  %v744_v52 = vcombine.high %v724_v47, %v740_v48 }
 0x382   :  { %v745_v45 = vpack.c.bf16 %v741_v33, %v741_v33  ;;  %v746_v46 = vpack.c.bf16 %v742_v35, %v742_v35 }
 0x383   :  { %v747_v53 = vpack.c.bf16 %v743_v51, %v743_v51  ;;  %v748_v54 = vpack.c.bf16 %v744_v52, %v744_v52 }
 0x385   :  { %8163 = vmatmul.mubr.msk.bf16.vlgmr.msra.gmra.mrb[0].mxu0 %vm1058_vm9, %v745_v45  ;;  %8169 = vmatmul.mubr.msk.bf16.vlgmr.msra.gmra.mrb[8].mxu1 %vm1058_vm9, %v746_v46 }
 0x386   :  { %8173 = vmatpush3.bf16.xpose.msra.mxu0 %v1155_v49  ;;  %8179 = vmatpush3.bf16.xpose.msra.mxu1 %v1201_v50 }
 0x387   :  { %8174 = vmatprep.mubr.msk.bf16.mxu0 %vm9163_vm0, %v11697_v0  ;;  %8180 = vmatprep.mubr.msk.bf16.mxu1 %vm9163_vm0, %v11697_v0 }
 0x388   :  { %8184 = vmatprep.subr.bf16.mxu0 %v11697_v0  ;;  %8190 = vmatprep.subr.bf16.mxu1 %v11697_v0 }
 0x38d   :  { %8175 = vmatmul.mubr.msk.bf16.vlgmr.msra.gmra.mrb[4].mxu0 %vm1058_vm9, %v747_v53  ;;  %8181 = vmatmul.mubr.msk.bf16.vlgmr.msra.gmra.mrb[12].mxu1 %vm1058_vm9, %v748_v54 }
 0x38e   :  { %8186 = vmatprep.mubr.msk.bf16.mxu0 %vm9163_vm0, %v11697_v0  ;;  %8192 = vmatprep.mubr.msk.bf16.mxu1 %vm9163_vm0, %v11697_v0 }
 0x458   :  { %v1099_v60 = vpop.f32.mrb[0].mxu0  ;;  %v1145_v61 = vpop.f32.mrb[8].mxu1 }
 0x459   :  { %v8164_v62 = vpop.f32.mrb[1].mxu0  ;;  %v8170_v1 = vpop.f32.mrb[9].mxu1  ;;  %v1243_v2 = vsel %vm1058_vm9, %v1099_v60, -inf  ;;  %v1246_v11 = vsel %vm1058_vm9, %v1145_v61, -inf }
 0x45a   :  { %1244 = vmax.xlane.f32.xlu0 %v1243_v2  ;;  %v1102_v12 = vpop.f32.mrb[2].mxu0  ;;  %1247 = vmax.xlane.f32.xlu1 %v1246_v11  ;;  %v1148_v14 = vpop.f32.mrb[10].mxu1 }
 0x45b   :  { %v8165_v4 = vpop.f32.mrb[3].mxu0  ;;  %v8171_v5 = vpop.f32.mrb[11].mxu1 }
 0x460   :  { %v1191_v6 = vpop.f32.mrb[4].mxu0  ;;  %v1237_v17 = vpop.f32.mrb[12].mxu1 }
 0x461   :  { %v8176_v18 = vpop.f32.mrb[5].mxu0  ;;  %v8182_v19 = vpop.f32.mrb[13].mxu1  ;;  %v1249_v8 = vsel %vm1058_vm9, %v1191_v6, -inf  ;;  %v1252_v25 = vsel %vm1058_vm9, %v1237_v17, -inf }
 0x462   :  { %1250 = vmax.xlane.f32.xlu0 %v1249_v8  ;;  %v1194_v21 = vpop.f32.mrb[6].mxu0  ;;  %v1240_v22 = vpop.f32.mrb[14].mxu1 }
 0x463   :  { %v8177_v23 = vpop.f32.mrb[7].mxu0  ;;  %v8183_v24 = vpop.f32.mrb[15].mxu1 }
 0x466   :  { %1253 = vmax.xlane.f32.xlu0 %v1252_v25 }
 0x46b   :  { %909 = vrot.lane.b32.xlu1 %v593_v27, %s9165_s25 }
 0x4e7   :  { %v1245_v28 = vpop.xlane.xlu0 %1244  ;;  %v1248_v29 = vpop.xlane.xlu1 %1247 }
 0x4e8   :  { %v1255_v30 = vsub.f32 %v1099_v60, %v1245_v28  ;;  %v1256_v31 = vsub.f32 %v1145_v61, %v1248_v29 }
 0x4ea   :  { %v1259_v32 = vmul.f32 1.442695, %v1255_v30  ;;  %v1261_v33 = vmul.f32 1.442695, %v1256_v31 }
 0x4eb   :  { %v910_v57 = vpop.permute.xlu1 %909 }
 0x4ec   :  { %8563 = vpow2.f32 %v1259_v32 }
 0x4ed   :  { %8565 = vpow2.f32 %v1261_v33 }
 0x4ef   :  { %v1251_v46 = vpop.xlane.xlu0 %1250 }
 0x4f0   :  { %v1257_v48 = vsub.f32 %v1191_v6, %v1251_v46 }
 0x4f2   :  { %v1263_v50 = vmul.f32 1.442695, %v1257_v48 }
 0x4f3   :  { %v1254_v47 = vpop.xlane.xlu0 %1253 }
 0x4f4   :  { %v1258_v49 = vsub.f32 %v1237_v17, %v1254_v47  ;;  %8567 = vpow2.f32 %v1263_v50 }
 0x4f6   :  { %v9806_v35 = vpop.eup %8563  ;;  %v1265_v51 = vmul.f32 1.442695, %v1258_v49 }
 0x4f7   :  { %v9808_v43 = vpop.eup %8565  ;;  %v1267_v44 = vsel %vm1058_vm9, %v9806_v35, 0.0 }
 0x4f8   :  { %1268 = vadd.xlane.f32.xlu1 %v1267_v44  ;;  %v1270_v45 = vsel %vm1058_vm9, %v9808_v43, 0.0  ;;  %8569 = vpow2.f32 %v1265_v51 }
 0x4f9   :  { %1271 = vadd.xlane.f32.xlu0 %v1270_v45 }
 0x4fe   :  { %v9816_v52 = vpop.eup %8567 }
 0x4ff   :  { %v1273_v54 = vsel %vm1058_vm9, %v9816_v52, 0.0 }
 0x502   :  { %v9818_v53 = vpop.eup %8569 }
 0x503   :  { %v1276_v55 = vsel %vm1058_vm9, %v9818_v53, 0.0 }
 0x509   :  { %915 = vrot.lane.b32.xlu1 %v593_v27, %s9164_s16 }
 0x50f   :  { %912 = vrot.lane.b32.xlu0 %v593_v27, %s9167_s8 }
 0x52d   :  { %1274 = vadd.xlane.f32.xlu1 %v1273_v54 }
 0x52e   :  { %1277 = vadd.xlane.f32.xlu0 %v1276_v55 }
 0x585   :  { %v1269_v58 = vpop.xlane.xlu1 %1268 }
 0x586   :  { %v1272_v59 = vpop.xlane.xlu0 %1271  ;;  %8571 = vrcp.f32 %v1269_v58 }
 0x587   :  { %8573 = vrcp.f32 %v1272_v59 }
 0x589   :  { %v916_v60 = vpop.permute.xlu1 %915 }
 0x58a   :  { %v934_v61 = vcombine.low %v910_v57, %v916_v60  ;;  %v935_v62 = vcombine.high %v910_v57, %v916_v60  ;;  %v913_v1 = vpop.permute.xlu0 %912 }
 0x58b   :  { %v918_v2 = vcombine.low %v593_v27, %v913_v1  ;;  %v919_v11 = vcombine.high %v593_v27, %v913_v1 }
 0x58c   :  { %v942_v12 = vrot.slane %v934_v61, %v9742_v56  ;;  %v949_v14 = vrot.slane %v935_v62, %v9742_v56 }
 0x58d   :  { %v926_v4 = vrot.slane %v918_v2, %v9742_v56  ;;  %v933_v5 = vrot.slane %v919_v11, %v9742_v56 }
 0x58f   :  { %v950_v6 = vcombine.low %v926_v4, %v942_v12  ;;  %v951_v17 = vcombine.high %v926_v4, %v942_v12  ;;  %v966_v18 = vcombine.low %v933_v5, %v949_v14  ;;  %v967_v19 = vcombine.high %v933_v5, %v949_v14 }
 0x590   :  { %v8572_v46 = vpop.eup %8571 }
 0x591   :  { %v958_v8 = vrot.slane %v950_v6, %v9744_v63  ;;  %v965_v21 = vrot.slane %v951_v17, %v9744_v63  ;;  %v974_v22 = vrot.slane %v966_v18, %v9744_v63  ;;  %v981_v23 = vrot.slane %v967_v19, %v9744_v63  ;;  %v8574_v51 = vpop.eup %8573 }
 0x592   :  { %v1283_v61 = vmul.f32 %v8572_v46, %v9806_v35  ;;  %v1284_v62 = vmul.f32 %v8574_v51, %v9808_v43 }
 0x593   :  { %v986_v24 = vcombine.low %v958_v8, %v965_v21  ;;  %v7874_v25 = vcombine.high %v958_v8, %v965_v21  ;;  %v1002_v26 = vcombine.low %v974_v22, %v981_v23  ;;  %v7875_v27 = vcombine.high %v974_v22, %v981_v23 }
 0x594   :  { %v1287_v14 = vpack.c.bf16 %v1283_v61, %v1283_v61  ;;  %v1288_v4 = vpack.c.bf16 %v1284_v62, %v1284_v62 }
 0x595   :  { %v993_v28 = vrot.slane %v986_v24, %v9742_v56  ;;  %v1001_v29 = vrot.slane %v7874_v25, %v9742_v56  ;;  %v1009_v30 = vrot.slane %v1002_v26, %v9742_v56  ;;  %v1017_v31 = vrot.slane %v7875_v27, %v9742_v56 }
 0x597   :  { %v1018_v32 = vcombine.low %v993_v28, %v1001_v29  ;;  %v1034_v33 = vcombine.low %v1009_v30, %v1017_v31  ;;  %v1019_v44 = vcombine.high %v993_v28, %v1001_v29  ;;  %v1035_v45 = vcombine.high %v1009_v30, %v1017_v31 }
 0x599   :  { %v1026_v47 = vrot.slane %v1018_v32, %v9744_v63  ;;  %v1042_v48 = vrot.slane %v1034_v33, %v9744_v63  ;;  %v1033_v49 = vrot.slane %v1019_v44, %v9744_v63  ;;  %v1049_v50 = vrot.slane %v1035_v45, %v9744_v63 }
 0x59b   :  { %v1050_v54 = vcombine.low %v1026_v47, %v1042_v48  ;;  %v1051_v55 = vcombine.high %v1026_v47, %v1042_v48  ;;  %v1052_v57 = vcombine.low %v1033_v49, %v1049_v50  ;;  %v1053_v58 = vcombine.high %v1033_v49, %v1049_v50 }
 0x59d   :  { %v1054_v59 = vpack.c.bf16 %v1050_v54, %v1050_v54  ;;  %v1055_v60 = vpack.c.bf16 %v1051_v55, %v1051_v55  ;;  %v1056_v11 = vpack.c.bf16 %v1052_v57, %v1052_v57  ;;  %v1057_v12 = vpack.c.bf16 %v1053_v58, %v1053_v58  ;;  %v8527_v58 = vld [vmem:[#allocation5] sm:$0xff]  }
 0x59f   :  { %v1296_v1 = vsel %vm1294_vm10, %v1054_v59, 0  ;;  %v1342_v2 = vsel %vm1294_vm10, %v1055_v60, 0  ;;  %v1388_v35 = vsel %vm1294_vm10, %v1056_v11, 0  ;;  %v1434_v43 = vsel %vm1294_vm10, %v1057_v12, 0 }
 0x5a0   :  { %8185 = vmatpush3.bf16.msra.mxu0 %v1296_v1  ;;  %8191 = vmatpush3.bf16.msra.mxu1 %v1342_v2 }
 0x5a1   :  { %8196 = vmatprep.subr.bf16.mxu0 %v11697_v0  ;;  %8202 = vmatprep.subr.bf16.mxu1 %v11697_v0 }
 0x5a3   :  { %8187 = vmatmul.mubr.msk.bf16.vlgmr.msra.gmra.mrb[8].mxu0 %vm1058_vm9, %v1287_v14  ;;  %8193 = vmatmul.mubr.msk.bf16.vlgmr.msra.gmra.mrb[16].mxu1 %vm1058_vm9, %v1288_v4  ;;  %v8528_v14 = vld [vmem:[#allocation5 + $0x8] sm:$0xff]  }
 0x5a4   :  { %8197 = vmatpush3.bf16.msra.mxu0 %v1388_v35  ;;  %8203 = vmatpush3.bf16.msra.mxu1 %v1434_v43 }
 0x5a5   :  { %8198 = vmatprep.mubr.msk.bf16.mxu0 %vm9163_vm0, %v11697_v0  ;;  %8204 = vmatprep.mubr.msk.bf16.mxu1 %vm9163_vm0, %v11697_v0 }
 0x5a6   :  { %8208 = vmatprep.subr.bf16.mxu0 %v11697_v0  ;;  %8216 = vmatprep.subr.bf16.mxu1 %v11697_v0 }
 0x5ba   :  { %v1275_v5 = vpop.xlane.xlu1 %1274 }
 0x5bb   :  { %8575 = vrcp.f32 %v1275_v5  ;;  %v1278_v6 = vpop.xlane.xlu0 %1277 }
 0x5bc   :  { %8577 = vrcp.f32 %v1278_v6 }
 0x5c5   :  { %v8576_v17 = vpop.eup %8575 }
 0x5c6   :  { %v8578_v18 = vpop.eup %8577  ;;  %v1285_v19 = vmul.f32 %v8576_v17, %v9816_v52 }
 0x5c7   :  { %v1286_v8 = vmul.f32 %v8578_v18, %v9818_v53 }
 0x5c8   :  { %v1289_v21 = vpack.c.bf16 %v1285_v19, %v1285_v19 }
 0x5c9   :  { %v1290_v22 = vpack.c.bf16 %v1286_v8, %v1286_v8 }
 0x5ca   :  { %8199 = vmatmul.mubr.msk.bf16.vlgmr.msra.gmra.mrb[12].mxu0 %vm1058_vm9, %v1289_v21 }
 0x5cb   :  { %8205 = vmatmul.mubr.msk.bf16.vlgmr.msra.gmra.mrb[20].mxu1 %vm1058_vm9, %v1290_v22  ;;  %8212 = vmatprep.mubr.msk.bf16.mxu0 %vm9163_vm0, %v11697_v0 }
 0x5cc   :  { %8220 = vmatprep.mubr.msk.bf16.mxu1 %vm9163_vm0, %v11697_v0  ;;  %8209 = vmatpush3.bf16.msra.mxu0 %v8527_v58 }
 0x5cd   :  { %8210 = vmatprep.subr.bf16.mxu0 %v11697_v0 }
 0x5d0   :  { %8211 = vmatpush3.bf16.msra.mxu0 %v8528_v14  ;;  %v8647_v14 = vld [vmem:[#allocation2 + $0x6] sm:$0x3] }
 0x5d1   :  { %8224 = vmatprep.subr.bf16.mxu0 %v11697_v0 }
 0x676   :  { %v1332_v23 = vpop.f32.mrb[8].mxu0  ;;  %v1378_v24 = vpop.f32.mrb[16].mxu1 }
 0x677   :  { %v8188_v25 = vpop.f32.mrb[9].mxu0  ;;  %v8194_v26 = vpop.f32.mrb[17].mxu1 }
 0x678   :  { %v1335_v27 = vpop.f32.mrb[10].mxu0  ;;  %v1381_v52 = vpop.f32.mrb[18].mxu1 }
 0x679   :  { %v8189_v28 = vpop.f32.mrb[11].mxu0  ;;  %v8195_v53 = vpop.f32.mrb[19].mxu1 }
 0x69d   :  { %v1424_v29 = vpop.f32.mrb[12].mxu0 }
 0x69e   :  { %v1476_v30 = vcombine.low %v1332_v23, %v1424_v29  ;;  %v1477_v31 = vcombine.high %v1332_v23, %v1424_v29  ;;  %v1470_v32 = vpop.f32.mrb[20].mxu1  ;;  %v8200_v33 = vpop.f32.mrb[13].mxu0 }
 0x69f   :  { %v1492_v44 = vcombine.low %v1378_v24, %v1470_v32  ;;  %v1493_v45 = vcombine.high %v1378_v24, %v1470_v32  ;;  %v8206_v46 = vpop.f32.mrb[21].mxu1  ;;  %v1427_v47 = vpop.f32.mrb[14].mxu0 }
 0x6a0   :  { %v1484_v48 = vrot.slane %v1476_v30, %v9742_v56  ;;  %v1491_v49 = vrot.slane %v1477_v31, %v9742_v56  ;;  %v1473_v50 = vpop.f32.mrb[22].mxu1  ;;  %v8201_v51 = vpop.f32.mrb[15].mxu0  ;;  %v7886_v47 = vld [vmem:[%s11763_s12] ss:$0 sm:$0xff] }
 0x6a1   :  { %v1500_v54 = vrot.slane %v1492_v44, %v9742_v56  ;;  %v1507_v55 = vrot.slane %v1493_v45, %v9742_v56  ;;  %v8207_v57 = vpop.f32.mrb[23].mxu1 }
 0x6a3   :  { %v1508_v59 = vcombine.low %v1484_v48, %v1500_v54  ;;  %v1509_v60 = vcombine.high %v1484_v48, %v1500_v54  ;;  %v1524_v61 = vcombine.low %v1491_v49, %v1507_v55  ;;  %v1525_v62 = vcombine.high %v1491_v49, %v1507_v55 }
 0x6a5   :  { %v1516_v1 = vrot.slane %v1508_v59, %v9744_v63  ;;  %v1523_v2 = vrot.slane %v1509_v60, %v9744_v63  ;;  %v1532_v11 = vrot.slane %v1524_v61, %v9744_v63  ;;  %v1539_v12 = vrot.slane %v1525_v62, %v9744_v63 }
 0x6a7   :  { %v1544_v4 = vcombine.low %v1516_v1, %v1523_v2  ;;  %v7884_v35 = vcombine.high %v1516_v1, %v1523_v2  ;;  %v1560_v43 = vcombine.low %v1532_v11, %v1539_v12  ;;  %v7885_v5 = vcombine.high %v1532_v11, %v1539_v12  ;;  %v8645_v1 = vld [vmem:[#allocation2 + $0x2] sm:$0x3]  ;;  %v8646_v11 = vld [vmem:[#allocation2 + $0x4] sm:$0x3] }
 0x6a9   :  { %v1551_v6 = vrot.slane %v1544_v4, %v9742_v56  ;;  %v1559_v17 = vrot.slane %v7884_v35, %v9742_v56  ;;  %v1567_v18 = vrot.slane %v1560_v43, %v9742_v56  ;;  %v1575_v19 = vrot.slane %v7885_v5, %v9742_v56  ;;  %v8648_v35 = vld [vmem:[#allocation2 + $0x8] sm:$0x3]  ;;  %v8649_v5 = vld [vmem:[#allocation2] sm:$0x3] }
 0x6ab   :  { %v1577_v8 = vcombine.high %v1551_v6, %v1559_v17  ;;  %v1593_v21 = vcombine.high %v1567_v18, %v1575_v19  ;;  %v1576_v22 = vcombine.low %v1551_v6, %v1559_v17  ;;  %v1592_v23 = vcombine.low %v1567_v18, %v1575_v19  ;;  %v8650_v17 = vld [vmem:[#allocation2 + $0xa] sm:$0x3] }
 0x6ad   :  { %v1591_v24 = vrot.slane %v1577_v8, %v9744_v63  ;;  %v1607_v25 = vrot.slane %v1593_v21, %v9744_v63  ;;  %v1584_v26 = vrot.slane %v1576_v22, %v9744_v63  ;;  %v1600_v27 = vrot.slane %v1592_v23, %v9744_v63  ;;  %v8651_v21 = vld [vmem:[#allocation2 + $0xc] sm:$0x3]  ;;  %v8652_v23 = vld [vmem:[#allocation2 + $0xe] sm:$0x3] }
 0x6af   :  { %v1610_v52 = vcombine.low %v1591_v24, %v1607_v25  ;;  %v1609_v28 = vcombine.high %v1584_v26, %v1600_v27  ;;  %v1611_v53 = vcombine.high %v1591_v24, %v1607_v25  ;;  %v1608_v29 = vcombine.low %v1584_v26, %v1600_v27 }
 0x6b1   :  { %1617 = vrot.lane.b32.xlu1 %v1610_v52, %s9170_s14  ;;  %1613 = vrot.lane.b32.xlu0 %v1609_v28, %s9171_s1 }
 0x6b5   :  { %1621 = vrot.lane.b32.xlu1 %v1611_v53, %s9172_s15 }
 0x723   :  { %v1618_v30 = vpop.permute.xlu1 %1617  ;;  %v1614_v31 = vpop.permute.xlu0 %1613 }
 0x724   :  { %v1624_v32 = vsel %vm1058_vm9, %v1608_v29, %v1614_v31 }
 0x725   :  { %v1626_v44 = vsel %vm1625_vm11, %v1624_v32, %v1618_v30 }
 0x727   :  { %v1622_v33 = vpop.permute.xlu1 %1621 }
 0x728   :  { %v1628_v45 = vsel %vm1627_vm12, %v1626_v44, %v1622_v33 }
 0x729   :  { %v1629_v46 = vpack.c.bf16 %v1628_v45, %v1628_v45 }
 0x72b   :  { %8213 = vmatmul.mubr.msk.bf16.vlgmr.msra.gmra.mrb[16].mxu0 %vm449_vm8, %v1629_v46  ;;  %v8529_v46 = vld [vmem:[#allocation11] sm:$0xff]  }
 0x72c   :  { %8228 = vmatprep.mubr.msk.bf16.mxu0 %vm9163_vm0, %v11697_v0  ;;  %8225 = vmatpush3.bf16.msra.mxu0 %v8529_v46 }
 0x72d   :  { %8226 = vmatprep.subr.bf16.mxu0 %v11697_v0 }
 0x7fe   :  { %v1690_v48 = vpop.f32.mrb[16].mxu0 }
 0x7ff   :  { %v1691_v49 = vadd.f32 %v7886_v47, %v1690_v48  ;;  %v8214_v50 = vpop.f32.mrb[17].mxu0  ;;  %v8530_v47 = vld [vmem:[#allocation11 + $0x8] sm:$0xff]  }
 0x800   :  { %v1693_v51 = vpop.f32.mrb[18].mxu0  ;;  %v9929_v48 = vld [vmem:[%s11764_s24 + $0x2] sm:$0x3]  ;;  %v9940_v50 = vld [vmem:[%s11764_s24 + $0x6] sm:$0x3]  ;;  %8227 = vmatpush3.bf16.msra.mxu0 %v8530_v47 }
 0x801   :  { %v8215_v54 = vpop.f32.mrb[19].mxu0  ;;  %v1697_v55 = vrot.slane %v1691_v49, 1  ;;  %v1698_v57 = vrot.slane %v1691_v49, 2  ;;  %v1699_v58 = vrot.slane %v1691_v49, 3  ;;  %v1700_v59 = vrot.slane %v1691_v49, 4  ;;  %8240 = vmatprep.subr.bf16.mxu0 %v11697_v0 }
 0x802   :  { %v1701_v60 = vrot.slane %v1691_v49, 5  ;;  %v1702_v61 = vrot.slane %v1691_v49, 6  ;;  %v1703_v62 = vrot.slane %v1691_v49, 7  ;;  %v9902_v6 = vadd.f32 %v8649_v5, %v1691_v49  ;;  %v9935_v49 = vld [vmem:[%s11764_s24 + $0x4] sm:$0x3] }
 0x803   :  { %v9894_v2 = vadd.f32 %v8645_v1, %v1697_v55  ;;  %v9896_v12 = vadd.f32 %v8646_v11, %v1698_v57  ;;  %v9898_v4 = vadd.f32 %v8647_v14, %v1699_v58  ;;  %v9900_v43 = vadd.f32 %v8648_v35, %v1700_v59  ;;  %v9945_v51 = vld [vmem:[%s11764_s24 + $0x8] sm:$0x3]  ;;  %v9950_v54 = vld [vmem:[%s11764_s24] sm:$0x3]  ;;  %v9955_v55 = vld [vmem:[%s11764_s24 + $0xa] sm:$0x3] }
 0x804   :  { %v9904_v18 = vadd.f32 %v8650_v17, %v1701_v60  ;;  %v9908_v22 = vadd.f32 %v8651_v21, %v1702_v61  ;;  %v9910_v24 = vadd.f32 %v8652_v23, %v1703_v62  ;;  %v9960_v57 = vld [vmem:[%s11764_s24 + $0xc] sm:$0x3]  ;;  %v9965_v58 = vld [vmem:[%s11764_s24 + $0xe] sm:$0x3]  ;;  %v9970_v59 = vld [vmem:[%s11764_s24 + $0x10] sm:$0x3] }
 0x805   :  { %v1730_v19 = vrot.slane %v9894_v2, 7  ;;  %v1732_v8 = vrot.slane %v9896_v12, 6  ;;  %v1734_v26 = vrot.slane %v9898_v4, 5  ;;  %v1736_v52 = vrot.slane %v9900_v43, 4  ;;  %v9975_v60 = vld [vmem:[%s11764_s24 + $0x12] sm:$0x3] }
 0x806   :  { %v1738_v53 = vrot.slane %v9904_v18, 3  ;;  %v1740_v30 = vrot.slane %v9908_v22, 2  ;;  %v1742_v32 = vrot.slane %v9910_v24, 1  ;;  %v9980_v61 = vld [vmem:[%s11764_s24 + $0x14] sm:$0x3] }
 0x807   :  { %v1731_v25 = vsel %vm416_vm1, %v1730_v19, %v9902_v6  ;;  %v9985_v62 = vld [vmem:[%s11764_s24 + $0x16] sm:$0x3]  ;;  %v9990_v1 = vld [vmem:[%s11764_s24 + $0x18] sm:$0x3]  ;;  %v9995_v11 = vld [vmem:[%s11764_s24 + $0x1a] sm:$0x3] }
 0x808   :  { %v1733_v27 = vsel %vm419_vm2, %v1732_v8, %v1731_v25  ;;  %v10000_v14 = vld [vmem:[%s11764_s24 + $0x1c] sm:$0x3]  ;;  %v356_v35 = vld [vmem:[%s11765_s13] sm:$0x3]  ;;  %v357_v5 = vld [vmem:[%s11765_s13 + $0x2] sm:$0x3] }
 0x809   :  { %v1735_v28 = vsel %vm422_vm3, %v1734_v26, %v1733_v27  ;;  %v358_v17 = vld [vmem:[%s11765_s13 + $0x4] sm:$0x3]  ;;  %v10014_v19 = vld [vmem:[%s11764_s24 + $0x1e] sm:$0x3]  ;;  %v359_v8 = vld [vmem:[%s11765_s13 + $0x6] sm:$0x3]  ;;  %v1872_v25 = vadd.f32 %v357_v5, %v9929_v48 }
 0x80a   :  { %v1737_v29 = vsel %vm425_vm4, %v1736_v52, %v1735_v28  ;;  %v360_v21 = vld [vmem:[%s11765_s13 + $0x8] sm:$0x3]  ;;  %v361_v23 = vld [vmem:[%s11765_s13 + $0xa] sm:$0x3]  ;;  %v362_v26 = vld [vmem:[%s11765_s13 + $0xc] sm:$0x3]  ;;  %v1873_v28 = vadd.f32 %v358_v17, %v9935_v49 }
 0x80b   :  { %v1739_v31 = vsel %vm428_vm5, %v1738_v53, %v1737_v29  ;;  %v363_v27 = vld [vmem:[%s11765_s13 + $0xe] sm:$0x3]  ;;  %v364_v52 = vld [vmem:[%s11765_s13 + $0x10] sm:$0x3]  ;;  %v1874_v53 = vadd.f32 %v359_v8, %v9940_v50  ;;  %v1875_v29 = vadd.f32 %v360_v21, %v9945_v51  ;;  %v368_v47 = vld [vmem:[%s11765_s13 + $0x18] sm:$0x3]  ;;  %v1993_v9 = vpack.c.bf16 %v1872_v25, %v1872_v25 }
 0x80c   :  { %v1741_v33 = vsel %vm431_vm6, %v1740_v30, %v1739_v31  ;;  %v365_v30 = vld [vmem:[%s11765_s13 + $0x12] sm:$0x3]  ;;  %v366_v31 = vld [vmem:[%s11765_s13 + $0x14] sm:$0x3]  ;;  %v1878_v46 = vadd.f32 %v363_v27, %v9965_v58  ;;  %v369_v5 = vld [vmem:[%s11765_s13 + $0x1a] sm:$0x3]  ;;  %v1883_v27 = vadd.f32 %v368_v47, %v9990_v1 }
 0x80d   :  { %v1743_v44 = vsel %vm434_vm7, %v1742_v32, %v1741_v33  ;;  %v367_v32 = vld [vmem:[%s11765_s13 + $0x16] sm:$0x3]  ;;  %v1871_v33 = vadd.f32 %v356_v35, %v9950_v54  ;;  %v370_v17 = vld [vmem:[%s11765_s13 + $0x1c] sm:$0x3]  ;;  %v1879_v35 = vadd.f32 %v364_v52, %v9970_v59  ;;  %v1880_v8 = vadd.f32 %v365_v30, %v9975_v60 }
 0x80e   :  { %v1745_v45 = vsel %vm449_vm8, %v1743_v44, 0.0  ;;  %v1876_v44 = vadd.f32 %v361_v23, %v9955_v55  ;;  %v1881_v21 = vadd.f32 %v366_v31, %v9980_v61  ;;  %v1882_v23 = vadd.f32 %v367_v32, %v9985_v62 }
 0x80f   :  { %1746 = vadd.xlane.f32.xlu0 %v1745_v45  ;;  %v1877_v45 = vadd.f32 %v362_v26, %v9960_v57  ;;  %v371_v26 = vld [vmem:[%s11765_s13 + $0x1e] sm:$0x3]  ;;  %v1884_v0 = vadd.f32 %v369_v5, %v9995_v11  ;;  %v1885_v10 = vadd.f32 %v370_v17, %v10000_v14  ;;  %v1994_v52 = vpack.c.bf16 %v1873_v28, %v1873_v28 }
 0x810   :  { %v1886_v20 = vadd.f32 %v371_v26, %v10014_v19  ;;  %v1995_v7 = vpack.c.bf16 %v1874_v53, %v1874_v53  ;;  %v1996_v30 = vpack.c.bf16 %v1875_v29, %v1875_v29  ;;  %v1992_v3 = vpack.c.bf16 %v1871_v33, %v1871_v33 }
 0x811   :  { %v1997_v31 = vpack.c.bf16 %v1876_v44, %v1876_v44  ;;  %v1998_v13 = vpack.c.bf16 %v1877_v45, %v1877_v45  ;;  %v2001_v32 = vpack.c.bf16 %v1880_v8, %v1880_v8  ;;  %v1999_v15 = vpack.c.bf16 %v1878_v46, %v1878_v46 }
 0x812   :  { %v2002_v16 = vpack.c.bf16 %v1881_v21, %v1881_v21  ;;  %v2003_v42 = vpack.c.bf16 %v1882_v23, %v1882_v23  ;;  %v2004_v41 = vpack.c.bf16 %v1883_v27, %v1883_v27  ;;  %v2000_v36 = vpack.c.bf16 %v1879_v35, %v1879_v35 }
 0x813   :  { %v2005_v47 = vpack.c.bf16 %v1884_v0, %v1884_v0  ;;  %v2006_v40 = vpack.c.bf16 %v1885_v10, %v1885_v10  ;;  %v10072_v5 = vunpack.c.l.b16 %v1993_v9  ;;  %v2007_v17 = vpack.c.bf16 %v1886_v20, %v1886_v20 }
 0x814   :  { %v10074_v25 = vunpack.c.l.b16 %v1994_v52  ;;  %v10076_v26 = vunpack.c.l.b16 %v1995_v7  ;;  %v10078_v28 = vunpack.c.l.b16 %v1996_v30  ;;  %v10080_v53 = vunpack.c.l.b16 %v1992_v3 }
 0x815   :  { %11766 = vst [vmem:[#allocation56_spill] sm:$0xff] %v10072_v5  ;;  %v10082_v29 = vunpack.c.l.b16 %v1997_v31  ;;  %v10084_v33 = vunpack.c.l.b16 %v1998_v13  ;;  %v10086_v44 = vunpack.c.l.b16 %v2001_v32  ;;  %v10088_v45 = vunpack.c.l.b16 %v1999_v15 }
 0x816   :  { %v10090_v0 = vunpack.c.l.b16 %v2002_v16  ;;  %v10092_v9 = vunpack.c.l.b16 %v2003_v42  ;;  %v10094_v20 = vunpack.c.l.b16 %v2004_v41  ;;  %v10096_v7 = vunpack.c.l.b16 %v2000_v36 }
 0x817   :  { %11767 = vst [vmem:[#allocation57_spill] sm:$0xff] %v10082_v29  ;;  %11768 = vst [vmem:[#allocation58_spill] sm:$0xff] %v10084_v33  ;;  %v10098_v10 = vunpack.c.l.b16 %v2005_v47  ;;  %v2051_v3 = vrot.slane %v10072_v5, 7  ;;  %v2053_v46 = vrot.slane %v10074_v25, 6  ;;  %v10102_v13 = vunpack.c.l.b16 %v2006_v40 }
 0x818   :  { %11769 = vst [vmem:[#allocation59_spill] sm:$0xff] %v10086_v44  ;;  %11770 = vst [vmem:[#allocation60_spill] sm:$0xff] %v10088_v45  ;;  %v10104_v35 = vunpack.c.l.b16 %v2007_v17  ;;  %v2055_v15 = vrot.slane %v10076_v26, 5  ;;  %v2057_v16 = vrot.slane %v10078_v28, 4  ;;  %v2059_v36 = vrot.slane %v10082_v29, 3 }
 0x819   :  { %11771 = vst [vmem:[#allocation61_spill] sm:$0xff] %v10090_v0  ;;  %11772 = vst [vmem:[#allocation62_spill] sm:$0xff] %v10092_v9  ;;  %v2052_v41 = vsel %vm416_vm1, %v2051_v3, %v10080_v53  ;;  %v2065_v42 = vrot.slane %v10086_v44, 7  ;;  %v2067_v8 = vrot.slane %v10090_v0, 6  ;;  %v2061_v40 = vrot.slane %v10084_v33, 2 }
 0x81a   :  { %11773 = vst [vmem:[#allocation63_spill] sm:$0xff] %v10094_v20  ;;  %11774 = vst [vmem:[#allocation64_spill] sm:$0xff] %v10096_v7  ;;  %v2054_v21 = vsel %vm419_vm2, %v2053_v46, %v2052_v41  ;;  %v2069_v23 = vrot.slane %v10092_v9, 5  ;;  %v2071_v27 = vrot.slane %v10094_v20, 4  ;;  %v2063_v30 = vrot.slane %v10088_v45, 1 }
 0x81b   :  { %11775 = vst [vmem:[#allocation65_spill] sm:$0xff] %v10098_v10  ;;  %11776 = vst [vmem:[#allocation66_spill] sm:$0xff] %v10102_v13  ;;  %v2056_v52 = vsel %vm422_vm3, %v2055_v15, %v2054_v21  ;;  %v2066_v31 = vsel %vm416_vm1, %v2065_v42, %v10096_v7  ;;  %v2073_v32 = vrot.slane %v10098_v10, 3  ;;  %v2075_v3 = vrot.slane %v10102_v13, 2 }
 0x81c   :  { %11777 = vst [vmem:[#allocation67_spill] sm:$0xff] %v10104_v35  ;;  %v2058_v47 = vsel %vm425_vm4, %v2057_v16, %v2056_v52  ;;  %v2068_v17 = vsel %vm419_vm2, %v2067_v8, %v2066_v31  ;;  %v2077_v44 = vrot.slane %v10104_v35, 1 }
 0x81d   :  { %v2060_v46 = vsel %vm428_vm5, %v2059_v36, %v2058_v47  ;;  %v2070_v41 = vsel %vm422_vm3, %v2069_v23, %v2068_v17  ;;  %v11778_v36 = vmov 0.0  }
 0x81e   :  { %v2062_v15 = vsel %vm431_vm6, %v2061_v40, %v2060_v46  ;;  %v2072_v21 = vsel %vm425_vm4, %v2071_v27, %v2070_v41 }
 0x81f   :  { %v2064_v42 = vsel %vm434_vm7, %v2063_v30, %v2062_v15  ;;  %v2074_v45 = vsel %vm428_vm5, %v2073_v32, %v2072_v21 }
 0x820   :  { %v2076_v16 = vsel %vm431_vm6, %v2075_v3, %v2074_v45 }
 0x821   :  { %v2078_v8 = vsel %vm434_vm7, %v2077_v44, %v2076_v16 }
 0x822   :  { %v2079_v52 = vpack.c.b16 %v2078_v8, %v2064_v42 }
 0x824   :  { %8229 = vmatmul.mubr.msk.bf16.vlgmr.msra.gmra.mrb[20].mxu0 %vm449_vm8, %v2079_v52 }
 0x825   :  { %8242 = vmatprep.mubr.msk.bf16.mxu0 %vm9163_vm0, %v11778_v36 }
 0x89c   :  { %v1747_v23 = vpop.xlane.xlu0 %1746 }
 0x89d   :  { %v1749_v31 = vmul.f32 0.03125, %v1747_v23 }
 0x89f   :  { %v1751_v47 = vrot.slane %v1749_v31, 1  ;;  %v1752_v40 = vrot.slane %v1749_v31, 2  ;;  %v1753_v17 = vrot.slane %v1749_v31, 3  ;;  %v1754_v27 = vrot.slane %v1749_v31, 4 }
 0x8a0   :  { %v1755_v46 = vrot.slane %v1749_v31, 5  ;;  %v1756_v30 = vrot.slane %v1749_v31, 6  ;;  %v1757_v41 = vrot.slane %v1749_v31, 7  ;;  %v10138_v32 = vsub.f32 %v9902_v6, %v1749_v31 }
 0x8a1   :  { %v10141_v44 = vsub.f32 %v9894_v2, %v1751_v47  ;;  %v10144_v45 = vsub.f32 %v9896_v12, %v1752_v40  ;;  %v10147_v3 = vsub.f32 %v9898_v4, %v1753_v17  ;;  %v10150_v15 = vsub.f32 %v9900_v43, %v1754_v27 }
 0x8a2   :  { %v10153_v21 = vsub.f32 %v9904_v18, %v1755_v46  ;;  %v10156_v42 = vsub.f32 %v9908_v22, %v1756_v30  ;;  %v10159_v6 = vsub.f32 %v9910_v24, %v1757_v41  ;;  %v1774_v18 = vmul.f32 %v10138_v32, %v10138_v32 }
 0x8a3   :  { %v1775_v2 = vmul.f32 %v10141_v44, %v10141_v44  ;;  %v1776_v12 = vmul.f32 %v10144_v45, %v10144_v45  ;;  %v1777_v4 = vmul.f32 %v10147_v3, %v10147_v3  ;;  %v1778_v43 = vmul.f32 %v10150_v15, %v10150_v15 }
 0x8a4   :  { %v1779_v22 = vmul.f32 %v10153_v21, %v10153_v21  ;;  %v1780_v8 = vmul.f32 %v10156_v42, %v10156_v42  ;;  %v1781_v52 = vmul.f32 %v10159_v6, %v10159_v6 }
 0x8a5   :  { %v1790_v24 = vrot.slane %v1775_v2, 7  ;;  %v1792_v16 = vrot.slane %v1776_v12, 6  ;;  %v1794_v31 = vrot.slane %v1777_v4, 5  ;;  %v1796_v40 = vrot.slane %v1778_v43, 4  ;;  %v8531_v4 = vld [vmem:[#allocation10] sm:$0xff]  }
 0x8a6   :  { %v1798_v27 = vrot.slane %v1779_v22, 3  ;;  %v1800_v30 = vrot.slane %v1780_v8, 2  ;;  %v1802_v2 = vrot.slane %v1781_v52, 1  ;;  %8217 = vmatpush3.bf16.msra.mxu1 %v8531_v4  ;;  %v7896_v43 = vld [vmem:[#allocation17] ss:$0 sm:$0xff] }
 0x8a7   :  { %v1791_v23 = vsel %vm416_vm1, %v1790_v24, %v1774_v18  ;;  %v8532_v18 = vld [vmem:[#allocation10 + $0x8] sm:$0xff]   ;;  %8218 = vmatprep.subr.bf16.mxu1 %v11778_v36 }
 0x8a8   :  { %v1793_v47 = vsel %vm419_vm2, %v1792_v16, %v1791_v23 }
 0x8a9   :  { %v1795_v17 = vsel %vm422_vm3, %v1794_v31, %v1793_v47 }
 0x8aa   :  { %v1797_v46 = vsel %vm425_vm4, %v1796_v40, %v1795_v17  ;;  %8219 = vmatpush3.bf16.msra.mxu1 %v8532_v18  ;;  %v7890_v40 = vld [vmem:[#allocation7] ss:$0 sm:$0xff]  ;;  %v7891_v18 = vld [vmem:[#allocation8] ss:$0 sm:$0xff] }
 0x8ab   :  { %v1799_v41 = vsel %vm428_vm5, %v1798_v27, %v1797_v46  ;;  %8232 = vmatprep.subr.bf16.mxu1 %v11778_v36 }
 0x8ac   :  { %v1801_v12 = vsel %vm431_vm6, %v1800_v30, %v1799_v41 }
 0x8ad   :  { %v1803_v35 = vsel %vm434_vm7, %v1802_v2, %v1801_v12 }
 0x8ae   :  { %v1805_v13 = vsel %vm449_vm8, %v1803_v35, 0.0 }
 0x8af   :  { %1806 = vadd.xlane.f32.xlu1 %v1805_v13 }
 0x8f7   :  { %v2129_v22 = vpop.f32.mrb[20].mxu0 }
 0x8f8   :  { %v10187_v24 = vadd.f32 %v7896_v43, %v2129_v22  ;;  %v8230_v16 = vpop.f32.mrb[21].mxu0 }
 0x8f9   :  { %v2132_v8 = vpop.f32.mrb[22].mxu0 }
 0x8fa   :  { %v10189_v52 = vadd.f32 %v7896_v43, %v2132_v8  ;;  %2433 = vrot.lane.b32.xlu0 %v10187_v24, %s9165_s25  ;;  %v8231_v13 = vpop.f32.mrb[23].mxu0 }
 0x8fc   :  { %2435 = vrot.lane.b32.xlu1 %v10189_v52, %s9165_s25 }
 0x8fe   :  { %2439 = vrot.lane.b32.xlu0 %v10187_v24, %s9167_s8 }
 0x900   :  { %2441 = vrot.lane.b32.xlu1 %v10189_v52, %s9167_s8 }
 0x902   :  { %2445 = vrot.lane.b32.xlu0 %v10187_v24, %s9164_s16 }
 0x904   :  { %2447 = vrot.lane.b32.xlu1 %v10189_v52, %s9164_s16 }
 0x93c   :  { %v1807_v35 = vpop.xlane.xlu1 %1806 }
 0x93d   :  { %v1808_v23 = vmul.f32 0.03125, %v1807_v35 }
 0x93f   :  { %v1809_v31 = vadd.f32 1e-05, %v1808_v23 }
 0x941   :  { %8579 = vrsqrt.f32 %v1809_v31 }
 0x94b   :  { %v8580_v47 = vpop.eup %8579 }
 0x94c   :  { %v1812_v17 = vrot.slane %v8580_v47, 1  ;;  %v1813_v27 = vrot.slane %v8580_v47, 2  ;;  %v1814_v46 = vrot.slane %v8580_v47, 3  ;;  %v1815_v30 = vrot.slane %v8580_v47, 4 }
 0x94d   :  { %v1816_v41 = vrot.slane %v8580_v47, 5  ;;  %v1817_v2 = vrot.slane %v8580_v47, 6  ;;  %v1818_v12 = vrot.slane %v8580_v47, 7  ;;  %v1827_v4 = vmul.f32 %v8580_v47, %v10138_v32 }
 0x94e   :  { %v1828_v43 = vmul.f32 %v1812_v17, %v10141_v44  ;;  %v1829_v22 = vmul.f32 %v1813_v27, %v10144_v45  ;;  %v1830_v16 = vmul.f32 %v1814_v46, %v10147_v3  ;;  %v1831_v8 = vmul.f32 %v1815_v30, %v10150_v15  ;;  %v8656_v30 = vld [vmem:[%s11747_s23 + $0x6] sm:$0x3] }
 0x94f   :  { %v1832_v13 = vmul.f32 %v1816_v41, %v10153_v21  ;;  %v1833_v35 = vmul.f32 %v1817_v2, %v10156_v42  ;;  %v1834_v23 = vmul.f32 %v1818_v12, %v10159_v6  ;;  %v1841_v31 = vmul.f32 %v7890_v40, %v1827_v4  ;;  %v8657_v2 = vld [vmem:[%s11747_s23 + $0x8] sm:$0x3]  ;;  %v8658_v4 = vld [vmem:[%s11747_s23 + $0xa] sm:$0x3] }
 0x950   :  { %v1842_v10 = vmul.f32 %v7890_v40, %v1828_v43  ;;  %v1843_v33 = vmul.f32 %v7890_v40, %v1829_v22  ;;  %v1844_v20 = vmul.f32 %v7890_v40, %v1830_v16  ;;  %v1845_v32 = vmul.f32 %v7890_v40, %v1831_v8  ;;  %v8659_v43 = vld [vmem:[%s11747_s23 + $0xc] sm:$0x3]  ;;  %v8660_v16 = vld [vmem:[%s11747_s23 + $0xe] sm:$0x3] }
 0x951   :  { %v1846_v47 = vmul.f32 %v7890_v40, %v1832_v13  ;;  %v1847_v9 = vmul.f32 %v7890_v40, %v1833_v35  ;;  %v1848_v44 = vmul.f32 %v7890_v40, %v1834_v23  ;;  %v10211_v17 = vadd.f32 %v7891_v18, %v1841_v31  ;;  %v8653_v40 = vld [vmem:[%s11747_s23] sm:$0x3] }
 0x952   :  { %v10213_v45 = vadd.f32 %v7891_v18, %v1842_v10  ;;  %v10215_v3 = vadd.f32 %v7891_v18, %v1843_v33  ;;  %v10217_v15 = vadd.f32 %v7891_v18, %v1844_v20  ;;  %v10219_v21 = vadd.f32 %v7891_v18, %v1845_v32  ;;  %v8654_v33 = vld [vmem:[%s11747_s23 + $0x2] sm:$0x3]  ;;  %v8655_v10 = vld [vmem:[%s11747_s23 + $0x4] sm:$0x3] }
 0x953   :  { %v10221_v42 = vadd.f32 %v7891_v18, %v1846_v47  ;;  %v10223_v6 = vadd.f32 %v7891_v18, %v1847_v9  ;;  %v10225_v27 = vadd.f32 %v7891_v18, %v1848_v44  ;;  %v1863_v46 = vadd.f32 %v8653_v40, %v10211_v17 }
 0x954   :  { %v1864_v20 = vadd.f32 %v8654_v33, %v10213_v45  ;;  %v1865_v9 = vadd.f32 %v8655_v10, %v10215_v3  ;;  %v1866_v41 = vadd.f32 %v8656_v30, %v10217_v15  ;;  %v1867_v12 = vadd.f32 %v8657_v2, %v10219_v21 }
 0x955   :  { %v1868_v18 = vadd.f32 %v8658_v4, %v10221_v42  ;;  %v1869_v22 = vadd.f32 %v8659_v43, %v10223_v6  ;;  %v1870_v8 = vadd.f32 %v8660_v16, %v10225_v27  ;;  %v1887_v13 = vpack.c.bf16 %v1863_v46, %v1863_v46 }
 0x956   :  { %v1888_v35 = vpack.c.bf16 %v1864_v20, %v1864_v20  ;;  %v1889_v23 = vpack.c.bf16 %v1865_v9, %v1865_v9  ;;  %v1890_v31 = vpack.c.bf16 %v1866_v41, %v1866_v41  ;;  %v1891_v32 = vpack.c.bf16 %v1867_v12, %v1867_v12 }
 0x957   :  { %v1892_v47 = vpack.c.bf16 %v1868_v18, %v1868_v18  ;;  %v1893_v44 = vpack.c.bf16 %v1869_v22, %v1869_v22  ;;  %v1894_v40 = vpack.c.bf16 %v1870_v8, %v1870_v8  ;;  %v1914_v4 = vunpack.c.l.b16 %v1887_v13 }
 0x958   :  { %v1915_v33 = vunpack.c.l.b16 %v1888_v35  ;;  %v1916_v10 = vunpack.c.l.b16 %v1889_v23  ;;  %v1917_v30 = vunpack.c.l.b16 %v1890_v31  ;;  %v1918_v2 = vunpack.c.l.b16 %v1891_v32  ;;  %v8533_v31 = vld [vmem:[#allocation13] sm:$0xff]  }
 0x959   :  { %v1919_v43 = vunpack.c.l.b16 %v1892_v47  ;;  %v1920_v7 = vunpack.c.l.b16 %v1893_v44  ;;  %v1921_v29 = vunpack.c.l.b16 %v1894_v40 }
 0x95a   :  { %v1922_v0 = vrot.slane %v1915_v33, 7  ;;  %v1924_v5 = vrot.slane %v1916_v10, 6  ;;  %v1926_v46 = vrot.slane %v1917_v30, 5  ;;  %v1928_v9 = vrot.slane %v1918_v2, 4 }
 0x95b   :  { %v1930_v12 = vrot.slane %v1919_v43, 3  ;;  %v1932_v22 = vrot.slane %v1920_v7, 2  ;;  %v1934_v13 = vrot.slane %v1921_v29, 1 }
 0x95c   :  { %v1923_v16 = vsel %vm416_vm1, %v1922_v0, %v1914_v4 }
 0x95d   :  { %v1925_v20 = vsel %vm419_vm2, %v1924_v5, %v1923_v16 }
 0x95e   :  { %v1927_v41 = vsel %vm422_vm3, %v1926_v46, %v1925_v20 }
 0x95f   :  { %v1929_v18 = vsel %vm425_vm4, %v1928_v9, %v1927_v41 }
 0x960   :  { %v1931_v8 = vsel %vm428_vm5, %v1930_v12, %v1929_v18 }
 0x961   :  { %v1933_v35 = vsel %vm431_vm6, %v1932_v22, %v1931_v8 }
 0x962   :  { %v1935_v23 = vsel %vm434_vm7, %v1934_v13, %v1933_v35 }
 0x963   :  { %v1936_v32 = vpack.c.b16 %v1935_v23, %v1935_v23 }
 0x965   :  { %8221 = vmatmul.mubr.msk.bf16.vlgmr.msra.gmra.mrb[24].mxu1 %vm449_vm8, %v1936_v32 }
 0x966   :  { %8233 = vmatpush3.bf16.msra.mxu1 %v8533_v31  ;;  %8236 = vmatprep.mubr.msk.bf16.mxu1 %vm9163_vm0, %v11778_v36 }
 0x967   :  { %8234 = vmatprep.subr.bf16.mxu1 %v11778_v36 }
 0x96c   :  { %v2434_v5 = vpop.permute.xlu0 %2433 }
 0x96e   :  { %v2436_v0 = vpop.permute.xlu1 %2435 }
 0x970   :  { %v2440_v7 = vpop.permute.xlu0 %2439 }
 0x971   :  { %v2451_v29 = vcombine.low %v10187_v24, %v2440_v7  ;;  %v2452_v40 = vcombine.high %v10187_v24, %v2440_v7 }
 0x972   :  { %v2442_v47 = vpop.permute.xlu1 %2441 }
 0x973   :  { %v2519_v2 = vcombine.low %v10189_v52, %v2442_v47  ;;  %v2520_v4 = vcombine.high %v10189_v52, %v2442_v47  ;;  %v2459_v46 = vrot.slane %v2451_v29, %v9742_v56  ;;  %v2466_v20 = vrot.slane %v2452_v40, %v9742_v56 }
 0x974   :  { %v2446_v44 = vpop.permute.xlu0 %2445 }
 0x975   :  { %v2467_v33 = vcombine.low %v2434_v5, %v2446_v44  ;;  %v2468_v10 = vcombine.high %v2434_v5, %v2446_v44  ;;  %v2527_v12 = vrot.slane %v2519_v2, %v9742_v56  ;;  %v2534_v24 = vrot.slane %v2520_v4, %v9742_v56 }
 0x976   :  { %v2448_v30 = vpop.permute.xlu1 %2447 }
 0x977   :  { %v2535_v43 = vcombine.low %v2436_v0, %v2448_v30  ;;  %v2536_v16 = vcombine.high %v2436_v0, %v2448_v30  ;;  %v2475_v9 = vrot.slane %v2467_v33, %v9742_v56  ;;  %v2482_v41 = vrot.slane %v2468_v10, %v9742_v56 }
 0x979   :  { %v2543_v18 = vrot.slane %v2535_v43, %v9742_v56  ;;  %v2550_v22 = vrot.slane %v2536_v16, %v9742_v56  ;;  %v2483_v8 = vcombine.low %v2459_v46, %v2475_v9  ;;  %v2484_v52 = vcombine.high %v2459_v46, %v2475_v9 }
 0x97a   :  { %v2499_v13 = vcombine.low %v2466_v20, %v2482_v41  ;;  %v2500_v35 = vcombine.high %v2466_v20, %v2482_v41 }
 0x97b   :  { %v2551_v23 = vcombine.low %v2527_v12, %v2543_v18  ;;  %v2552_v31 = vcombine.high %v2527_v12, %v2543_v18  ;;  %v2567_v32 = vcombine.low %v2534_v24, %v2550_v22  ;;  %v2568_v5 = vcombine.high %v2534_v24, %v2550_v22 }
 0x97c   :  { %v2491_v0 = vrot.slane %v2483_v8, %v9744_v63  ;;  %v2498_v7 = vrot.slane %v2484_v52, %v9744_v63  ;;  %v2507_v47 = vrot.slane %v2499_v13, %v9744_v63  ;;  %v2514_v44 = vrot.slane %v2500_v35, %v9744_v63 }
 0x97d   :  { %v2559_v29 = vrot.slane %v2551_v23, %v9744_v63  ;;  %v2566_v40 = vrot.slane %v2552_v31, %v9744_v63  ;;  %v2575_v33 = vrot.slane %v2567_v32, %v9744_v63  ;;  %v2582_v10 = vrot.slane %v2568_v5, %v9744_v63 }
 0x97e   :  { %v2587_v30 = vcombine.low %v2491_v0, %v2498_v7  ;;  %v7906_v2 = vcombine.high %v2491_v0, %v2498_v7  ;;  %v2603_v4 = vcombine.low %v2507_v47, %v2514_v44  ;;  %v7907_v43 = vcombine.high %v2507_v47, %v2514_v44 }
 0x97f   :  { %v2655_v16 = vcombine.low %v2559_v29, %v2566_v40  ;;  %v7908_v46 = vcombine.high %v2559_v29, %v2566_v40  ;;  %v2671_v20 = vcombine.low %v2575_v33, %v2582_v10  ;;  %v7909_v9 = vcombine.high %v2575_v33, %v2582_v10 }
 0x980   :  { %v10291_v41 = vrot.slane %v2587_v30, %v9742_v56  ;;  %v10294_v12 = vrot.slane %v7906_v2, %v9742_v56  ;;  %v10297_v24 = vrot.slane %v2603_v4, %v9742_v56  ;;  %v10300_v18 = vrot.slane %v7907_v43, %v9742_v56 }
 0x981   :  { %v10303_v22 = vrot.slane %v2655_v16, %v9742_v56  ;;  %v10306_v8 = vrot.slane %v7908_v46, %v9742_v56  ;;  %v10309_v52 = vrot.slane %v2671_v20, %v9742_v56  ;;  %v2137_v13 = vpack.c.bf16 %v9929_v48, %v9929_v48 }
 0x982   :  { %v10314_v35 = vrot.slane %v7909_v9, %v9742_v56  ;;  %v2138_v23 = vpack.c.bf16 %v9935_v49, %v9935_v49  ;;  %v2145_v31 = vpack.c.bf16 %v9975_v60, %v9975_v60  ;;  %v2146_v32 = vpack.c.bf16 %v9980_v61, %v9980_v61 }
 0x983   :  { %v2136_v5 = vpack.c.bf16 %v9950_v54, %v9950_v54  ;;  %v2139_v0 = vpack.c.bf16 %v9940_v50, %v9940_v50  ;;  %v2144_v48 = vpack.c.bf16 %v9970_v59, %v9970_v59  ;;  %v2147_v7 = vpack.c.bf16 %v9985_v62, %v9985_v62  ;;  %v8534_v54 = vld [vmem:[#allocation13 + $0x8] sm:$0xff]  }
 0x984   :  { %v2140_v49 = vpack.c.bf16 %v9945_v51, %v9945_v51  ;;  %v2148_v60 = vpack.c.bf16 %v9990_v1, %v9990_v1  ;;  %v10334_v47 = vunpack.c.l.b16 %v2137_v13  ;;  %v10336_v61 = vunpack.c.l.b16 %v2138_v23  ;;  %8235 = vmatpush3.bf16.msra.mxu1 %v8534_v54 }
 0x985   :  { %v2141_v50 = vpack.c.bf16 %v9955_v55, %v9955_v55  ;;  %v2149_v59 = vpack.c.bf16 %v9995_v11, %v9995_v11  ;;  %v10342_v44 = vunpack.c.l.b16 %v2136_v5  ;;  %v10344_v62 = vunpack.c.l.b16 %v2139_v0  ;;  %8246 = vmatprep.subr.bf16.mxu1 %v11778_v36 }
 0x986   :  { %v2142_v51 = vpack.c.bf16 %v9960_v57, %v9960_v57  ;;  %v2150_v1 = vpack.c.bf16 %v10000_v14, %v10000_v14  ;;  %v10350_v29 = vunpack.c.l.b16 %v2140_v49  ;;  %v10352_v40 = vunpack.c.l.b16 %v2144_v48 }
 0x987   :  { %v2143_v55 = vpack.c.bf16 %v9965_v58, %v9965_v58  ;;  %v2151_v11 = vpack.c.bf16 %v10014_v19, %v10014_v19  ;;  %v10358_v33 = vunpack.c.l.b16 %v2141_v50  ;;  %v10360_v10 = vunpack.c.l.b16 %v2145_v31 }
 0x988   :  { %v10363_v57 = vunpack.c.l.b16 %v2142_v51  ;;  %v10365_v14 = vunpack.c.l.b16 %v2146_v32  ;;  %v10367_v30 = vunpack.c.l.b16 %v2147_v7  ;;  %v10369_v2 = vunpack.c.l.b16 %v2148_v60 }
 0x989   :  { %v10371_v4 = vunpack.c.l.b16 %v2143_v55  ;;  %v10373_v58 = vunpack.c.l.b16 %v2149_v59  ;;  %v10375_v43 = vunpack.c.l.b16 %v2150_v1  ;;  %v10377_v19 = vunpack.c.l.b16 %v2151_v11 }
 0x98a   :  { %v2195_v16 = vrot.slane %v10334_v47, 7  ;;  %v2197_v46 = vrot.slane %v10336_v61, 6  ;;  %v2199_v20 = vrot.slane %v10344_v62, 5  ;;  %v2201_v9 = vrot.slane %v10350_v29, 4 }
 0x98b   :  { %11779 = vst [vmem:[#allocation68_spill] sm:$0xff] %v10377_v19  ;;  %v2203_v13 = vrot.slane %v10358_v33, 3  ;;  %v2205_v23 = vrot.slane %v10363_v57, 2  ;;  %v2207_v31 = vrot.slane %v10371_v4, 1  ;;  %v2209_v32 = vrot.slane %v10360_v10, 7 }
 0x98c   :  { %v2196_v5 = vsel %vm416_vm1, %v2195_v16, %v10342_v44  ;;  %v2211_v0 = vrot.slane %v10365_v14, 6  ;;  %v2213_v48 = vrot.slane %v10367_v30, 5  ;;  %v2215_v7 = vrot.slane %v10369_v2, 4 }
 0x98d   :  { %v2198_v49 = vsel %vm419_vm2, %v2197_v46, %v2196_v5  ;;  %v2210_v60 = vsel %vm416_vm1, %v2209_v32, %v10352_v40  ;;  %v2217_v54 = vrot.slane %v10373_v58, 3  ;;  %v2219_v50 = vrot.slane %v10375_v43, 2 }
 0x98e   :  { %v2200_v59 = vsel %vm422_vm3, %v2199_v20, %v2198_v49  ;;  %v2212_v51 = vsel %vm419_vm2, %v2211_v0, %v2210_v60  ;;  %v2221_v1 = vrot.slane %v10377_v19, 1  ;;  %v2619_v55 = vcombine.low %v10291_v41, %v10294_v12 }
 0x98f   :  { %v2202_v11 = vsel %vm425_vm4, %v2201_v9, %v2200_v59  ;;  %v2214_v16 = vsel %vm422_vm3, %v2213_v48, %v2212_v51  ;;  %v2635_v46 = vcombine.low %v10297_v24, %v10300_v18  ;;  %v2687_v32 = vcombine.low %v10303_v22, %v10306_v8 }
 0x990   :  { %v2204_v5 = vsel %vm428_vm5, %v2203_v13, %v2202_v11  ;;  %v2216_v20 = vsel %vm425_vm4, %v2215_v7, %v2214_v16  ;;  %v2627_v0 = vrot.slane %v2619_v55, %v9744_v63  ;;  %v2703_v49 = vcombine.low %v10309_v52, %v10314_v35 }
 0x991   :  { %v2206_v60 = vsel %vm431_vm6, %v2205_v23, %v2204_v5  ;;  %v2218_v9 = vsel %vm428_vm5, %v2217_v54, %v2216_v20  ;;  %v2643_v48 = vrot.slane %v2635_v46, %v9744_v63  ;;  %v2695_v59 = vrot.slane %v2687_v32, %v9744_v63 }
 0x992   :  { %v2208_v51 = vsel %vm434_vm7, %v2207_v31, %v2206_v60  ;;  %v2220_v19 = vsel %vm431_vm6, %v2219_v50, %v2218_v9  ;;  %v2711_v13 = vrot.slane %v2703_v49, %v9744_v63  ;;  %v2620_v7 = vcombine.high %v10291_v41, %v10294_v12  ;;  %v7892_v60 = vld [vmem:[#allocation16] ss:$0 sm:$0xff] }
 0x993   :  { %v2222_v55 = vsel %vm434_vm7, %v2221_v1, %v2220_v19  ;;  %v2651_v11 = vcombine.low %v2627_v0, %v2643_v48  ;;  %v2652_v16 = vcombine.high %v2627_v0, %v2643_v48  ;;  %v2636_v23 = vcombine.high %v10297_v24, %v10300_v18 }
 0x994   :  { %v2223_v54 = vpack.c.b16 %v2222_v55, %v2208_v51  ;;  %v2719_v46 = vcombine.low %v2695_v59, %v2711_v13  ;;  %v2720_v5 = vcombine.high %v2695_v59, %v2711_v13  ;;  %v2634_v32 = vrot.slane %v2620_v7, %v9744_v63  ;;  %v7900_v55 = vld [vmem:[#allocation19] ss:$0 sm:$0xff] }
 0x995   :  { %v2650_v31 = vrot.slane %v2636_v23, %v9744_v63  ;;  %v2688_v50 = vcombine.high %v10303_v22, %v10306_v8  ;;  %v2704_v41 = vcombine.high %v10309_v52, %v10314_v35 }
 0x996   :  { %8237 = vmatmul.mubr.msk.bf16.vlgmr.msra.gmra.mrb[28].mxu1 %vm449_vm8, %v2223_v54  ;;  %v2723_v12 = vpack.c.bf16 %v2719_v46, %v2651_v11  ;;  %v2724_v19 = vpack.c.bf16 %v2720_v5, %v2652_v16 }
 0x997   :  { %8248 = vmatprep.mubr.msk.bf16.mxu1 %vm9163_vm0, %v11778_v36  ;;  %v2653_v24 = vcombine.low %v2634_v32, %v2650_v31  ;;  %v2702_v18 = vrot.slane %v2688_v50, %v9744_v63  ;;  %v2718_v1 = vrot.slane %v2704_v41, %v9744_v63  ;;  %v2654_v20 = vcombine.high %v2634_v32, %v2650_v31 }
 0x998   :  { %v3027_v0 = vsel %vm1058_vm9, %v2723_v12, 0  ;;  %v3073_v22 = vsel %vm1058_vm9, %v2724_v19, 0 }
 0x999   :  { %8241 = vmatpush3.bf16.xpose.msra.mxu0 %v3027_v0  ;;  %8247 = vmatpush3.bf16.xpose.msra.mxu1 %v3073_v22  ;;  %v2721_v8 = vcombine.low %v2702_v18, %v2718_v1  ;;  %v2722_v52 = vcombine.high %v2702_v18, %v2718_v1 }
 0x99a   :  { %8252 = vmatprep.subr.bf16.mxu0 %v11778_v36  ;;  %8258 = vmatprep.subr.bf16.mxu1 %v11778_v36 }
 0x99b   :  { %v2725_v35 = vpack.c.bf16 %v2721_v8, %v2653_v24  ;;  %v2726_v49 = vpack.c.bf16 %v2722_v52, %v2654_v20 }
 0xa38   :  { %v1986_v9 = vpop.f32.mrb[24].mxu1 }
 0xa39   :  { %v1987_v48 = vadd.f32 %v7892_v60, %v1986_v9  ;;  %v8222_v59 = vpop.f32.mrb[25].mxu1 }
 0xa3a   :  { %v1989_v51 = vpop.f32.mrb[26].mxu1 }
 0xa3b   :  { %v2280_v13 = vmul.f32 0.35355338, %v1987_v48  ;;  %v8223_v7 = vpop.f32.mrb[27].mxu1 }
 0xa3d   :  { %2285 = vrot.lane.b32.xlu1 %v2280_v13, %s9167_s8  ;;  %2282 = vrot.lane.b32.xlu0 %v2280_v13, %s9165_s25 }
 0xa41   :  { %2288 = vrot.lane.b32.xlu0 %v2280_v13, %s9164_s16 }
 0xa69   :  { %v2273_v11 = vpop.f32.mrb[28].mxu1 }
 0xa6a   :  { %v10443_v16 = vadd.f32 %v7900_v55, %v2273_v11  ;;  %v8238_v23 = vpop.f32.mrb[29].mxu1 }
 0xa6b   :  { %v2276_v54 = vpop.f32.mrb[30].mxu1 }
 0xa6c   :  { %v10445_v46 = vadd.f32 %v7900_v55, %v2276_v54  ;;  %v8239_v5 = vpop.f32.mrb[31].mxu1  ;;  %2729 = vrot.lane.b32.xlu0 %v10443_v16, %s9165_s25 }
 0xa6e   :  { %2731 = vrot.lane.b32.xlu1 %v10445_v46, %s9165_s25 }
 0xaaf   :  { %v2286_v32 = vpop.permute.xlu1 %2285  ;;  %v2283_v31 = vpop.permute.xlu0 %2282 }
 0xab0   :  { %v2291_v50 = vcombine.low %v2280_v13, %v2286_v32  ;;  %v2292_v41 = vcombine.high %v2280_v13, %v2286_v32 }
 0xab2   :  { %v2299_v18 = vrot.slane %v2291_v50, %v9742_v56  ;;  %v2306_v1 = vrot.slane %v2292_v41, %v9742_v56 }
 0xab3   :  { %v2289_v12 = vpop.permute.xlu0 %2288 }
 0xab4   :  { %v2307_v19 = vcombine.low %v2283_v31, %v2289_v12  ;;  %v2308_v24 = vcombine.high %v2283_v31, %v2289_v12 }
 0xab6   :  { %v2315_v20 = vrot.slane %v2307_v19, %v9742_v56  ;;  %v2322_v0 = vrot.slane %v2308_v24, %v9742_v56 }
 0xab8   :  { %v2323_v22 = vcombine.low %v2299_v18, %v2315_v20  ;;  %v2324_v8 = vcombine.high %v2299_v18, %v2315_v20  ;;  %v2339_v52 = vcombine.low %v2306_v1, %v2322_v0  ;;  %v2340_v60 = vcombine.high %v2306_v1, %v2322_v0 }
 0xaba   :  { %v2331_v9 = vrot.slane %v2323_v22, %v9744_v63  ;;  %v2338_v48 = vrot.slane %v2324_v8, %v9744_v63  ;;  %v2347_v59 = vrot.slane %v2339_v52, %v9744_v63  ;;  %v2354_v51 = vrot.slane %v2340_v60, %v9744_v63 }
 0xabb   :  { %v3119_v52 = vsel %vm1058_vm9, %v2725_v35, 0  ;;  %v3165_v60 = vsel %vm1058_vm9, %v2726_v49, 0 }
 0xabc   :  { %v2359_v13 = vcombine.low %v2331_v9, %v2338_v48  ;;  %v7904_v7 = vcombine.high %v2331_v9, %v2338_v48  ;;  %v2375_v55 = vcombine.low %v2347_v59, %v2354_v51  ;;  %v7905_v11 = vcombine.high %v2347_v59, %v2354_v51 }
 0xabe   :  { %v2366_v23 = vrot.slane %v2359_v13, %v9742_v56  ;;  %v2374_v54 = vrot.slane %v7904_v7, %v9742_v56  ;;  %v2382_v5 = vrot.slane %v2375_v55, %v9742_v56  ;;  %v2390_v32 = vrot.slane %v7905_v11, %v9742_v56 }
 0xac0   :  { %v2391_v31 = vcombine.low %v2366_v23, %v2374_v54  ;;  %v2407_v50 = vcombine.low %v2382_v5, %v2390_v32  ;;  %v2392_v41 = vcombine.high %v2366_v23, %v2374_v54  ;;  %v2408_v12 = vcombine.high %v2382_v5, %v2390_v32 }
 0xac2   :  { %v2399_v19 = vrot.slane %v2391_v31, %v9744_v63  ;;  %v2415_v24 = vrot.slane %v2407_v50, %v9744_v63  ;;  %v2406_v22 = vrot.slane %v2392_v41, %v9744_v63  ;;  %v2422_v8 = vrot.slane %v2408_v12, %v9744_v63 }
 0xac4   :  { %v2423_v18 = vcombine.low %v2399_v19, %v2415_v24  ;;  %v2424_v1 = vcombine.high %v2399_v19, %v2415_v24  ;;  %v2425_v9 = vcombine.low %v2406_v22, %v2422_v8  ;;  %v2426_v48 = vcombine.high %v2406_v22, %v2422_v8 }
 0xac6   :  { %v2427_v20 = vpack.c.bf16 %v2423_v18, %v2423_v18  ;;  %v2428_v0 = vpack.c.bf16 %v2424_v1, %v2424_v1  ;;  %v2429_v59 = vpack.c.bf16 %v2425_v9, %v2425_v9  ;;  %v2430_v51 = vpack.c.bf16 %v2426_v48, %v2426_v48 }
 0xac8   :  { %8243 = vmatmul.mubr.msk.bf16.vlgmr.msra.gmra.mrb[24].mxu0 %vm1058_vm9, %v2427_v20  ;;  %8249 = vmatmul.mubr.msk.bf16.vlgmr.msra.gmra.mrb[32].mxu1 %vm1058_vm9, %v2428_v0 }
 0xac9   :  { %8253 = vmatpush3.bf16.xpose.msra.mxu0 %v3119_v52  ;;  %8259 = vmatpush3.bf16.xpose.msra.mxu1 %v3165_v60 }
 0xaca   :  { %8254 = vmatprep.mubr.msk.bf16.mxu0 %vm9163_vm0, %v11778_v36  ;;  %8260 = vmatprep.mubr.msk.bf16.mxu1 %vm9163_vm0, %v11778_v36 }
 0xacb   :  { %8264 = vmatprep.subr.bf16.mxu0 %v11778_v36  ;;  %8270 = vmatprep.subr.bf16.mxu1 %v11778_v36 }
 0xad0   :  { %8255 = vmatmul.mubr.msk.bf16.vlgmr.msra.gmra.mrb[28].mxu0 %vm1058_vm9, %v2429_v59  ;;  %8261 = vmatmul.mubr.msk.bf16.vlgmr.msra.gmra.mrb[36].mxu1 %vm1058_vm9, %v2430_v51 }
 0xad1   :  { %8266 = vmatprep.mubr.msk.bf16.mxu0 %vm9163_vm0, %v11778_v36  ;;  %8272 = vmatprep.mubr.msk.bf16.mxu1 %vm9163_vm0, %v11778_v36 }
 0xade   :  { %v2730_v22 = vpop.permute.xlu0 %2729 }
 0xae0   :  { %v2732_v8 = vpop.permute.xlu1 %2731 }
 0xb9b   :  { %v3063_v35 = vpop.f32.mrb[24].mxu0  ;;  %v3109_v49 = vpop.f32.mrb[32].mxu1 }
 0xb9c   :  { %v8244_v13 = vpop.f32.mrb[25].mxu0  ;;  %v8250_v7 = vpop.f32.mrb[33].mxu1  ;;  %v3207_v55 = vsel %vm1625_vm11, %v3063_v35, -inf  ;;  %v3210_v11 = vsel %vm1625_vm11, %v3109_v49, -inf }
 0xb9d   :  { %v3066_v23 = vpop.f32.mrb[26].mxu0  ;;  %3208 = vmax.xlane.f32.xlu1 %v3207_v55  ;;  %3211 = vmax.xlane.f32.xlu0 %v3210_v11  ;;  %v3112_v54 = vpop.f32.mrb[34].mxu1 }
 0xb9e   :  { %v8245_v5 = vpop.f32.mrb[27].mxu0  ;;  %v8251_v32 = vpop.f32.mrb[35].mxu1 }
 0xba3   :  { %v3155_v31 = vpop.f32.mrb[28].mxu0  ;;  %v3201_v50 = vpop.f32.mrb[36].mxu1 }
 0xba4   :  { %v8256_v41 = vpop.f32.mrb[29].mxu0  ;;  %v8262_v12 = vpop.f32.mrb[37].mxu1  ;;  %v3213_v19 = vsel %vm1625_vm11, %v3155_v31, -inf  ;;  %v3216_v24 = vsel %vm1625_vm11, %v3201_v50, -inf }
 0xba5   :  { %v3158_v18 = vpop.f32.mrb[30].mxu0  ;;  %3214 = vmax.xlane.f32.xlu0 %v3213_v19  ;;  %3217 = vmax.xlane.f32.xlu1 %v3216_v24  ;;  %v3204_v1 = vpop.f32.mrb[38].mxu1 }
 0xba6   :  { %v8257_v20 = vpop.f32.mrb[31].mxu0  ;;  %v8263_v0 = vpop.f32.mrb[39].mxu1 }
 0xbb6   :  { %2735 = vrot.lane.b32.xlu1 %v10443_v16, %s9167_s8 }
 0xbbb   :  { %2737 = vrot.lane.b32.xlu0 %v10445_v46, %s9167_s8 }
 0xc2a   :  { %v3209_v52 = vpop.xlane.xlu1 %3208  ;;  %v3212_v60 = vpop.xlane.xlu0 %3211 }
 0xc2b   :  { %v3219_v9 = vsub.f32 %v3063_v35, %v3209_v52  ;;  %v3220_v48 = vsub.f32 %v3109_v49, %v3212_v60 }
 0xc2d   :  { %v3223_v59 = vmul.f32 1.442695, %v3219_v9  ;;  %v3225_v51 = vmul.f32 1.442695, %v3220_v48 }
 0xc2f   :  { %8581 = vpow2.f32 %v3223_v59 }
 0xc30   :  { %8583 = vpow2.f32 %v3225_v51 }
 0xc32   :  { %v3218_v35 = vpop.xlane.xlu1 %3217  ;;  %v3215_v49 = vpop.xlane.xlu0 %3214 }
 0xc33   :  { %v3222_v23 = vsub.f32 %v3201_v50, %v3218_v35  ;;  %v3221_v54 = vsub.f32 %v3155_v31, %v3215_v49 }
 0xc35   :  { %v3229_v5 = vmul.f32 1.442695, %v3222_v23  ;;  %v3227_v32 = vmul.f32 1.442695, %v3221_v54 }
 0xc36   :  { %v2738_v18 = vpop.permute.xlu0 %2737  ;;  %v2736_v1 = vpop.permute.xlu1 %2735 }
 0xc37   :  { %8585 = vpow2.f32 %v3229_v5  ;;  %v2815_v20 = vcombine.low %v10445_v46, %v2738_v18  ;;  %v2816_v0 = vcombine.high %v10445_v46, %v2738_v18  ;;  %v2747_v52 = vcombine.low %v10443_v16, %v2736_v1 }
 0xc38   :  { %8587 = vpow2.f32 %v3227_v32  ;;  %v2748_v60 = vcombine.high %v10443_v16, %v2736_v1 }
 0xc39   :  { %v10491_v13 = vpop.eup %8581  ;;  %v2823_v35 = vrot.slane %v2815_v20, %v9742_v56  ;;  %v2830_v49 = vrot.slane %v2816_v0, %v9742_v56 }
 0xc3a   :  { %v10493_v7 = vpop.eup %8583  ;;  %v3231_v55 = vsel %vm1625_vm11, %v10491_v13, 0.0  ;;  %v2762_v5 = vrot.slane %v2748_v60, %v9742_v56 }
 0xc3b   :  { %3232 = vadd.xlane.f32.xlu0 %v3231_v55  ;;  %v3234_v11 = vsel %vm1625_vm11, %v10493_v7, 0.0 }
 0xc3c   :  { %3235 = vadd.xlane.f32.xlu1 %v3234_v11 }
 0xc41   :  { %v10503_v41 = vpop.eup %8585 }
 0xc42   :  { %v10505_v12 = vpop.eup %8587  ;;  %v3240_v19 = vsel %vm1625_vm11, %v10503_v41, 0.0 }
 0xc43   :  { %v3237_v24 = vsel %vm1625_vm11, %v10505_v12, 0.0 }
 0xc4d   :  { %2741 = vrot.lane.b32.xlu1 %v10443_v16, %s9164_s16 }
 0xc51   :  { %2743 = vrot.lane.b32.xlu0 %v10445_v46, %s9164_s16  ;;  %v2755_v46 = vrot.slane %v2747_v52, %v9742_v56 }
 0xc70   :  { %3241 = vadd.xlane.f32.xlu0 %v3240_v19 }
 0xc71   :  { %3238 = vadd.xlane.f32.xlu1 %v3237_v24 }
 0xcc8   :  { %v3233_v50 = vpop.xlane.xlu0 %3232 }
 0xcc9   :  { %v3236_v31 = vpop.xlane.xlu1 %3235  ;;  %8589 = vrcp.f32 %v3233_v50 }
 0xcca   :  { %8591 = vrcp.f32 %v3236_v31 }
 0xccc   :  { %v2744_v9 = vpop.permute.xlu0 %2743 }
 0xccd   :  { %v2831_v48 = vcombine.low %v2732_v8, %v2744_v9  ;;  %v2832_v59 = vcombine.high %v2732_v8, %v2744_v9  ;;  %v2742_v51 = vpop.permute.xlu1 %2741 }
 0xcce   :  { %v2763_v55 = vcombine.low %v2730_v22, %v2742_v51  ;;  %v2764_v11 = vcombine.high %v2730_v22, %v2742_v51 }
 0xccf   :  { %v2839_v23 = vrot.slane %v2831_v48, %v9742_v56  ;;  %v2846_v54 = vrot.slane %v2832_v59, %v9742_v56 }
 0xcd0   :  { %v2771_v16 = vrot.slane %v2763_v55, %v9742_v56  ;;  %v2778_v32 = vrot.slane %v2764_v11, %v9742_v56 }
 0xcd1   :  { %v2847_v8 = vcombine.low %v2823_v35, %v2839_v23  ;;  %v2848_v19 = vcombine.high %v2823_v35, %v2839_v23  ;;  %v2863_v24 = vcombine.low %v2830_v49, %v2846_v54  ;;  %v2864_v22 = vcombine.high %v2830_v49, %v2846_v54 }
 0xcd2   :  { %v2779_v18 = vcombine.low %v2755_v46, %v2771_v16  ;;  %v2780_v1 = vcombine.high %v2755_v46, %v2771_v16  ;;  %v2795_v20 = vcombine.low %v2762_v5, %v2778_v32  ;;  %v2796_v0 = vcombine.high %v2762_v5, %v2778_v32 }
 0xcd3   :  { %v2855_v9 = vrot.slane %v2847_v8, %v9744_v63  ;;  %v2862_v48 = vrot.slane %v2848_v19, %v9744_v63  ;;  %v2871_v52 = vrot.slane %v2863_v24, %v9744_v63  ;;  %v2878_v60 = vrot.slane %v2864_v22, %v9744_v63 }
 0xcd4   :  { %v2787_v59 = vrot.slane %v2779_v18, %v9744_v63  ;;  %v2794_v51 = vrot.slane %v2780_v1, %v9744_v63  ;;  %v2803_v55 = vrot.slane %v2795_v20, %v9744_v63  ;;  %v2810_v54 = vrot.slane %v2796_v0, %v9744_v63 }
 0xcd5   :  { %v2951_v11 = vcombine.low %v2855_v9, %v2862_v48  ;;  %v7912_v35 = vcombine.high %v2855_v9, %v2862_v48  ;;  %v2967_v49 = vcombine.low %v2871_v52, %v2878_v60  ;;  %v7913_v23 = vcombine.high %v2871_v52, %v2878_v60 }
 0xcd6   :  { %v2883_v46 = vcombine.low %v2787_v59, %v2794_v51  ;;  %v7910_v5 = vcombine.high %v2787_v59, %v2794_v51  ;;  %v2899_v24 = vcombine.low %v2803_v55, %v2810_v54  ;;  %v7911_v22 = vcombine.high %v2803_v55, %v2810_v54 }
 0xcd7   :  { %v2958_v16 = vrot.slane %v2951_v11, %v9742_v56  ;;  %v2966_v32 = vrot.slane %v7912_v35, %v9742_v56  ;;  %v2974_v50 = vrot.slane %v2967_v49, %v9742_v56  ;;  %v2982_v8 = vrot.slane %v7913_v23, %v9742_v56  ;;  %v8590_v23 = vpop.eup %8589 }
 0xcd8   :  { %v2890_v19 = vrot.slane %v2883_v46, %v9742_v56  ;;  %v2898_v31 = vrot.slane %v7910_v5, %v9742_v56  ;;  %v2906_v20 = vrot.slane %v2899_v24, %v9742_v56  ;;  %v2914_v52 = vrot.slane %v7911_v22, %v9742_v56  ;;  %v8592_v5 = vpop.eup %8591 }
 0xcd9   :  { %v2983_v18 = vcombine.low %v2958_v16, %v2966_v32  ;;  %v2984_v1 = vcombine.high %v2958_v16, %v2966_v32  ;;  %v2999_v9 = vcombine.low %v2974_v50, %v2982_v8  ;;  %v3000_v59 = vcombine.high %v2974_v50, %v2982_v8 }
 0xcda   :  { %v2915_v0 = vcombine.low %v2890_v19, %v2898_v31  ;;  %v2916_v48 = vcombine.high %v2890_v19, %v2898_v31  ;;  %v2931_v35 = vcombine.low %v2906_v20, %v2914_v52  ;;  %v2932_v49 = vcombine.high %v2906_v20, %v2914_v52 }
 0xcdb   :  { %v2991_v60 = vrot.slane %v2983_v18, %v9744_v63  ;;  %v3007_v51 = vrot.slane %v2999_v9, %v9744_v63  ;;  %v2998_v54 = vrot.slane %v2984_v1, %v9744_v63  ;;  %v3014_v46 = vrot.slane %v3000_v59, %v9744_v63 }
 0xcdc   :  { %v2923_v11 = vrot.slane %v2915_v0, %v9744_v63  ;;  %v2930_v55 = vrot.slane %v2916_v48, %v9744_v63  ;;  %v2939_v16 = vrot.slane %v2931_v35, %v9744_v63  ;;  %v2946_v50 = vrot.slane %v2932_v49, %v9744_v63 }
 0xcdd   :  { %v3015_v32 = vcombine.low %v2991_v60, %v3007_v51  ;;  %v3016_v19 = vcombine.high %v2991_v60, %v3007_v51  ;;  %v3247_v24 = vmul.f32 %v8590_v23, %v10491_v13  ;;  %v3248_v22 = vmul.f32 %v8592_v5, %v10493_v7 }
 0xcde   :  { %v2947_v8 = vcombine.low %v2923_v11, %v2939_v16  ;;  %v2948_v31 = vcombine.high %v2923_v11, %v2939_v16  ;;  %v3017_v18 = vcombine.low %v2998_v54, %v3014_v46  ;;  %v3018_v20 = vcombine.high %v2998_v54, %v3014_v46 }
 0xcdf   :  { %v2949_v1 = vcombine.low %v2930_v55, %v2946_v50  ;;  %v2950_v48 = vcombine.high %v2930_v55, %v2946_v50  ;;  %v3251_v52 = vpack.c.bf16 %v3247_v24, %v3247_v24  ;;  %v3252_v59 = vpack.c.bf16 %v3248_v22, %v3248_v22 }
 0xce0   :  { %v3019_v0 = vpack.c.bf16 %v3015_v32, %v2947_v8  ;;  %v3020_v9 = vpack.c.bf16 %v3016_v19, %v2948_v31 }
 0xce1   :  { %v3021_v60 = vpack.c.bf16 %v3017_v18, %v2949_v1  ;;  %v3022_v51 = vpack.c.bf16 %v3018_v20, %v2950_v48 }
 0xce2   :  { %8265 = vmatpush3.bf16.msra.mxu0 %v3019_v0  ;;  %8271 = vmatpush3.bf16.msra.mxu1 %v3020_v9 }
 0xce3   :  { %8276 = vmatprep.subr.bf16.mxu0 %v11778_v36  ;;  %8282 = vmatprep.subr.bf16.mxu1 %v11778_v36 }
 0xce5   :  { %8267 = vmatmul.mubr.msk.bf16.vlgmr.msra.gmra.mrb[32].mxu0 %vm1625_vm11, %v3251_v52  ;;  %8273 = vmatmul.mubr.msk.bf16.vlgmr.msra.gmra.mrb[40].mxu1 %vm1625_vm11, %v3252_v59 }
 0xce6   :  { %8277 = vmatpush3.bf16.msra.mxu0 %v3021_v60  ;;  %8283 = vmatpush3.bf16.msra.mxu1 %v3022_v51 }
 0xce7   :  { %8278 = vmatprep.mubr.msk.bf16.mxu0 %vm9163_vm0, %v11778_v36  ;;  %8284 = vmatprep.mubr.msk.bf16.mxu1 %vm9163_vm0, %v11778_v36 }
 0xce8   :  { %8288 = vmatprep.subr.bf16.mxu0 %v11778_v36  ;;  %8296 = vmatprep.subr.bf16.mxu1 %v11778_v36 }
 0xcfd   :  { %v3242_v13 = vpop.xlane.xlu0 %3241 }
 0xcfe   :  { %8593 = vrcp.f32 %v3242_v13  ;;  %v3239_v7 = vpop.xlane.xlu1 %3238 }
 0xcff   :  { %8595 = vrcp.f32 %v3239_v7 }
 0xd08   :  { %v8594_v11 = vpop.eup %8593 }
 0xd09   :  { %v8596_v35 = vpop.eup %8595  ;;  %v3250_v49 = vmul.f32 %v8594_v11, %v10503_v41 }
 0xd0a   :  { %v3249_v23 = vmul.f32 %v8596_v35, %v10505_v12 }
 0xd0b   :  { %v3254_v55 = vpack.c.bf16 %v3250_v49, %v3250_v49 }
 0xd0c   :  { %v3253_v54 = vpack.c.bf16 %v3249_v23, %v3249_v23 }
 0xd0d   :  { %8285 = vmatmul.mubr.msk.bf16.vlgmr.msra.gmra.mrb[44].mxu1 %vm1625_vm11, %v3254_v55  ;;  %v8535_v55 = vld [vmem:[#allocation14] sm:$0xff]  }
 0xd0e   :  { %8279 = vmatmul.mubr.msk.bf16.vlgmr.msra.gmra.mrb[36].mxu0 %vm1625_vm11, %v3253_v54  ;;  %8300 = vmatprep.mubr.msk.bf16.mxu1 %vm9163_vm0, %v11778_v36 }
 0xd0f   :  { %8292 = vmatprep.mubr.msk.bf16.mxu0 %vm9163_vm0, %v11778_v36  ;;  %8289 = vmatpush3.bf16.msra.mxu0 %v8535_v55 }
 0xd10   :  { %8290 = vmatprep.subr.bf16.mxu0 %v11778_v36 }
 0xdb8   :  { %v3292_v46 = vpop.f32.mrb[32].mxu0  ;;  %v3335_v5 = vpop.f32.mrb[40].mxu1 }
 0xdb9   :  { %v8268_v16 = vpop.f32.mrb[33].mxu0  ;;  %v8274_v32 = vpop.f32.mrb[41].mxu1 }
 0xdba   :  { %v3295_v19 = vpop.f32.mrb[34].mxu0  ;;  %v3338_v41 = vpop.f32.mrb[42].mxu1 }
 0xdbb   :  { %v8269_v50 = vpop.f32.mrb[35].mxu0  ;;  %v8275_v12 = vpop.f32.mrb[43].mxu1 }
 0xde0   :  { %v3421_v8 = vpop.f32.mrb[44].mxu1 }
 0xde1   :  { %v3378_v31 = vpop.f32.mrb[36].mxu0  ;;  %v3443_v24 = vcombine.low %v3335_v5, %v3421_v8  ;;  %v3444_v22 = vcombine.high %v3335_v5, %v3421_v8  ;;  %v8286_v18 = vpop.f32.mrb[45].mxu1 }
 0xde2   :  { %v3427_v20 = vcombine.low %v3292_v46, %v3378_v31  ;;  %v3428_v0 = vcombine.high %v3292_v46, %v3378_v31  ;;  %v8280_v9 = vpop.f32.mrb[37].mxu0  ;;  %v3424_v1 = vpop.f32.mrb[46].mxu1 }
 0xde3   :  { %v3451_v48 = vrot.slane %v3443_v24, %v9742_v56  ;;  %v3458_v52 = vrot.slane %v3444_v22, %v9742_v56  ;;  %v3381_v59 = vpop.f32.mrb[38].mxu0  ;;  %v8287_v60 = vpop.f32.mrb[47].mxu1  ;;  %v8536_v22 = vld [vmem:[#allocation14 + $0x8] sm:$0xff]  }
 0xde4   :  { %v3435_v51 = vrot.slane %v3427_v20, %v9742_v56  ;;  %v3442_v13 = vrot.slane %v3428_v0, %v9742_v56  ;;  %v8281_v7 = vpop.f32.mrb[39].mxu0  ;;  %8291 = vmatpush3.bf16.msra.mxu0 %v8536_v22 }
 0xde5   :  { %8304 = vmatprep.subr.bf16.mxu0 %v11778_v36 }
 0xde6   :  { %v3459_v11 = vcombine.low %v3435_v51, %v3451_v48  ;;  %v3460_v35 = vcombine.high %v3435_v51, %v3451_v48  ;;  %v3475_v49 = vcombine.low %v3442_v13, %v3458_v52  ;;  %v3476_v23 = vcombine.high %v3442_v13, %v3458_v52 }
 0xde8   :  { %v3467_v54 = vrot.slane %v3459_v11, %v9744_v63  ;;  %v3474_v46 = vrot.slane %v3460_v35, %v9744_v63  ;;  %v3483_v5 = vrot.slane %v3475_v49, %v9744_v63  ;;  %v3490_v16 = vrot.slane %v3476_v23, %v9744_v63 }
 0xdea   :  { %v3495_v32 = vcombine.low %v3467_v54, %v3474_v46  ;;  %v7922_v19 = vcombine.high %v3467_v54, %v3474_v46  ;;  %v3511_v41 = vcombine.low %v3483_v5, %v3490_v16  ;;  %v7923_v50 = vcombine.high %v3483_v5, %v3490_v16  ;;  %v7924_v5 = vld [vmem:[#allocation20] ss:$0 sm:$0xff] }
 0xdec   :  { %v3502_v12 = vrot.slane %v3495_v32, %v9742_v56  ;;  %v3510_v8 = vrot.slane %v7922_v19, %v9742_v56  ;;  %v3518_v31 = vrot.slane %v3511_v41, %v9742_v56  ;;  %v3526_v24 = vrot.slane %v7923_v50, %v9742_v56 }
 0xdee   :  { %v3528_v18 = vcombine.high %v3502_v12, %v3510_v8  ;;  %v3544_v20 = vcombine.high %v3518_v31, %v3526_v24  ;;  %v3527_v0 = vcombine.low %v3502_v12, %v3510_v8  ;;  %v3543_v9 = vcombine.low %v3518_v31, %v3526_v24 }
 0xdf0   :  { %v3542_v1 = vrot.slane %v3528_v18, %v9744_v63  ;;  %v3558_v48 = vrot.slane %v3544_v20, %v9744_v63  ;;  %v3535_v52 = vrot.slane %v3527_v0, %v9744_v63  ;;  %v3551_v59 = vrot.slane %v3543_v9, %v9744_v63 }
 0xdf2   :  { %v3561_v60 = vcombine.low %v3542_v1, %v3558_v48  ;;  %v3560_v51 = vcombine.high %v3535_v52, %v3551_v59  ;;  %v3562_v13 = vcombine.high %v3542_v1, %v3558_v48  ;;  %v3559_v7 = vcombine.low %v3535_v52, %v3551_v59 }
 0xdf4   :  { %3568 = vrot.lane.b32.xlu1 %v3561_v60, %s9170_s14  ;;  %3564 = vrot.lane.b32.xlu0 %v3560_v51, %s9171_s1 }
 0xdf8   :  { %3572 = vrot.lane.b32.xlu1 %v3562_v13, %s9172_s15 }
 0xe66   :  { %v3569_v11 = vpop.permute.xlu1 %3568  ;;  %v3565_v35 = vpop.permute.xlu0 %3564 }
 0xe67   :  { %v3575_v49 = vsel %vm1058_vm9, %v3559_v7, %v3565_v35 }
 0xe68   :  { %v3576_v55 = vsel %vm1625_vm11, %v3575_v49, %v3569_v11 }
 0xe6a   :  { %v3573_v23 = vpop.permute.xlu1 %3572 }
 0xe6b   :  { %v3577_v54 = vsel %vm1627_vm12, %v3576_v55, %v3573_v23 }
 0xe6c   :  { %v3578_v46 = vpack.c.bf16 %v3577_v54, %v3577_v54 }
 0xe6e   :  { %8293 = vmatmul.mubr.msk.bf16.vlgmr.msra.gmra.mrb[40].mxu0 %vm449_vm8, %v3578_v46 }
 0xe6f   :  { %8312 = vmatprep.mubr.msk.bf16.mxu0 %vm9163_vm0, %v11778_v36 }
 0xf41   :  { %v3639_v16 = vpop.f32.mrb[40].mxu0 }
 0xf42   :  { %v3640_v32 = vadd.f32 %v7924_v5, %v3639_v16  ;;  %v8294_v19 = vpop.f32.mrb[41].mxu0 }
 0xf43   :  { %v3642_v41 = vpop.f32.mrb[42].mxu0 }
 0xf44   :  { %v8295_v50 = vpop.f32.mrb[43].mxu0  ;;  %v3646_v12 = vrot.slane %v3640_v32, 1  ;;  %v3647_v8 = vrot.slane %v3640_v32, 2  ;;  %v3648_v31 = vrot.slane %v3640_v32, 3  ;;  %v3649_v24 = vrot.slane %v3640_v32, 4 }
 0xf45   :  { %v3650_v22 = vrot.slane %v3640_v32, 5  ;;  %v3651_v18 = vrot.slane %v3640_v32, 6  ;;  %v3652_v20 = vrot.slane %v3640_v32, 7  ;;  %v3661_v52 = vadd.f32 %v3640_v32, %v10211_v17 }
 0xf46   :  { %v3662_v0 = vadd.f32 %v3646_v12, %v10213_v45  ;;  %v3663_v9 = vadd.f32 %v3647_v8, %v10215_v3  ;;  %v3664_v1 = vadd.f32 %v3648_v31, %v10217_v15  ;;  %v3665_v48 = vadd.f32 %v3649_v24, %v10219_v21 }
 0xf47   :  { %v3666_v59 = vadd.f32 %v3650_v22, %v10221_v42  ;;  %v3667_v13 = vadd.f32 %v3651_v18, %v10223_v6  ;;  %v3668_v7 = vadd.f32 %v3652_v20, %v10225_v27 }
 0xf48   :  { %v3679_v60 = vrot.slane %v3662_v0, 7  ;;  %v3681_v51 = vrot.slane %v3663_v9, 6  ;;  %v3683_v35 = vrot.slane %v3664_v1, 5  ;;  %v3685_v3 = vrot.slane %v3665_v48, 4 }
 0xf49   :  { %v3687_v49 = vrot.slane %v3666_v59, 3  ;;  %v3689_v17 = vrot.slane %v3667_v13, 2  ;;  %v3691_v23 = vrot.slane %v3668_v7, 1 }
 0xf4a   :  { %v3680_v11 = vsel %vm416_vm1, %v3679_v60, %v3661_v52 }
 0xf4b   :  { %v3682_v45 = vsel %vm419_vm2, %v3681_v51, %v3680_v11 }
 0xf4c   :  { %v3684_v15 = vsel %vm422_vm3, %v3683_v35, %v3682_v45 }
 0xf4d   :  { %v3686_v21 = vsel %vm425_vm4, %v3685_v3, %v3684_v15 }
 0xf4e   :  { %v3688_v42 = vsel %vm428_vm5, %v3687_v49, %v3686_v21 }
 0xf4f   :  { %v3690_v55 = vsel %vm431_vm6, %v3689_v17, %v3688_v42 }
 0xf50   :  { %v3692_v6 = vsel %vm434_vm7, %v3691_v23, %v3690_v55 }
 0xf51   :  { %v3694_v27 = vsel %vm449_vm8, %v3692_v6, 0.0 }
 0xf52   :  { %3695 = vadd.xlane.f32.xlu0 %v3694_v27 }
 0xfdf   :  { %v3696_v54 = vpop.xlane.xlu0 %3695 }
 0xfe0   :  { %v3697_v46 = vmul.f32 0.03125, %v3696_v54 }
 0xfe2   :  { %v3699_v5 = vrot.slane %v3697_v46, 1  ;;  %v3700_v16 = vrot.slane %v3697_v46, 2  ;;  %v3701_v32 = vrot.slane %v3697_v46, 3  ;;  %v3702_v19 = vrot.slane %v3697_v46, 4 }
 0xfe3   :  { %v3703_v41 = vrot.slane %v3697_v46, 5  ;;  %v3704_v50 = vrot.slane %v3697_v46, 6  ;;  %v3705_v12 = vrot.slane %v3697_v46, 7  ;;  %v10610_v8 = vsub.f32 %v3661_v52, %v3697_v46 }
 0xfe4   :  { %v10612_v31 = vsub.f32 %v3662_v0, %v3699_v5  ;;  %v10614_v24 = vsub.f32 %v3663_v9, %v3700_v16  ;;  %v10616_v22 = vsub.f32 %v3664_v1, %v3701_v32  ;;  %v10618_v18 = vsub.f32 %v3665_v48, %v3702_v19  ;;  %v8537_v5 = vld [vmem:[#allocation25] sm:$0xff]   ;;  %v8538_v16 = vld [vmem:[#allocation25 + $0x8] sm:$0xff]  }
 0xfe5   :  { %v10620_v20 = vsub.f32 %v3666_v59, %v3703_v41  ;;  %v10622_v60 = vsub.f32 %v3667_v13, %v3704_v50  ;;  %v10624_v51 = vsub.f32 %v3668_v7, %v3705_v12  ;;  %v3722_v1 = vmul.f32 %v10610_v8, %v10610_v8  ;;  %8297 = vmatpush3.bf16.msra.mxu1 %v8537_v5  ;;  %v11780_v12 = vld [vmem:[#allocation45_spill] sm:$0xff] }
 0xfe6   :  { %v3723_v11 = vmul.f32 %v10612_v31, %v10612_v31  ;;  %v3724_v52 = vmul.f32 %v10614_v24, %v10614_v24  ;;  %v3725_v0 = vmul.f32 %v10616_v22, %v10616_v22  ;;  %v3726_v9 = vmul.f32 %v10618_v18, %v10618_v18  ;;  %8298 = vmatprep.subr.bf16.mxu1 %v11778_v36 }
 0xfe7   :  { %v3727_v48 = vmul.f32 %v10620_v20, %v10620_v20  ;;  %v3728_v7 = vmul.f32 %v10622_v60, %v10622_v60  ;;  %v3729_v35 = vmul.f32 %v10624_v51, %v10624_v51  ;;  %v4178_v32 = vrot.slane %v9637_v34, 1 }
 0xfe8   :  { %v3738_v59 = vrot.slane %v3723_v11, 7  ;;  %v3740_v13 = vrot.slane %v3724_v52, 6  ;;  %v3742_v3 = vrot.slane %v3725_v0, 5  ;;  %v3744_v49 = vrot.slane %v3726_v9, 4  ;;  %v11781_v52 = vld [vmem:[#allocation44_spill] sm:$0xff]  ;;  %v11782_v9 = vld [vmem:[#allocation46_spill] sm:$0xff] }
 0xfe9   :  { %v3746_v17 = vrot.slane %v3727_v48, 3  ;;  %v3748_v23 = vrot.slane %v3728_v7, 2  ;;  %v3750_v6 = vrot.slane %v3729_v35, 1  ;;  %8299 = vmatpush3.bf16.msra.mxu1 %v8538_v16  ;;  %v4180_v19 = vrot.slane %v9641_v37, 7  ;;  %v8541_v35 = vld [vmem:[%s11784_s6] sm:$0xff]  }
 0xfea   :  { %v3739_v45 = vsel %vm416_vm1, %v3738_v59, %v3722_v1  ;;  %8316 = vmatprep.subr.bf16.mxu1 %v11778_v36  ;;  %v4182_v41 = vrot.slane %v9643_v38, 6  ;;  %v4184_v50 = vrot.slane %v9645_v39, 5  ;;  %v4186_v11 = vrot.slane %v11780_v12, 4  ;;  %v11783_v59 = vld [vmem:[#allocation47_spill] sm:$0xff]  ;;  %8305 = vmatpush3.bf16.msra.mxu0 %v8541_v35  ;;  %v7929_v16 = vld [vmem:[#allocation23] ss:$0 sm:$0xff] }
 0xfeb   :  { %v3741_v15 = vsel %vm419_vm2, %v3740_v13, %v3739_v45  ;;  %v4179_v0 = vsel %vm416_vm1, %v11781_v52, %v4178_v32  ;;  %v4188_v1 = vrot.slane %v11782_v9, 3  ;;  %v4190_v13 = vrot.slane %v11783_v59, 2  ;;  %v8542_v45 = vld [vmem:[%s11784_s6 + $0x8] sm:$0xff]   ;;  %8306 = vmatprep.subr.bf16.mxu0 %v11778_v36 }
 0xfec   :  { %v3743_v21 = vsel %vm422_vm3, %v3742_v3, %v3741_v15  ;;  %v4181_v48 = vsel %vm419_vm2, %v4180_v19, %v4179_v0 }
 0xfed   :  { %v3745_v42 = vsel %vm425_vm4, %v3744_v49, %v3743_v21  ;;  %v4183_v7 = vsel %vm422_vm3, %v4182_v41, %v4181_v48 }
 0xfee   :  { %v3747_v55 = vsel %vm428_vm5, %v3746_v17, %v3745_v42  ;;  %v4185_v34 = vsel %vm425_vm4, %v4184_v50, %v4183_v7  ;;  %8307 = vmatpush3.bf16.msra.mxu0 %v8542_v45  ;;  %v7928_v17 = vld [vmem:[#allocation22] ss:$0 sm:$0xff] }
 0xfef   :  { %v3749_v27 = vsel %vm431_vm6, %v3748_v23, %v3747_v55  ;;  %v4187_v37 = vsel %vm428_vm5, %v4186_v11, %v4185_v34  ;;  %8308 = vmatprep.subr.bf16.mxu0 %v11778_v36 }
 0xff0   :  { %v3751_v54 = vsel %vm434_vm7, %v3750_v6, %v3749_v27  ;;  %v4189_v38 = vsel %vm431_vm6, %v4188_v1, %v4187_v37 }
 0xff1   :  { %v3753_v46 = vsel %vm449_vm8, %v3751_v54, 0.0  ;;  %v10667_v39 = vsel %vm434_vm7, %v4190_v13, %v4189_v38 }
 0xff2   :  { %3754 = vadd.xlane.f32.xlu1 %v3753_v46 }
0x107f   :  { %v3755_v3 = vpop.xlane.xlu1 %3754 }
0x1080   :  { %v3756_v15 = vmul.f32 0.03125, %v3755_v3 }
0x1082   :  { %v3757_v49 = vadd.f32 1e-05, %v3756_v15 }
0x1084   :  { %8597 = vrsqrt.f32 %v3757_v49 }
0x108e   :  { %v8598_v21 = vpop.eup %8597 }
0x108f   :  { %v3760_v42 = vrot.slane %v8598_v21, 1  ;;  %v3761_v23 = vrot.slane %v8598_v21, 2  ;;  %v3762_v55 = vrot.slane %v8598_v21, 3  ;;  %v3763_v6 = vrot.slane %v8598_v21, 4 }
0x1090   :  { %v3764_v27 = vrot.slane %v8598_v21, 5  ;;  %v3765_v54 = vrot.slane %v8598_v21, 6  ;;  %v3766_v46 = vrot.slane %v8598_v21, 7  ;;  %v3775_v5 = vmul.f32 %v8598_v21, %v10610_v8 }
0x1091   :  { %v3776_v32 = vmul.f32 %v3760_v42, %v10612_v31  ;;  %v3777_v19 = vmul.f32 %v3761_v23, %v10614_v24  ;;  %v3778_v41 = vmul.f32 %v3762_v55, %v10616_v22  ;;  %v3779_v50 = vmul.f32 %v3763_v6, %v10618_v18 }
0x1092   :  { %v3780_v12 = vmul.f32 %v3764_v27, %v10620_v20  ;;  %v3781_v11 = vmul.f32 %v3765_v54, %v10622_v60  ;;  %v3782_v52 = vmul.f32 %v3766_v46, %v10624_v51  ;;  %v3789_v0 = vmul.f32 %v7928_v17, %v3775_v5 }
0x1093   :  { %v3790_v9 = vmul.f32 %v7928_v17, %v3776_v32  ;;  %v3791_v1 = vmul.f32 %v7928_v17, %v3777_v19  ;;  %v3792_v48 = vmul.f32 %v7928_v17, %v3778_v41  ;;  %v3793_v8 = vmul.f32 %v7928_v17, %v3779_v50 }
0x1094   :  { %v3794_v59 = vmul.f32 %v7928_v17, %v3780_v12  ;;  %v3795_v13 = vmul.f32 %v7928_v17, %v3781_v11  ;;  %v3796_v31 = vmul.f32 %v7928_v17, %v3782_v52  ;;  %v10685_v7 = vadd.f32 %v7929_v16, %v3789_v0 }
0x1095   :  { %v10687_v24 = vadd.f32 %v7929_v16, %v3790_v9  ;;  %v10689_v22 = vadd.f32 %v7929_v16, %v3791_v1  ;;  %v10691_v18 = vadd.f32 %v7929_v16, %v3792_v48  ;;  %v10693_v20 = vadd.f32 %v7929_v16, %v3793_v8 }
0x1096   :  { %v10695_v60 = vadd.f32 %v7929_v16, %v3794_v59  ;;  %v10697_v51 = vadd.f32 %v7929_v16, %v3795_v13  ;;  %v10699_v34 = vadd.f32 %v7929_v16, %v3796_v31  ;;  %v3811_v37 = vpack.c.bf16 %v10685_v7, %v10685_v7  ;;  %v8539_v59 = vld [vmem:[%s11746_s21] sm:$0xff]   ;;  %v8540_v31 = vld [vmem:[%s11746_s21 + $0x8] sm:$0xff]  }
0x1097   :  { %v3812_v38 = vpack.c.bf16 %v10687_v24, %v10687_v24  ;;  %v3813_v35 = vpack.c.bf16 %v10689_v22, %v10689_v22  ;;  %v3814_v45 = vpack.c.bf16 %v10691_v18, %v10691_v18  ;;  %v3815_v3 = vpack.c.bf16 %v10693_v20, %v10693_v20 }
0x1098   :  { %v3816_v15 = vpack.c.bf16 %v10695_v60, %v10695_v60  ;;  %v3817_v49 = vpack.c.bf16 %v10697_v51, %v10697_v51  ;;  %v3818_v21 = vpack.c.bf16 %v10699_v34, %v10699_v34  ;;  %v3838_v6 = vunpack.c.l.b16 %v3811_v37 }
0x1099   :  { %v3839_v17 = vunpack.c.l.b16 %v3812_v38  ;;  %v3840_v42 = vunpack.c.l.b16 %v3813_v35  ;;  %v3841_v23 = vunpack.c.l.b16 %v3814_v45  ;;  %v3842_v55 = vunpack.c.l.b16 %v3815_v3  ;;  %v8543_v38 = vld [vmem:[%s11784_s6 + $0x10] sm:$0xff]   ;;  %v8544_v35 = vld [vmem:[%s11784_s6 + $0x18] sm:$0xff]  }
0x109a   :  { %v3843_v27 = vunpack.c.l.b16 %v3816_v15  ;;  %v3844_v5 = vunpack.c.l.b16 %v3817_v49  ;;  %v3845_v16 = vunpack.c.l.b16 %v3818_v21  ;;  %v4192_v37 = vpack.c.b16 %v10667_v39, %v10667_v39  ;;  %8309 = vmatpush3.bf16.msra.mxu0 %v8543_v38  ;;  %v7930_v39 = vld [vmem:[#allocation26] ss:$0 sm:$0xff] }
0x109b   :  { %v3846_v54 = vrot.slane %v3839_v17, 7  ;;  %v3848_v46 = vrot.slane %v3840_v42, 6  ;;  %v3850_v19 = vrot.slane %v3841_v23, 5  ;;  %v3852_v50 = vrot.slane %v3842_v55, 4  ;;  %8310 = vmatprep.subr.bf16.mxu0 %v11778_v36  ;;  %v7942_v23 = vld [vmem:[%s11752_s0] ss:$0 sm:$0xff] }
0x109c   :  { %v3854_v11 = vrot.slane %v3843_v27, 3  ;;  %v3856_v0 = vrot.slane %v3844_v5, 2  ;;  %v3858_v1 = vrot.slane %v3845_v16, 1  ;;  %v11790_v38 = vld [vmem:[#allocation53_spill] sm:$0xff] }
0x109d   :  { %v3847_v32 = vsel %vm416_vm1, %v3846_v54, %v3838_v6 }
0x109e   :  { %v3849_v41 = vsel %vm419_vm2, %v3848_v46, %v3847_v32  ;;  %8311 = vmatpush3.bf16.msra.mxu0 %v8544_v35  ;;  %v8545_v32 = vld [vmem:[%s11755_s30] sm:$0xff]   ;;  %v4267_v35 = vrot.slane %v11790_v38, 4 }
0x109f   :  { %v3851_v12 = vsel %vm422_vm3, %v3850_v19, %v3849_v41  ;;  %8332 = vmatprep.subr.bf16.mxu0 %v11778_v36  ;;  %v11785_v19 = vld [vmem:[#allocation50_spill] sm:$0xff] }
0x10a0   :  { %v3853_v52 = vsel %vm425_vm4, %v3852_v50, %v3851_v12  ;;  %v4259_v41 = vrot.slane %v11785_v19, 1  ;;  %v11786_v50 = vld [vmem:[#allocation49_spill] sm:$0xff] }
0x10a1   :  { %v3855_v9 = vsel %vm428_vm5, %v3854_v11, %v3853_v52  ;;  %v4261_v12 = vrot.slane %v11786_v50, 7  ;;  %v11787_v52 = vld [vmem:[#allocation48_spill] sm:$0xff] }
0x10a2   :  { %v3857_v48 = vsel %vm431_vm6, %v3856_v0, %v3855_v9  ;;  %v4260_v0 = vsel %vm416_vm1, %v11787_v52, %v4259_v41  ;;  %v11788_v9 = vld [vmem:[#allocation51_spill] sm:$0xff] }
0x10a3   :  { %v3859_v8 = vsel %vm434_vm7, %v3858_v1, %v3857_v48  ;;  %v4263_v1 = vrot.slane %v11788_v9, 6 }
0x10a4   :  { %v3860_v13 = vpack.c.b16 %v3859_v8, %v3859_v8  ;;  %v4262_v8 = vsel %vm419_vm2, %v4261_v12, %v4260_v0 }
0x10a6   :  { %8301 = vmatmul.mubr.msk.bf16.vlgmr.msra.gmra.mrb[48].mxu1 %vm449_vm8, %v3860_v13 }
0x10a7   :  { %8317 = vmatpush3.bf16.msra.mxu1 %v8539_v59  ;;  %8320 = vmatprep.mubr.msk.bf16.mxu1 %vm9163_vm0, %v11778_v36  ;;  %v11789_v59 = vld [vmem:[#allocation52_spill] sm:$0xff] }
0x10a8   :  { %8318 = vmatprep.subr.bf16.mxu1 %v11778_v36  ;;  %v4265_v13 = vrot.slane %v11789_v59, 5 }
0x10ab   :  { %8319 = vmatpush3.bf16.msra.mxu1 %v8540_v31  ;;  %v8546_v31 = vld [vmem:[%s11755_s30 + $0x8] sm:$0xff]  }
0x10ac   :  { %8324 = vmatprep.subr.bf16.mxu1 %v11778_v36 }
0x10ae   :  { %8321 = vmatmul.mubr.msk.bf16.vlgmr.msra.gmra.mrb[52].mxu1 %vm449_vm8, %v4192_v37  ;;  %v4264_v37 = vsel %vm422_vm3, %v4263_v1, %v4262_v8 }
0x10af   :  { %8328 = vmatprep.mubr.msk.bf16.mxu1 %vm9163_vm0, %v11778_v36  ;;  %8325 = vmatpush3.bf16.msra.mxu1 %v8545_v32 }
0x10b0   :  { %8326 = vmatprep.subr.bf16.mxu1 %v11778_v36 }
0x10b3   :  { %8327 = vmatpush3.bf16.msra.mxu1 %v8546_v31 }
0x10b4   :  { %8338 = vmatprep.subr.bf16.mxu1 %v11778_v36 }
0x1179   :  { %v3910_v45 = vpop.f32.mrb[48].mxu1 }
0x117a   :  { %v3911_v3 = vadd.f32 %v7930_v39, %v3910_v45  ;;  %v8302_v15 = vpop.f32.mrb[49].mxu1  ;;  %v4266_v39 = vsel %vm425_vm4, %v4265_v13, %v4264_v37  ;;  %v11791_v45 = vld [vmem:[#allocation54_spill] sm:$0xff] }
0x117b   :  { %v3913_v49 = vpop.f32.mrb[50].mxu1  ;;  %v4268_v15 = vsel %vm428_vm5, %v4267_v35, %v4266_v39 }
0x117c   :  { %v3916_v21 = vmax.f32 %v3911_v3, 0.0  ;;  %v8303_v17 = vpop.f32.mrb[51].mxu1  ;;  %v4269_v3 = vrot.slane %v11791_v45, 3  ;;  %v11792_v49 = vld [vmem:[#allocation55_spill] sm:$0xff] }
0x117e   :  { %v3917_v42 = vpack.c.bf16 %v3916_v21, %v3916_v21  ;;  %v4271_v21 = vrot.slane %v11792_v49, 2  ;;  %v4270_v17 = vsel %vm431_vm6, %v4269_v3, %v4268_v15 }
0x1180   :  { %8313 = vmatmul.mubr.msk.bf16.vlgmr.msra.gmra.mrb[44].mxu0 %vm3957_vm13, %v3917_v42  ;;  %v4272_v42 = vsel %vm434_vm7, %v4271_v21, %v4270_v17 }
0x1181   :  { %v4242_v55 = vpop.f32.mrb[52].mxu1  ;;  %8334 = vmatprep.mubr.msk.bf16.mxu0 %vm9163_vm0, %v11778_v36 }
0x1182   :  { %v4243_v6 = vadd.f32 %v7942_v23, %v4242_v55  ;;  %v8322_v27 = vpop.f32.mrb[53].mxu1  ;;  %v4273_v23 = vpack.c.b16 %v4272_v42, %v4272_v42 }
0x1183   :  { %v4245_v54 = vpop.f32.mrb[54].mxu1 }
0x1184   :  { %4483 = vrot.lane.b32.xlu1 %v4243_v6, %s9167_s8  ;;  %4481 = vrot.lane.b32.xlu0 %v4243_v6, %s9165_s25  ;;  %v8323_v46 = vpop.f32.mrb[55].mxu1  ;;  %v4329_v11 = vmul.f32 0.35355338, %v4243_v6 }
0x1185   :  { %8329 = vmatmul.mubr.msk.bf16.vlgmr.msra.gmra.mrb[56].mxu1 %vm449_vm8, %v4273_v23 }
0x1186   :  { %8340 = vmatprep.mubr.msk.bf16.mxu1 %vm9163_vm0, %v11778_v36 }
0x1188   :  { %4487 = vrot.lane.b32.xlu1 %v4243_v6, %s9166_s27  ;;  %4485 = vrot.lane.b32.xlu0 %v4243_v6, %s9164_s16 }
0x11f6   :  { %v4484_v5 = vpop.permute.xlu1 %4483  ;;  %v4482_v16 = vpop.permute.xlu0 %4481 }
0x11f7   :  { %4491 = vrot.lane.b32.xlu1 %v4484_v5, %s9166_s27  ;;  %4489 = vrot.lane.b32.xlu0 %v4482_v16, %s9166_s27 }
0x11fa   :  { %v4486_v48 = vpop.permute.xlu0 %4485  ;;  %v4488_v46 = vpop.permute.xlu1 %4487 }
0x11fb   :  { %4493 = vrot.lane.b32.xlu0 %v4486_v48, %s9166_s27  ;;  %4331 = vrot.lane.b32.xlu1 %v4329_v11, %s9165_s25 }
0x11ff   :  { %4334 = vrot.lane.b32.xlu0 %v4329_v11, %s9167_s8  ;;  %4337 = vrot.lane.b32.xlu1 %v4329_v11, %s9164_s16 }
0x1253   :  { %v10790_v55 = vpop.f32.mrb[44].mxu0 }
0x1254   :  { %v8314_v6 = vpop.f32.mrb[45].mxu0 }
0x1255   :  { %v3998_v27 = vpop.f32.mrb[46].mxu0 }
0x1256   :  { %v8315_v54 = vpop.f32.mrb[47].mxu0 }
0x1269   :  { %v4492_v5 = vpop.permute.xlu1 %4491  ;;  %v4490_v16 = vpop.permute.xlu0 %4489 }
0x126a   :  { %v4499_v32 = vcombine.low %v4488_v46, %v4492_v5  ;;  %v4500_v19 = vcombine.high %v4488_v46, %v4492_v5 }
0x126c   :  { %v4507_v0 = vrot.slane %v4499_v32, %v9742_v56  ;;  %v4514_v9 = vrot.slane %v4500_v19, %v9742_v56 }
0x126d   :  { %v4494_v41 = vpop.permute.xlu0 %4493  ;;  %v4332_v50 = vpop.permute.xlu1 %4331 }
0x126e   :  { %v4515_v12 = vcombine.low %v4490_v16, %v4494_v41  ;;  %v4516_v52 = vcombine.high %v4490_v16, %v4494_v41 }
0x1270   :  { %v4523_v1 = vrot.slane %v4515_v12, %v9742_v56  ;;  %v4530_v48 = vrot.slane %v4516_v52, %v9742_v56 }
0x1271   :  { %v4335_v8 = vpop.permute.xlu0 %4334  ;;  %v4338_v59 = vpop.permute.xlu1 %4337 }
0x1272   :  { %v4531_v13 = vcombine.low %v4507_v0, %v4523_v1  ;;  %v4532_v31 = vcombine.high %v4507_v0, %v4523_v1  ;;  %v4547_v37 = vcombine.low %v4514_v9, %v4530_v48  ;;  %v4548_v38 = vcombine.high %v4514_v9, %v4530_v48 }
0x1273   :  { %v4340_v35 = vcombine.low %v4329_v11, %v4335_v8  ;;  %v4341_v39 = vcombine.high %v4329_v11, %v4335_v8  ;;  %v4356_v45 = vcombine.low %v4332_v50, %v4338_v59  ;;  %v4357_v3 = vcombine.high %v4332_v50, %v4338_v59 }
0x1274   :  { %v4539_v15 = vrot.slane %v4531_v13, %v9744_v63  ;;  %v4546_v49 = vrot.slane %v4532_v31, %v9744_v63  ;;  %v4555_v21 = vrot.slane %v4547_v37, %v9744_v63  ;;  %v4562_v17 = vrot.slane %v4548_v38, %v9744_v63 }
0x1275   :  { %v4348_v42 = vrot.slane %v4340_v35, %v9742_v56  ;;  %v4355_v23 = vrot.slane %v4341_v39, %v9742_v56  ;;  %v4364_v6 = vrot.slane %v4356_v45, %v9742_v56  ;;  %v4371_v27 = vrot.slane %v4357_v3, %v9742_v56 }
0x1276   :  { %v4567_v54 = vcombine.low %v4539_v15, %v4546_v49  ;;  %v7952_v11 = vcombine.high %v4539_v15, %v4546_v49  ;;  %v4583_v46 = vcombine.low %v4555_v21, %v4562_v17  ;;  %v7953_v5 = vcombine.high %v4555_v21, %v4562_v17 }
0x1277   :  { %v4372_v16 = vcombine.low %v4348_v42, %v4364_v6  ;;  %v4373_v32 = vcombine.high %v4348_v42, %v4364_v6  ;;  %v4388_v19 = vcombine.low %v4355_v23, %v4371_v27  ;;  %v4389_v41 = vcombine.high %v4355_v23, %v4371_v27 }
0x1278   :  { %v4574_v50 = vrot.slane %v4567_v54, %v9742_v56  ;;  %v4582_v12 = vrot.slane %v7952_v11, %v9742_v56  ;;  %v4590_v52 = vrot.slane %v4583_v46, %v9742_v56  ;;  %v4598_v0 = vrot.slane %v7953_v5, %v9742_v56 }
0x1279   :  { %v4380_v9 = vrot.slane %v4372_v16, %v9744_v63  ;;  %v4387_v1 = vrot.slane %v4373_v32, %v9744_v63  ;;  %v4396_v48 = vrot.slane %v4388_v19, %v9744_v63  ;;  %v4403_v8 = vrot.slane %v4389_v41, %v9744_v63 }
0x127a   :  { %v4599_v59 = vcombine.low %v4574_v50, %v4582_v12  ;;  %v4615_v13 = vcombine.low %v4590_v52, %v4598_v0  ;;  %v4600_v31 = vcombine.high %v4574_v50, %v4582_v12  ;;  %v4616_v37 = vcombine.high %v4590_v52, %v4598_v0 }
0x127b   :  { %v4408_v38 = vcombine.low %v4380_v9, %v4387_v1  ;;  %v7950_v35 = vcombine.high %v4380_v9, %v4387_v1  ;;  %v4424_v39 = vcombine.low %v4396_v48, %v4403_v8  ;;  %v7951_v45 = vcombine.high %v4396_v48, %v4403_v8 }
0x127c   :  { %v4607_v3 = vrot.slane %v4599_v59, %v9744_v63  ;;  %v4623_v15 = vrot.slane %v4615_v13, %v9744_v63  ;;  %v4614_v27 = vrot.slane %v4600_v31, %v9744_v63  ;;  %v4630_v54 = vrot.slane %v4616_v37, %v9744_v63 }
0x127d   :  { %v4415_v49 = vrot.slane %v4408_v38, %v9742_v56  ;;  %v4423_v21 = vrot.slane %v7950_v35, %v9742_v56  ;;  %v4431_v17 = vrot.slane %v4424_v39, %v9742_v56  ;;  %v4439_v42 = vrot.slane %v7951_v45, %v9742_v56 }
0x127e   :  { %v4631_v23 = vcombine.low %v4607_v3, %v4623_v15  ;;  %v4632_v6 = vcombine.high %v4607_v3, %v4623_v15  ;;  %v4633_v12 = vcombine.low %v4614_v27, %v4630_v54  ;;  %v4634_v52 = vcombine.high %v4614_v27, %v4630_v54 }
0x127f   :  { %v4440_v11 = vcombine.low %v4415_v49, %v4423_v21  ;;  %v4456_v46 = vcombine.low %v4431_v17, %v4439_v42  ;;  %v4441_v0 = vcombine.high %v4415_v49, %v4423_v21  ;;  %v4457_v9 = vcombine.high %v4431_v17, %v4439_v42  ;;  %v4323_v21 = vpop.f32.mrb[56].mxu1 }
0x1280   :  { %v4635_v5 = vpack.c.bf16 %v4631_v23, %v4631_v23  ;;  %v4636_v16 = vpack.c.bf16 %v4632_v6, %v4632_v6  ;;  %v4637_v8 = vpack.c.bf16 %v4633_v12, %v4633_v12  ;;  %v4638_v59 = vpack.c.bf16 %v4634_v52, %v4634_v52  ;;  %v8330_v17 = vpop.f32.mrb[57].mxu1 }
0x1281   :  { %v4448_v32 = vrot.slane %v4440_v11, %v9744_v63  ;;  %v4464_v19 = vrot.slane %v4456_v46, %v9744_v63  ;;  %v4455_v37 = vrot.slane %v4441_v0, %v9744_v63  ;;  %v4471_v38 = vrot.slane %v4457_v9, %v9744_v63  ;;  %v4326_v42 = vpop.f32.mrb[58].mxu1 }
0x1282   :  { %v4793_v41 = vsel %vm1058_vm9, %v4635_v5, 0  ;;  %v4839_v50 = vsel %vm1058_vm9, %v4636_v16, 0  ;;  %v4885_v35 = vsel %vm1058_vm9, %v4637_v8, 0  ;;  %v4931_v39 = vsel %vm1058_vm9, %v4638_v59, 0  ;;  %v8331_v23 = vpop.f32.mrb[59].mxu1 }
0x1283   :  { %8333 = vmatpush3.bf16.xpose.msra.mxu0 %v4793_v41  ;;  %8339 = vmatpush3.bf16.xpose.msra.mxu1 %v4839_v50  ;;  %v4472_v1 = vcombine.low %v4448_v32, %v4464_v19  ;;  %v4473_v48 = vcombine.high %v4448_v32, %v4464_v19  ;;  %v4474_v45 = vcombine.low %v4455_v37, %v4471_v38 }
0x1284   :  { %8344 = vmatprep.subr.bf16.mxu0 %v11778_v36  ;;  %8350 = vmatprep.subr.bf16.mxu1 %v11778_v36  ;;  %v4475_v3 = vcombine.high %v4455_v37, %v4471_v38 }
0x1285   :  { %v4476_v13 = vpack.c.bf16 %v4472_v1, %v4472_v1  ;;  %v4477_v31 = vpack.c.bf16 %v4473_v48, %v4473_v48  ;;  %v4478_v15 = vpack.c.bf16 %v4474_v45, %v4474_v45 }
0x1286   :  { %v4479_v49 = vpack.c.bf16 %v4475_v3, %v4475_v3 }
0x128a   :  { %8335 = vmatmul.mubr.msk.bf16.vlgmr.msra.gmra.mrb[48].mxu0 %vm1058_vm9, %v4476_v13  ;;  %8341 = vmatmul.mubr.msk.bf16.vlgmr.msra.gmra.mrb[60].mxu1 %vm1058_vm9, %v4477_v31  ;;  %v7946_v31 = vld [vmem:[%s11762_s28] ss:$0 sm:$0xff] }
0x128b   :  { %8345 = vmatpush3.bf16.xpose.msra.mxu0 %v4885_v35  ;;  %8351 = vmatpush3.bf16.xpose.msra.mxu1 %v4931_v39  ;;  %v4324_v37 = vadd.f32 %v7946_v31, %v4323_v21 }
0x128c   :  { %8346 = vmatprep.mubr.msk.bf16.mxu0 %vm9163_vm0, %v11778_v36  ;;  %8352 = vmatprep.mubr.msk.bf16.mxu1 %vm9163_vm0, %v11778_v36 }
0x128d   :  { %8356 = vmatprep.subr.bf16.mxu0 %v11778_v36  ;;  %8362 = vmatprep.subr.bf16.mxu1 %v11778_v36 }
0x1292   :  { %8347 = vmatmul.mubr.msk.bf16.vlgmr.msra.gmra.mrb[52].mxu0 %vm1058_vm9, %v4478_v15  ;;  %8353 = vmatmul.mubr.msk.bf16.vlgmr.msra.gmra.mrb[64].mxu1 %vm1058_vm9, %v4479_v49 }
0x1293   :  { %8358 = vmatprep.mubr.msk.bf16.mxu0 %vm9163_vm0, %v11778_v36  ;;  %8364 = vmatprep.mubr.msk.bf16.mxu1 %vm9163_vm0, %v11778_v36 }
0x135d   :  { %v4829_v6 = vpop.f32.mrb[48].mxu0  ;;  %v4875_v27 = vpop.f32.mrb[60].mxu1 }
0x135e   :  { %v8336_v54 = vpop.f32.mrb[49].mxu0  ;;  %v8342_v11 = vpop.f32.mrb[61].mxu1  ;;  %v4973_v46 = vsel %vm1058_vm9, %v4829_v6, -inf  ;;  %v4976_v5 = vsel %vm1058_vm9, %v4875_v27, -inf }
0x135f   :  { %4974 = vmax.xlane.f32.xlu0 %v4973_v46  ;;  %v4832_v16 = vpop.f32.mrb[50].mxu0  ;;  %4977 = vmax.xlane.f32.xlu1 %v4976_v5  ;;  %v4878_v32 = vpop.f32.mrb[62].mxu1 }
0x1360   :  { %v8337_v19 = vpop.f32.mrb[51].mxu0  ;;  %v8343_v41 = vpop.f32.mrb[63].mxu1 }
0x1365   :  { %v4921_v50 = vpop.f32.mrb[52].mxu0  ;;  %v4967_v12 = vpop.f32.mrb[64].mxu1 }
0x1366   :  { %v8348_v52 = vpop.f32.mrb[53].mxu0  ;;  %v8354_v0 = vpop.f32.mrb[65].mxu1  ;;  %v4979_v9 = vsel %vm1058_vm9, %v4921_v50, -inf  ;;  %v4982_v13 = vsel %vm1058_vm9, %v4967_v12, -inf }
0x1367   :  { %4980 = vmax.xlane.f32.xlu0 %v4979_v9  ;;  %v4924_v1 = vpop.f32.mrb[54].mxu0  ;;  %v4970_v48 = vpop.f32.mrb[66].mxu1 }
0x1368   :  { %v8349_v8 = vpop.f32.mrb[55].mxu0  ;;  %v8355_v59 = vpop.f32.mrb[67].mxu1 }
0x136b   :  { %4983 = vmax.xlane.f32.xlu0 %v4982_v13 }
0x1370   :  { %4640 = vrot.lane.b32.xlu1 %v4324_v37, %s9165_s25 }
0x13ec   :  { %v4975_v38 = vpop.xlane.xlu0 %4974  ;;  %v4978_v35 = vpop.xlane.xlu1 %4977 }
0x13ed   :  { %v4985_v39 = vsub.f32 %v4829_v6, %v4975_v38  ;;  %v4986_v45 = vsub.f32 %v4875_v27, %v4978_v35 }
0x13ef   :  { %v4989_v3 = vmul.f32 1.442695, %v4985_v39  ;;  %v4991_v15 = vmul.f32 1.442695, %v4986_v45 }
0x13f0   :  { %v4641_v41 = vpop.permute.xlu1 %4640 }
0x13f1   :  { %8599 = vpow2.f32 %v4989_v3 }
0x13f2   :  { %8601 = vpow2.f32 %v4991_v15 }
0x13f4   :  { %v4981_v23 = vpop.xlane.xlu0 %4980 }
0x13f5   :  { %v4987_v27 = vsub.f32 %v4921_v50, %v4981_v23 }
0x13f7   :  { %v4993_v11 = vmul.f32 1.442695, %v4987_v27 }
0x13f8   :  { %v4984_v6 = vpop.xlane.xlu0 %4983 }
0x13f9   :  { %v4988_v54 = vsub.f32 %v4967_v12, %v4984_v6  ;;  %8603 = vpow2.f32 %v4993_v11 }
0x13fb   :  { %v10852_v49 = vpop.eup %8599  ;;  %v4995_v46 = vmul.f32 1.442695, %v4988_v54 }
0x13fc   :  { %v10854_v17 = vpop.eup %8601  ;;  %v4997_v42 = vsel %vm1058_vm9, %v10852_v49, 0.0 }
0x13fd   :  { %4998 = vadd.xlane.f32.xlu1 %v4997_v42  ;;  %v5000_v21 = vsel %vm1058_vm9, %v10854_v17, 0.0  ;;  %8605 = vpow2.f32 %v4995_v46 }
0x13fe   :  { %5001 = vadd.xlane.f32.xlu0 %v5000_v21 }
0x1403   :  { %v10862_v5 = vpop.eup %8603 }
0x1404   :  { %v5003_v32 = vsel %vm1058_vm9, %v10862_v5, 0.0 }
0x1407   :  { %v10864_v16 = vpop.eup %8605 }
0x1408   :  { %v5006_v19 = vsel %vm1058_vm9, %v10864_v16, 0.0 }
0x140e   :  { %4646 = vrot.lane.b32.xlu1 %v4324_v37, %s9164_s16 }
0x1414   :  { %4643 = vrot.lane.b32.xlu0 %v4324_v37, %s9167_s8 }
0x1432   :  { %5004 = vadd.xlane.f32.xlu1 %v5003_v32 }
0x1433   :  { %5007 = vadd.xlane.f32.xlu0 %v5006_v19 }
0x148a   :  { %v4999_v52 = vpop.xlane.xlu1 %4998 }
0x148b   :  { %v5002_v50 = vpop.xlane.xlu0 %5001  ;;  %8607 = vrcp.f32 %v4999_v52 }
0x148c   :  { %8609 = vrcp.f32 %v5002_v50 }
0x148e   :  { %v4647_v12 = vpop.permute.xlu1 %4646 }
0x148f   :  { %v4665_v0 = vcombine.low %v4641_v41, %v4647_v12  ;;  %v4666_v9 = vcombine.high %v4641_v41, %v4647_v12  ;;  %v4644_v1 = vpop.permute.xlu0 %4643 }
0x1490   :  { %v4649_v48 = vcombine.low %v4324_v37, %v4644_v1  ;;  %v4650_v8 = vcombine.high %v4324_v37, %v4644_v1 }
0x1491   :  { %v4673_v59 = vrot.slane %v4665_v0, %v9742_v56  ;;  %v4680_v13 = vrot.slane %v4666_v9, %v9742_v56 }
0x1492   :  { %v4657_v31 = vrot.slane %v4649_v48, %v9742_v56  ;;  %v4664_v38 = vrot.slane %v4650_v8, %v9742_v56 }
0x1494   :  { %v4681_v35 = vcombine.low %v4657_v31, %v4673_v59  ;;  %v4682_v39 = vcombine.high %v4657_v31, %v4673_v59  ;;  %v4697_v45 = vcombine.low %v4664_v38, %v4680_v13  ;;  %v4698_v3 = vcombine.high %v4664_v38, %v4680_v13 }
0x1495   :  { %v8608_v1 = vpop.eup %8607 }
0x1496   :  { %v4689_v15 = vrot.slane %v4681_v35, %v9744_v63  ;;  %v4696_v42 = vrot.slane %v4682_v39, %v9744_v63  ;;  %v4705_v37 = vrot.slane %v4697_v45, %v9744_v63  ;;  %v4712_v21 = vrot.slane %v4698_v3, %v9744_v63  ;;  %v8610_v59 = vpop.eup %8609 }
0x1497   :  { %v5013_v39 = vmul.f32 %v8608_v1, %v10852_v49  ;;  %v5014_v45 = vmul.f32 %v8610_v59, %v10854_v17 }
0x1498   :  { %v4717_v23 = vcombine.low %v4689_v15, %v4696_v42  ;;  %v7954_v6 = vcombine.high %v4689_v15, %v4696_v42  ;;  %v4733_v27 = vcombine.low %v4705_v37, %v4712_v21  ;;  %v7955_v54 = vcombine.high %v4705_v37, %v4712_v21 }
0x149a   :  { %v4724_v11 = vrot.slane %v4717_v23, %v9742_v56  ;;  %v4732_v46 = vrot.slane %v7954_v6, %v9742_v56  ;;  %v4740_v32 = vrot.slane %v4733_v27, %v9742_v56  ;;  %v4748_v19 = vrot.slane %v7955_v54, %v9742_v56 }
0x149b   :  { %v5017_v6 = vpack.c.bf16 %v5013_v39, %v5013_v39  ;;  %v5018_v27 = vpack.c.bf16 %v5014_v45, %v5014_v45 }
0x149c   :  { %v4749_v41 = vcombine.low %v4724_v11, %v4732_v46  ;;  %v4750_v52 = vcombine.high %v4724_v11, %v4732_v46  ;;  %v4765_v50 = vcombine.low %v4740_v32, %v4748_v19  ;;  %v4766_v12 = vcombine.high %v4740_v32, %v4748_v19 }
0x149e   :  { %v4757_v0 = vrot.slane %v4749_v41, %v9744_v63  ;;  %v4764_v9 = vrot.slane %v4750_v52, %v9744_v63  ;;  %v4773_v48 = vrot.slane %v4765_v50, %v9744_v63  ;;  %v4780_v8 = vrot.slane %v4766_v12, %v9744_v63 }
0x14a0   :  { %v4781_v13 = vcombine.low %v4757_v0, %v4773_v48  ;;  %v4782_v31 = vcombine.high %v4757_v0, %v4773_v48  ;;  %v4783_v38 = vcombine.low %v4764_v9, %v4780_v8  ;;  %v4784_v35 = vcombine.high %v4764_v9, %v4780_v8 }
0x14a2   :  { %v4785_v3 = vpack.c.bf16 %v4781_v13, %v4781_v13  ;;  %v4786_v15 = vpack.c.bf16 %v4782_v31, %v4782_v31  ;;  %v4787_v21 = vpack.c.bf16 %v4783_v38, %v4783_v38  ;;  %v4788_v23 = vpack.c.bf16 %v4784_v35, %v4784_v35 }
0x14a4   :  { %v5025_v42 = vsel %vm1294_vm10, %v4785_v3, 0  ;;  %v5071_v37 = vsel %vm1294_vm10, %v4786_v15, 0  ;;  %v5117_v49 = vsel %vm1294_vm10, %v4787_v21, 0  ;;  %v5163_v17 = vsel %vm1294_vm10, %v4788_v23, 0 }
0x14a5   :  { %8357 = vmatpush3.bf16.msra.mxu0 %v5025_v42  ;;  %8363 = vmatpush3.bf16.msra.mxu1 %v5071_v37 }
0x14a6   :  { %8368 = vmatprep.subr.bf16.mxu0 %v11778_v36  ;;  %8374 = vmatprep.subr.bf16.mxu1 %v11778_v36 }
0x14a8   :  { %8359 = vmatmul.mubr.msk.bf16.vlgmr.msra.gmra.mrb[56].mxu0 %vm1058_vm9, %v5017_v6  ;;  %8365 = vmatmul.mubr.msk.bf16.vlgmr.msra.gmra.mrb[68].mxu1 %vm1058_vm9, %v5018_v27 }
0x14a9   :  { %8369 = vmatpush3.bf16.msra.mxu0 %v5117_v49  ;;  %8375 = vmatpush3.bf16.msra.mxu1 %v5163_v17 }
0x14aa   :  { %8370 = vmatprep.mubr.msk.bf16.mxu0 %vm9163_vm0, %v11778_v36  ;;  %8376 = vmatprep.mubr.msk.bf16.mxu1 %vm9163_vm0, %v11778_v36 }
0x14ab   :  { %8380 = vmatprep.subr.bf16.mxu0 %v11778_v36  ;;  %8388 = vmatprep.subr.bf16.mxu1 %v11778_v36 }
0x14bf   :  { %v5005_v54 = vpop.xlane.xlu1 %5004 }
0x14c0   :  { %8611 = vrcp.f32 %v5005_v54  ;;  %v5008_v11 = vpop.xlane.xlu0 %5007 }
0x14c1   :  { %8613 = vrcp.f32 %v5008_v11 }
0x14ca   :  { %v8612_v46 = vpop.eup %8611 }
0x14cb   :  { %v8614_v32 = vpop.eup %8613  ;;  %v5015_v19 = vmul.f32 %v8612_v46, %v10862_v5 }
0x14cc   :  { %v5016_v41 = vmul.f32 %v8614_v32, %v10864_v16  ;;  %v8547_v32 = vld [vmem:[#allocation5] sm:$0xff]  }
0x14cd   :  { %v5019_v52 = vpack.c.bf16 %v5015_v19, %v5015_v19 }
0x14ce   :  { %v5020_v50 = vpack.c.bf16 %v5016_v41, %v5016_v41 }
0x14cf   :  { %8371 = vmatmul.mubr.msk.bf16.vlgmr.msra.gmra.mrb[60].mxu0 %vm1058_vm9, %v5019_v52 }
0x14d0   :  { %8377 = vmatmul.mubr.msk.bf16.vlgmr.msra.gmra.mrb[72].mxu1 %vm1058_vm9, %v5020_v50  ;;  %8384 = vmatprep.mubr.msk.bf16.mxu0 %vm9163_vm0, %v11778_v36 }
0x14d1   :  { %8392 = vmatprep.mubr.msk.bf16.mxu1 %vm9163_vm0, %v11778_v36  ;;  %8381 = vmatpush3.bf16.msra.mxu0 %v8547_v32  ;;  %v7966_v32 = vld [vmem:[%s11763_s12] ss:$0 sm:$0xff] }
0x14d2   :  { %8382 = vmatprep.subr.bf16.mxu0 %v11778_v36 }
0x157b   :  { %v5061_v12 = vpop.f32.mrb[56].mxu0  ;;  %v5107_v0 = vpop.f32.mrb[68].mxu1 }
0x157c   :  { %v8360_v9 = vpop.f32.mrb[57].mxu0  ;;  %v8366_v1 = vpop.f32.mrb[69].mxu1 }
0x157d   :  { %v5064_v48 = vpop.f32.mrb[58].mxu0  ;;  %v5110_v5 = vpop.f32.mrb[70].mxu1 }
0x157e   :  { %v8361_v8 = vpop.f32.mrb[59].mxu0  ;;  %v8367_v16 = vpop.f32.mrb[71].mxu1  ;;  %v8548_v48 = vld [vmem:[#allocation5 + $0x8] sm:$0xff]  }
0x157f   :  { %8383 = vmatpush3.bf16.msra.mxu0 %v8548_v48 }
0x1580   :  { %8396 = vmatprep.subr.bf16.mxu0 %v11778_v36 }
0x15a2   :  { %v5153_v59 = vpop.f32.mrb[60].mxu0 }
0x15a3   :  { %v5205_v13 = vcombine.low %v5061_v12, %v5153_v59  ;;  %v5206_v31 = vcombine.high %v5061_v12, %v5153_v59  ;;  %v5199_v38 = vpop.f32.mrb[72].mxu1  ;;  %v8372_v35 = vpop.f32.mrb[61].mxu0 }
0x15a4   :  { %v5221_v39 = vcombine.low %v5107_v0, %v5199_v38  ;;  %v5222_v45 = vcombine.high %v5107_v0, %v5199_v38  ;;  %v8378_v3 = vpop.f32.mrb[73].mxu1  ;;  %v5156_v15 = vpop.f32.mrb[62].mxu0 }
0x15a5   :  { %v5213_v42 = vrot.slane %v5205_v13, %v9742_v56  ;;  %v5220_v37 = vrot.slane %v5206_v31, %v9742_v56  ;;  %v5202_v21 = vpop.f32.mrb[74].mxu1  ;;  %v8373_v23 = vpop.f32.mrb[63].mxu0 }
0x15a6   :  { %v5229_v6 = vrot.slane %v5221_v39, %v9742_v56  ;;  %v5236_v27 = vrot.slane %v5222_v45, %v9742_v56  ;;  %v8379_v49 = vpop.f32.mrb[75].mxu1 }
0x15a8   :  { %v5237_v17 = vcombine.low %v5213_v42, %v5229_v6  ;;  %v5238_v54 = vcombine.high %v5213_v42, %v5229_v6  ;;  %v5253_v11 = vcombine.low %v5220_v37, %v5236_v27  ;;  %v5254_v46 = vcombine.high %v5220_v37, %v5236_v27 }
0x15aa   :  { %v5245_v19 = vrot.slane %v5237_v17, %v9744_v63  ;;  %v5252_v41 = vrot.slane %v5238_v54, %v9744_v63  ;;  %v5261_v52 = vrot.slane %v5253_v11, %v9744_v63  ;;  %v5268_v50 = vrot.slane %v5254_v46, %v9744_v63 }
0x15ac   :  { %v5273_v12 = vcombine.low %v5245_v19, %v5252_v41  ;;  %v7964_v0 = vcombine.high %v5245_v19, %v5252_v41  ;;  %v5289_v9 = vcombine.low %v5261_v52, %v5268_v50  ;;  %v7965_v1 = vcombine.high %v5261_v52, %v5268_v50 }
0x15ae   :  { %v5280_v5 = vrot.slane %v5273_v12, %v9742_v56  ;;  %v5288_v8 = vrot.slane %v7964_v0, %v9742_v56  ;;  %v5296_v16 = vrot.slane %v5289_v9, %v9742_v56  ;;  %v5304_v59 = vrot.slane %v7965_v1, %v9742_v56 }
0x15b0   :  { %v5306_v13 = vcombine.high %v5280_v5, %v5288_v8  ;;  %v5322_v31 = vcombine.high %v5296_v16, %v5304_v59  ;;  %v5305_v38 = vcombine.low %v5280_v5, %v5288_v8  ;;  %v5321_v35 = vcombine.low %v5296_v16, %v5304_v59  ;;  %v8661_v59 = vld [vmem:[#allocation2 + $0x2] sm:$0x3] }
0x15b2   :  { %v5320_v39 = vrot.slane %v5306_v13, %v9744_v63  ;;  %v5336_v45 = vrot.slane %v5322_v31, %v9744_v63  ;;  %v5313_v3 = vrot.slane %v5305_v38, %v9744_v63  ;;  %v5329_v15 = vrot.slane %v5321_v35, %v9744_v63  ;;  %v8662_v31 = vld [vmem:[#allocation2 + $0xe] sm:$0x3]  ;;  %v8663_v35 = vld [vmem:[#allocation2] sm:$0x3] }
0x15b4   :  { %v5339_v42 = vcombine.low %v5320_v39, %v5336_v45  ;;  %v5338_v37 = vcombine.high %v5313_v3, %v5329_v15  ;;  %v5340_v21 = vcombine.high %v5320_v39, %v5336_v45  ;;  %v5337_v23 = vcombine.low %v5313_v3, %v5329_v15  ;;  %v8664_v45 = vld [vmem:[#allocation2 + $0x4] sm:$0x3]  ;;  %v8665_v15 = vld [vmem:[#allocation2 + $0x6] sm:$0x3] }
0x15b6   :  { %5346 = vrot.lane.b32.xlu1 %v5339_v42, %s9170_s14  ;;  %5342 = vrot.lane.b32.xlu0 %v5338_v37, %s9171_s1  ;;  %v8666_v37 = vld [vmem:[#allocation2 + $0x8] sm:$0x3] }
0x15ba   :  { %5350 = vrot.lane.b32.xlu1 %v5340_v21, %s9172_s15 }
0x1628   :  { %v5347_v6 = vpop.permute.xlu1 %5346  ;;  %v5343_v27 = vpop.permute.xlu0 %5342 }
0x1629   :  { %v5353_v49 = vsel %vm1058_vm9, %v5337_v23, %v5343_v27  ;;  %v8667_v23 = vld [vmem:[#allocation2 + $0xa] sm:$0x3] }
0x162a   :  { %v5354_v54 = vsel %vm1625_vm11, %v5353_v49, %v5347_v6 }
0x162c   :  { %v5351_v17 = vpop.permute.xlu1 %5350 }
0x162d   :  { %v5355_v11 = vsel %vm1627_vm12, %v5354_v54, %v5351_v17  ;;  %v8668_v17 = vld [vmem:[#allocation2 + $0xc] sm:$0x3] }
0x162e   :  { %v5356_v46 = vpack.c.bf16 %v5355_v11, %v5355_v11 }
0x1630   :  { %8385 = vmatmul.mubr.msk.bf16.vlgmr.msra.gmra.mrb[64].mxu0 %vm449_vm8, %v5356_v46 }
0x1631   :  { %8400 = vmatprep.mubr.msk.bf16.mxu0 %vm9163_vm0, %v11778_v36 }
0x1703   :  { %v5417_v19 = vpop.f32.mrb[64].mxu0 }
0x1704   :  { %v5418_v41 = vadd.f32 %v7966_v32, %v5417_v19  ;;  %v8386_v52 = vpop.f32.mrb[65].mxu0 }
0x1705   :  { %v5420_v50 = vpop.f32.mrb[66].mxu0 }
0x1706   :  { %v8387_v12 = vpop.f32.mrb[67].mxu0  ;;  %v5430_v0 = vrot.slane %v5418_v41, 6  ;;  %v5424_v9 = vrot.slane %v5418_v41, 7  ;;  %v5425_v1 = vrot.slane %v5418_v41, 1  ;;  %v5426_v48 = vrot.slane %v5418_v41, 2 }
0x1707   :  { %v5427_v5 = vrot.slane %v5418_v41, 3  ;;  %v5428_v8 = vrot.slane %v5418_v41, 4  ;;  %v5429_v16 = vrot.slane %v5418_v41, 5  ;;  %v10940_v13 = vadd.f32 %v8661_v59, %v5418_v41 }
0x1708   :  { %v10942_v38 = vadd.f32 %v8662_v31, %v5430_v0  ;;  %v10944_v39 = vadd.f32 %v8663_v35, %v5424_v9  ;;  %v10946_v3 = vadd.f32 %v8664_v45, %v5425_v1  ;;  %v10948_v42 = vadd.f32 %v8665_v15, %v5426_v48  ;;  %v11793_v45 = vld [vmem:[#allocation57_spill] sm:$0xff] }
0x1709   :  { %v10950_v21 = vadd.f32 %v8666_v37, %v5427_v5  ;;  %v10952_v6 = vadd.f32 %v8667_v23, %v5428_v8  ;;  %v5457_v27 = vrot.slane %v10940_v13, 7  ;;  %v10956_v54 = vadd.f32 %v8668_v17, %v5429_v16  ;;  %v8549_v8 = vld [vmem:[#allocation11] sm:$0xff]  }
0x170a   :  { %v5469_v49 = vrot.slane %v10942_v38, 1  ;;  %v5459_v11 = vrot.slane %v10946_v3, 6  ;;  %v5461_v46 = vrot.slane %v10948_v42, 5  ;;  %v5727_v16 = vrot.slane %v10080_v53, 1  ;;  %v11794_v37 = vld [vmem:[#allocation64_spill] sm:$0xff]  ;;  %8397 = vmatpush3.bf16.msra.mxu0 %v8549_v8  ;;  %v11798_v53 = vld [vmem:[#allocation63_spill] sm:$0xff] }
0x170b   :  { %v5458_v32 = vsel %vm419_vm2, %v5457_v27, %v10944_v39  ;;  %v5463_v52 = vrot.slane %v10950_v21, 4  ;;  %v5465_v12 = vrot.slane %v10952_v6, 3  ;;  %v5467_v9 = vrot.slane %v10956_v54, 2  ;;  %v8550_v27 = vld [vmem:[#allocation11 + $0x8] sm:$0xff]   ;;  %8398 = vmatprep.subr.bf16.mxu0 %v11778_v36  ;;  %v11803_v8 = vld [vmem:[#allocation66_spill] sm:$0xff] }
0x170c   :  { %v5477_v19 = vsel %vm5476_vm14, %v5469_v49, 0.0  ;;  %v5460_v41 = vsel %vm422_vm3, %v5459_v11, %v5458_v32  ;;  %v5729_v59 = vrot.slane %v10074_v25, 7  ;;  %v5731_v31 = vrot.slane %v10076_v26, 6  ;;  %v11795_v49 = vld [vmem:[#allocation56_spill] sm:$0xff]  ;;  %v11796_v11 = vld [vmem:[#allocation61_spill] sm:$0xff]  ;;  %v11797_v32 = vld [vmem:[#allocation62_spill] sm:$0xff] }
0x170d   :  { %5478 = vadd.xlane.f32.xlu1 %v5477_v19  ;;  %v5462_v50 = vsel %vm425_vm4, %v5461_v46, %v5460_v41  ;;  %v5733_v35 = vrot.slane %v10078_v28, 5  ;;  %v5735_v15 = vrot.slane %v11793_v45, 4  ;;  %v5741_v23 = vrot.slane %v11794_v37, 1  ;;  %v11799_v26 = vld [vmem:[#allocation58_spill] sm:$0xff] }
0x170e   :  { %v5464_v0 = vsel %vm428_vm5, %v5463_v52, %v5462_v50  ;;  %v5728_v17 = vsel %vm416_vm1, %v11795_v49, %v5727_v16  ;;  %v5743_v46 = vrot.slane %v11796_v11, 7  ;;  %v5745_v19 = vrot.slane %v11797_v32, 6  ;;  %v11800_v52 = vld [vmem:[#allocation59_spill] sm:$0xff]  ;;  %8399 = vmatpush3.bf16.msra.mxu0 %v8550_v27 }
0x170f   :  { %v5466_v1 = vsel %vm431_vm6, %v5465_v12, %v5464_v0  ;;  %v5747_v41 = vrot.slane %v11798_v53, 5  ;;  %v5730_v25 = vsel %vm419_vm2, %v5729_v59, %v5728_v17  ;;  %v5737_v28 = vrot.slane %v11799_v26, 3  ;;  %v11801_v12 = vld [vmem:[#allocation65_spill] sm:$0xff]  ;;  %v11804_v59 = vld [vmem:[#allocation67_spill] sm:$0xff]  ;;  %8412 = vmatprep.subr.bf16.mxu0 %v11778_v36 }
0x1710   :  { %v5468_v48 = vsel %vm434_vm7, %v5467_v9, %v5466_v1  ;;  %v5742_v50 = vsel %vm416_vm1, %v11800_v52, %v5741_v23  ;;  %v5749_v0 = vrot.slane %v11801_v12, 4  ;;  %v5732_v9 = vsel %vm422_vm3, %v5731_v31, %v5730_v25  ;;  %v11802_v1 = vld [vmem:[#allocation60_spill] sm:$0xff] }
0x1711   :  { %v5473_v5 = vsel %vm5472_vm15, %v5468_v48, 0.0  ;;  %v5739_v48 = vrot.slane %v11802_v1, 2  ;;  %v5751_v16 = vrot.slane %v11803_v8, 3  ;;  %v5734_v45 = vsel %vm425_vm4, %v5733_v35, %v5732_v9 }
0x1712   :  { %5474 = vadd.xlane.f32.xlu0 %v5473_v5  ;;  %v5744_v5 = vsel %vm419_vm2, %v5743_v46, %v5742_v50  ;;  %v5753_v49 = vrot.slane %v11804_v59, 2  ;;  %v5736_v17 = vsel %vm428_vm5, %v5735_v15, %v5734_v45 }
0x1713   :  { %v5746_v37 = vsel %vm422_vm3, %v5745_v19, %v5744_v5  ;;  %v5738_v11 = vsel %vm431_vm6, %v5737_v28, %v5736_v17 }
0x1714   :  { %v5748_v23 = vsel %vm425_vm4, %v5747_v41, %v5746_v37  ;;  %v5740_v46 = vsel %vm434_vm7, %v5739_v48, %v5738_v11 }
0x1715   :  { %v5750_v31 = vsel %vm428_vm5, %v5749_v0, %v5748_v23 }
0x1716   :  { %v5752_v32 = vsel %vm431_vm6, %v5751_v16, %v5750_v31 }
0x1717   :  { %v5754_v35 = vsel %vm434_vm7, %v5753_v49, %v5752_v32 }
0x1718   :  { %v5755_v19 = vpack.c.b16 %v5754_v35, %v5740_v46 }
0x171a   :  { %8401 = vmatmul.mubr.msk.bf16.vlgmr.msra.gmra.mrb[68].mxu0 %vm449_vm8, %v5755_v19 }
0x171b   :  { %8414 = vmatprep.mubr.msk.bf16.mxu0 %vm9163_vm0, %v11778_v36 }
0x179a   :  { %v5479_v15 = vpop.xlane.xlu1 %5478 }
0x179b   :  { %v5481_v27 = vmul.f32 0.03125, %v5479_v15 }
0x179d   :  { %v5490_v50 = vrot.slane %v5481_v27, 7 }
0x179f   :  { %v5475_v53 = vpop.xlane.xlu0 %5474 }
0x17a0   :  { %v5480_v41 = vmul.f32 0.03125, %v5475_v53 }
0x17a2   :  { %v5484_v25 = vrot.slane %v5480_v41, 1  ;;  %v5485_v26 = vrot.slane %v5480_v41, 2  ;;  %v5486_v28 = vrot.slane %v5480_v41, 3  ;;  %v5487_v52 = vrot.slane %v5480_v41, 4 }
0x17a3   :  { %v5488_v12 = vrot.slane %v5480_v41, 5  ;;  %v5489_v0 = vrot.slane %v5480_v41, 6  ;;  %v11008_v9 = vsub.f32 %v10944_v39, %v5480_v41 }
0x17a4   :  { %v11011_v1 = vsub.f32 %v10940_v13, %v5484_v25  ;;  %v11014_v48 = vsub.f32 %v10946_v3, %v5485_v26  ;;  %v11017_v5 = vsub.f32 %v10948_v42, %v5486_v28  ;;  %v11020_v8 = vsub.f32 %v10950_v21, %v5487_v52  ;;  %v8551_v26 = vld [vmem:[#allocation10] sm:$0xff]   ;;  %v8552_v28 = vld [vmem:[#allocation10 + $0x8] sm:$0xff]  }
0x17a5   :  { %v11023_v16 = vsub.f32 %v10952_v6, %v5488_v12  ;;  %v11026_v45 = vsub.f32 %v10956_v54, %v5489_v0  ;;  %v11035_v42 = vsub.f32 %v10942_v38, %v5490_v50  ;;  %v5507_v6 = vmul.f32 %v11008_v9, %v11008_v9  ;;  %8389 = vmatpush3.bf16.msra.mxu1 %v8551_v26  ;;  %v7976_v52 = vld [vmem:[#allocation17] ss:$0 sm:$0xff] }
0x17a6   :  { %v5508_v39 = vmul.f32 %v11011_v1, %v11011_v1  ;;  %v5509_v13 = vmul.f32 %v11014_v48, %v11014_v48  ;;  %v5510_v3 = vmul.f32 %v11017_v5, %v11017_v5  ;;  %v5511_v21 = vmul.f32 %v11020_v8, %v11020_v8  ;;  %8390 = vmatprep.subr.bf16.mxu1 %v11778_v36 }
0x17a7   :  { %v5512_v54 = vmul.f32 %v11023_v16, %v11023_v16  ;;  %v5513_v49 = vmul.f32 %v11026_v45, %v11026_v45  ;;  %v5514_v32 = vmul.f32 %v11035_v42, %v11035_v42 }
0x17a8   :  { %v5523_v37 = vrot.slane %v5508_v39, 7  ;;  %v5525_v59 = vrot.slane %v5509_v13, 6  ;;  %v5527_v23 = vrot.slane %v5510_v3, 5  ;;  %v5529_v11 = vrot.slane %v5511_v21, 4 }
0x17a9   :  { %v5531_v46 = vrot.slane %v5512_v54, 3  ;;  %v5533_v19 = vrot.slane %v5513_v49, 2  ;;  %v5535_v41 = vrot.slane %v5514_v32, 1  ;;  %8391 = vmatpush3.bf16.msra.mxu1 %v8552_v28 }
0x17aa   :  { %v5524_v17 = vsel %vm419_vm2, %v5523_v37, %v5507_v6  ;;  %8404 = vmatprep.subr.bf16.mxu1 %v11778_v36 }
0x17ab   :  { %v5526_v38 = vsel %vm422_vm3, %v5525_v59, %v5524_v17  ;;  %v5541_v25 = vsel %vm5476_vm14, %v5535_v41, 0.0 }
0x17ac   :  { %v5528_v31 = vsel %vm425_vm4, %v5527_v23, %v5526_v38  ;;  %v7970_v23 = vld [vmem:[#allocation7] ss:$0 sm:$0xff] }
0x17ad   :  { %v5530_v35 = vsel %vm428_vm5, %v5529_v11, %v5528_v31 }
0x17ae   :  { %v5532_v15 = vsel %vm431_vm6, %v5531_v46, %v5530_v35 }
0x17af   :  { %v5534_v27 = vsel %vm434_vm7, %v5533_v19, %v5532_v15  ;;  %v7971_v15 = vld [vmem:[#allocation8] ss:$0 sm:$0xff] }
0x17b0   :  { %v5538_v53 = vsel %vm5472_vm15, %v5534_v27, 0.0 }
0x17b1   :  { %5539 = vadd.xlane.f32.xlu0 %v5538_v53 }
0x17b5   :  { %5542 = vadd.xlane.f32.xlu0 %v5541_v25 }
0x17ed   :  { %v5805_v50 = vpop.f32.mrb[68].mxu0 }
0x17ee   :  { %v11057_v12 = vadd.f32 %v7976_v52, %v5805_v50  ;;  %v8402_v0 = vpop.f32.mrb[69].mxu0 }
0x17ef   :  { %v5808_v39 = vpop.f32.mrb[70].mxu0 }
0x17f0   :  { %6061 = vrot.lane.b32.xlu1 %v11057_v12, %s9165_s25  ;;  %v11061_v13 = vadd.f32 %v7976_v52, %v5808_v39  ;;  %v8403_v3 = vpop.f32.mrb[71].mxu0 }
0x17f2   :  { %6063 = vrot.lane.b32.xlu0 %v11061_v13, %s9165_s25 }
0x17f4   :  { %6067 = vrot.lane.b32.xlu1 %v11057_v12, %s9167_s8 }
0x17f6   :  { %6073 = vrot.lane.b32.xlu0 %v11057_v12, %s9164_s16 }
0x17f8   :  { %6069 = vrot.lane.b32.xlu1 %v11061_v13, %s9167_s8 }
0x17fc   :  { %6075 = vrot.lane.b32.xlu1 %v11061_v13, %s9164_s16 }
0x183e   :  { %v5540_v21 = vpop.xlane.xlu0 %5539 }
0x183f   :  { %v5544_v6 = vmul.f32 0.03125, %v5540_v21 }
0x1841   :  { %v5546_v54 = vadd.f32 1e-05, %v5544_v6 }
0x1842   :  { %v5543_v37 = vpop.xlane.xlu0 %5542 }
0x1843   :  { %8615 = vrsqrt.f32 %v5546_v54  ;;  %v5545_v59 = vmul.f32 0.03125, %v5543_v37 }
0x1845   :  { %v5547_v49 = vadd.f32 1e-05, %v5545_v59 }
0x1847   :  { %8617 = vrsqrt.f32 %v5547_v49  ;;  %v8669_v49 = vld [vmem:[%s11747_s23] sm:$0x3] }
0x184d   :  { %v8616_v17 = vpop.eup %8615 }
0x184e   :  { %v5552_v38 = vrot.slane %v8616_v17, 1  ;;  %v5553_v11 = vrot.slane %v8616_v17, 2  ;;  %v5554_v31 = vrot.slane %v8616_v17, 3  ;;  %v5555_v46 = vrot.slane %v8616_v17, 4 }
0x184f   :  { %v5556_v32 = vrot.slane %v8616_v17, 5  ;;  %v5557_v35 = vrot.slane %v8616_v17, 6  ;;  %v5567_v19 = vmul.f32 %v8616_v17, %v11008_v9 }
0x1850   :  { %v5568_v27 = vmul.f32 %v5552_v38, %v11011_v1  ;;  %v5569_v53 = vmul.f32 %v5553_v11, %v11014_v48  ;;  %v5570_v41 = vmul.f32 %v5554_v31, %v11017_v5  ;;  %v5571_v25 = vmul.f32 %v5555_v46, %v11020_v8  ;;  %v8671_v31 = vld [vmem:[%s11747_s23 + $0x4] sm:$0x3] }
0x1851   :  { %v8618_v26 = vpop.eup %8617  ;;  %v5572_v28 = vmul.f32 %v5556_v32, %v11023_v16  ;;  %v5573_v52 = vmul.f32 %v5557_v35, %v11026_v45  ;;  %v5581_v50 = vmul.f32 %v7970_v23, %v5567_v19  ;;  %v8672_v32 = vld [vmem:[%s11747_s23 + $0x6] sm:$0x3] }
0x1852   :  { %v5558_v0 = vrot.slane %v8618_v26, 7  ;;  %v5582_v39 = vmul.f32 %v7970_v23, %v5568_v27  ;;  %v5583_v3 = vmul.f32 %v7970_v23, %v5569_v53  ;;  %v5584_v21 = vmul.f32 %v7970_v23, %v5570_v41  ;;  %v8674_v27 = vld [vmem:[%s11747_s23 + $0xa] sm:$0x3]  ;;  %v8675_v41 = vld [vmem:[%s11747_s23 + $0xc] sm:$0x3] }
0x1853   :  { %v5585_v9 = vmul.f32 %v7970_v23, %v5571_v25  ;;  %v5586_v6 = vmul.f32 %v7970_v23, %v5572_v28  ;;  %v5587_v54 = vmul.f32 %v7970_v23, %v5573_v52  ;;  %v11080_v1 = vadd.f32 %v7971_v15, %v5581_v50 }
0x1854   :  { %v5574_v48 = vmul.f32 %v5558_v0, %v11035_v42  ;;  %v11083_v5 = vadd.f32 %v7971_v15, %v5582_v39  ;;  %v11085_v8 = vadd.f32 %v7971_v15, %v5583_v3  ;;  %v11087_v37 = vadd.f32 %v7971_v15, %v5584_v21  ;;  %v8670_v42 = vld [vmem:[%s11747_s23 + $0x2] sm:$0x3] }
0x1855   :  { %v11089_v16 = vadd.f32 %v7971_v15, %v5585_v9  ;;  %v11091_v45 = vadd.f32 %v7971_v15, %v5586_v6  ;;  %v11093_v59 = vadd.f32 %v7971_v15, %v5587_v54  ;;  %v5603_v17 = vadd.f32 %v8669_v49, %v11080_v1  ;;  %v8676_v6 = vld [vmem:[%s11747_s23 + $0xe] sm:$0x3] }
0x1856   :  { %v5588_v38 = vmul.f32 %v7970_v23, %v5574_v48  ;;  %v5604_v11 = vadd.f32 %v8670_v42, %v11083_v5  ;;  %v5605_v46 = vadd.f32 %v8671_v31, %v11085_v8  ;;  %v5606_v35 = vadd.f32 %v8672_v32, %v11087_v37  ;;  %v8673_v23 = vld [vmem:[%s11747_s23 + $0x8] sm:$0x3] }
0x1857   :  { %v5607_v19 = vadd.f32 %v8673_v23, %v11089_v16  ;;  %v5608_v53 = vadd.f32 %v8674_v27, %v11091_v45  ;;  %v5609_v25 = vadd.f32 %v8675_v41, %v11093_v59  ;;  %v5611_v26 = vpack.c.bf16 %v5603_v17, %v5603_v17 }
0x1858   :  { %v11123_v28 = vadd.f32 %v7971_v15, %v5588_v38  ;;  %v5612_v52 = vpack.c.bf16 %v5604_v11, %v5604_v11  ;;  %v5613_v50 = vpack.c.bf16 %v5605_v46, %v5605_v46  ;;  %v5614_v0 = vpack.c.bf16 %v5606_v35, %v5606_v35 }
0x1859   :  { %v5615_v39 = vpack.c.bf16 %v5607_v19, %v5607_v19  ;;  %v5616_v3 = vpack.c.bf16 %v5608_v53, %v5608_v53  ;;  %v5617_v21 = vpack.c.bf16 %v5609_v25, %v5609_v25  ;;  %v5638_v9 = vunpack.c.l.b16 %v5611_v26 }
0x185a   :  { %v5610_v54 = vadd.f32 %v8676_v6, %v11123_v28  ;;  %v5639_v48 = vunpack.c.l.b16 %v5612_v52  ;;  %v5640_v49 = vunpack.c.l.b16 %v5613_v50  ;;  %v5641_v42 = vunpack.c.l.b16 %v5614_v0 }
0x185b   :  { %v5642_v31 = vunpack.c.l.b16 %v5615_v39  ;;  %v5643_v17 = vunpack.c.l.b16 %v5616_v3  ;;  %v5646_v15 = vrot.slane %v5638_v9, 1  ;;  %v5644_v11 = vunpack.c.l.b16 %v5617_v21  ;;  %v8553_v3 = vld [vmem:[#allocation13] sm:$0xff]  }
0x185c   :  { %v5618_v38 = vpack.c.bf16 %v5610_v54, %v5610_v54  ;;  %v5648_v46 = vrot.slane %v5640_v49, 7  ;;  %v5650_v32 = vrot.slane %v5641_v42, 6 }
0x185d   :  { %v5647_v35 = vsel %vm416_vm1, %v5639_v48, %v5646_v15  ;;  %v5652_v27 = vrot.slane %v5642_v31, 5  ;;  %v5654_v41 = vrot.slane %v5643_v17, 4  ;;  %v5656_v52 = vrot.slane %v5644_v11, 3 }
0x185e   :  { %v5645_v23 = vunpack.c.l.b16 %v5618_v38  ;;  %v5649_v19 = vsel %vm419_vm2, %v5648_v46, %v5647_v35 }
0x185f   :  { %v5651_v53 = vsel %vm422_vm3, %v5650_v32, %v5649_v19 }
0x1860   :  { %v5658_v25 = vrot.slane %v5645_v23, 2  ;;  %v5653_v26 = vsel %vm425_vm4, %v5652_v27, %v5651_v53 }
0x1861   :  { %v5655_v50 = vsel %vm428_vm5, %v5654_v41, %v5653_v26 }
0x1862   :  { %v5657_v0 = vsel %vm431_vm6, %v5656_v52, %v5655_v50  ;;  %v6062_v9 = vpop.permute.xlu1 %6061 }
0x1863   :  { %v5659_v39 = vsel %vm434_vm7, %v5658_v25, %v5657_v0 }
0x1864   :  { %v5660_v21 = vpack.c.b16 %v5659_v39, %v5659_v39  ;;  %v6064_v54 = vpop.permute.xlu0 %6063 }
0x1866   :  { %8393 = vmatmul.mubr.msk.bf16.vlgmr.msra.gmra.mrb[76].mxu1 %vm449_vm8, %v5660_v21  ;;  %v6068_v6 = vpop.permute.xlu1 %6067 }
0x1867   :  { %8405 = vmatpush3.bf16.msra.mxu1 %v8553_v3  ;;  %8408 = vmatprep.mubr.msk.bf16.mxu1 %vm9163_vm0, %v11778_v36  ;;  %v6079_v31 = vcombine.low %v11057_v12, %v6068_v6  ;;  %v6080_v17 = vcombine.high %v11057_v12, %v6068_v6 }
0x1868   :  { %8406 = vmatprep.subr.bf16.mxu1 %v11778_v36  ;;  %v6074_v49 = vpop.permute.xlu0 %6073 }
0x1869   :  { %v6095_v15 = vcombine.low %v6062_v9, %v6074_v49  ;;  %v6096_v38 = vcombine.high %v6062_v9, %v6074_v49  ;;  %v6087_v23 = vrot.slane %v6079_v31, %v9742_v56  ;;  %v6094_v19 = vrot.slane %v6080_v17, %v9742_v56 }
0x186a   :  { %v6070_v48 = vpop.permute.xlu1 %6069 }
0x186b   :  { %v6147_v11 = vcombine.low %v11061_v13, %v6070_v48  ;;  %v6148_v32 = vcombine.high %v11061_v13, %v6070_v48  ;;  %v6103_v27 = vrot.slane %v6095_v15, %v9742_v56  ;;  %v6110_v53 = vrot.slane %v6096_v38, %v9742_v56 }
0x186d   :  { %v6155_v41 = vrot.slane %v6147_v11, %v9742_v56  ;;  %v6162_v25 = vrot.slane %v6148_v32, %v9742_v56  ;;  %v6111_v52 = vcombine.low %v6087_v23, %v6103_v27  ;;  %v6112_v50 = vcombine.high %v6087_v23, %v6103_v27 }
0x186e   :  { %v6076_v42 = vpop.permute.xlu1 %6075  ;;  %v6127_v13 = vcombine.low %v6094_v19, %v6110_v53  ;;  %v6128_v0 = vcombine.high %v6094_v19, %v6110_v53 }
0x186f   :  { %v6163_v46 = vcombine.low %v6064_v54, %v6076_v42  ;;  %v6164_v35 = vcombine.high %v6064_v54, %v6076_v42  ;;  %v6119_v6 = vrot.slane %v6111_v52, %v9744_v63  ;;  %v6126_v54 = vrot.slane %v6112_v50, %v9744_v63  ;;  %v8554_v50 = vld [vmem:[#allocation13 + $0x8] sm:$0xff]  }
0x1870   :  { %v6135_v48 = vrot.slane %v6127_v13, %v9744_v63  ;;  %v6142_v49 = vrot.slane %v6128_v0, %v9744_v63  ;;  %v5823_v13 = vrot.slane %v10342_v44, 1  ;;  %v5837_v0 = vrot.slane %v10352_v40, 1  ;;  %8407 = vmatpush3.bf16.msra.mxu1 %v8554_v50 }
0x1871   :  { %v6171_v12 = vrot.slane %v6163_v46, %v9742_v56  ;;  %v6178_v26 = vrot.slane %v6164_v35, %v9742_v56  ;;  %v6215_v38 = vcombine.low %v6119_v6, %v6126_v54  ;;  %v7986_v11 = vcombine.high %v6119_v6, %v6126_v54  ;;  %8418 = vmatprep.subr.bf16.mxu1 %v11778_v36 }
0x1872   :  { %v6231_v46 = vcombine.low %v6135_v48, %v6142_v49  ;;  %v7987_v32 = vcombine.high %v6135_v48, %v6142_v49  ;;  %v5824_v6 = vsel %vm416_vm1, %v10334_v47, %v5823_v13  ;;  %v5827_v54 = vrot.slane %v10344_v62, 6 }
0x1873   :  { %v6179_v39 = vcombine.low %v6155_v41, %v6171_v12  ;;  %v6180_v3 = vcombine.high %v6155_v41, %v6171_v12  ;;  %v6195_v21 = vcombine.low %v6162_v25, %v6178_v26  ;;  %v6196_v9 = vcombine.high %v6162_v25, %v6178_v26 }
0x1874   :  { %v6222_v53 = vrot.slane %v6215_v38, %v9742_v56  ;;  %v6230_v41 = vrot.slane %v7986_v11, %v9742_v56  ;;  %v6238_v12 = vrot.slane %v6231_v46, %v9742_v56  ;;  %v6246_v25 = vrot.slane %v7987_v32, %v9742_v56  ;;  %v11805_v11 = vld [vmem:[#allocation68_spill] sm:$0xff] }
0x1875   :  { %v6187_v42 = vrot.slane %v6179_v39, %v9744_v63  ;;  %v6194_v31 = vrot.slane %v6180_v3, %v9744_v63  ;;  %v6203_v17 = vrot.slane %v6195_v21, %v9744_v63  ;;  %v6210_v15 = vrot.slane %v6196_v9, %v9744_v63 }
0x1876   :  { %v5825_v21 = vrot.slane %v10336_v61, 7  ;;  %v5839_v9 = vrot.slane %v10365_v14, 7  ;;  %v5838_v48 = vsel %vm416_vm1, %v10360_v10, %v5837_v0  ;;  %v5841_v44 = vrot.slane %v10367_v30, 6 }
0x1877   :  { %v6283_v35 = vcombine.low %v6187_v42, %v6194_v31  ;;  %v7988_v23 = vcombine.high %v6187_v42, %v6194_v31  ;;  %v6299_v19 = vcombine.low %v6203_v17, %v6210_v15  ;;  %v7989_v27 = vcombine.high %v6203_v17, %v6210_v15 }
0x1878   :  { %v5826_v40 = vsel %vm419_vm2, %v5825_v21, %v5824_v6  ;;  %v5829_v49 = vrot.slane %v10350_v29, 5  ;;  %v5840_v61 = vsel %vm419_vm2, %v5839_v9, %v5838_v48  ;;  %v5843_v14 = vrot.slane %v10369_v2, 5 }
0x1879   :  { %v6290_v26 = vrot.slane %v6283_v35, %v9742_v56  ;;  %v6298_v52 = vrot.slane %v7988_v23, %v9742_v56  ;;  %v6306_v39 = vrot.slane %v6299_v19, %v9742_v56  ;;  %v6314_v3 = vrot.slane %v7989_v27, %v9742_v56 }
0x187a   :  { %v5828_v42 = vsel %vm422_vm3, %v5827_v54, %v5826_v40  ;;  %v5831_v47 = vrot.slane %v10358_v33, 4  ;;  %v5842_v62 = vsel %vm422_vm3, %v5841_v44, %v5840_v61  ;;  %v5845_v10 = vrot.slane %v10373_v58, 4 }
0x187b   :  { %v5830_v30 = vsel %vm425_vm4, %v5829_v49, %v5828_v42  ;;  %v5833_v31 = vrot.slane %v10363_v57, 3  ;;  %v5844_v17 = vsel %vm425_vm4, %v5843_v14, %v5842_v62  ;;  %v5847_v29 = vrot.slane %v10375_v43, 3 }
0x187c   :  { %v5832_v15 = vsel %vm428_vm5, %v5831_v47, %v5830_v30  ;;  %v5835_v2 = vrot.slane %v10371_v4, 2  ;;  %v5846_v38 = vsel %vm428_vm5, %v5845_v10, %v5844_v17  ;;  %v5849_v33 = vrot.slane %v11805_v11, 2  ;;  %v7972_v30 = vld [vmem:[#allocation16] ss:$0 sm:$0xff]  ;;  %v7980_v11 = vld [vmem:[#allocation19] ss:$0 sm:$0xff] }
0x187d   :  { %v5834_v46 = vsel %vm431_vm6, %v5833_v31, %v5832_v15  ;;  %v5848_v58 = vsel %vm431_vm6, %v5847_v29, %v5846_v38  ;;  %v6247_v32 = vcombine.low %v6222_v53, %v6230_v41  ;;  %v6263_v35 = vcombine.low %v6238_v12, %v6246_v25 }
0x187e   :  { %v5836_v57 = vsel %vm434_vm7, %v5835_v2, %v5834_v46  ;;  %v5850_v23 = vsel %vm434_vm7, %v5849_v33, %v5848_v58  ;;  %v6315_v19 = vcombine.low %v6290_v26, %v6298_v52  ;;  %v6331_v43 = vcombine.low %v6306_v39, %v6314_v3 }
0x187f   :  { %v5851_v27 = vpack.c.b16 %v5850_v23, %v5836_v57  ;;  %v6255_v50 = vrot.slane %v6247_v32, %v9744_v63  ;;  %v6271_v4 = vrot.slane %v6263_v35, %v9744_v63  ;;  %v6248_v13 = vcombine.high %v6222_v53, %v6230_v41 }
0x1880   :  { %v6323_v0 = vrot.slane %v6315_v19, %v9744_v63  ;;  %v6339_v21 = vrot.slane %v6331_v43, %v9744_v63  ;;  %v6264_v9 = vcombine.high %v6238_v12, %v6246_v25  ;;  %v6316_v6 = vcombine.high %v6290_v26, %v6298_v52 }
0x1881   :  { %8409 = vmatmul.mubr.msk.bf16.vlgmr.msra.gmra.mrb[80].mxu1 %vm449_vm8, %v5851_v27  ;;  %v6279_v54 = vcombine.low %v6255_v50, %v6271_v4  ;;  %v6280_v48 = vcombine.high %v6255_v50, %v6271_v4  ;;  %v6262_v44 = vrot.slane %v6248_v13, %v9744_v63  ;;  %v6332_v40 = vcombine.high %v6306_v39, %v6314_v3 }
0x1882   :  { %v6347_v49 = vcombine.low %v6323_v0, %v6339_v21  ;;  %v6348_v61 = vcombine.high %v6323_v0, %v6339_v21  ;;  %8420 = vmatprep.mubr.msk.bf16.mxu1 %vm9163_vm0, %v11778_v36  ;;  %v6278_v53 = vrot.slane %v6264_v9, %v9744_v63  ;;  %v6330_v41 = vrot.slane %v6316_v6, %v9744_v63 }
0x1883   :  { %v6346_v14 = vrot.slane %v6332_v40, %v9744_v63 }
0x1884   :  { %v6351_v12 = vpack.c.bf16 %v6347_v49, %v6279_v54  ;;  %v6352_v25 = vpack.c.bf16 %v6348_v61, %v6280_v48  ;;  %v6281_v26 = vcombine.low %v6262_v44, %v6278_v53  ;;  %v6282_v52 = vcombine.high %v6262_v44, %v6278_v53 }
0x1885   :  { %v6349_v42 = vcombine.low %v6330_v41, %v6346_v14  ;;  %v6350_v47 = vcombine.high %v6330_v41, %v6346_v14 }
0x1886   :  { %v6655_v62 = vsel %vm1058_vm9, %v6351_v12, 0  ;;  %v6701_v39 = vsel %vm1058_vm9, %v6352_v25, 0 }
0x1887   :  { %8413 = vmatpush3.bf16.xpose.msra.mxu0 %v6655_v62  ;;  %8419 = vmatpush3.bf16.xpose.msra.mxu1 %v6701_v39  ;;  %v11212_v3 = vpack.c.bf16 %v6349_v42, %v6281_v26  ;;  %v11214_v10 = vpack.c.bf16 %v6350_v47, %v6282_v52 }
0x1888   :  { %8424 = vmatprep.subr.bf16.mxu0 %v11778_v36  ;;  %8430 = vmatprep.subr.bf16.mxu1 %v11778_v36 }
0x1939   :  { %v5710_v31 = vpop.f32.mrb[76].mxu1 }
0x193a   :  { %v5711_v17 = vadd.f32 %v7972_v30, %v5710_v31  ;;  %v8394_v29 = vpop.f32.mrb[77].mxu1 }
0x193b   :  { %v5713_v15 = vpop.f32.mrb[78].mxu1 }
0x193c   :  { %v5908_v2 = vmul.f32 0.35355338, %v5711_v17  ;;  %v8395_v38 = vpop.f32.mrb[79].mxu1 }
0x193e   :  { %5913 = vrot.lane.b32.xlu1 %v5908_v2, %s9167_s8  ;;  %5910 = vrot.lane.b32.xlu0 %v5908_v2, %s9165_s25 }
0x1942   :  { %5916 = vrot.lane.b32.xlu0 %v5908_v2, %s9164_s16 }
0x1954   :  { %v5901_v33 = vpop.f32.mrb[80].mxu1 }
0x1955   :  { %v11221_v46 = vadd.f32 %v7980_v11, %v5901_v33  ;;  %v8410_v58 = vpop.f32.mrb[81].mxu1 }
0x1956   :  { %v5904_v32 = vpop.f32.mrb[82].mxu1 }
0x1957   :  { %v11223_v35 = vadd.f32 %v7980_v11, %v5904_v32  ;;  %v8411_v57 = vpop.f32.mrb[83].mxu1  ;;  %6357 = vrot.lane.b32.xlu0 %v11221_v46, %s9165_s25 }
0x1958   :  { %v6747_v57 = vsel %vm1058_vm9, %v11212_v3, 0 }
0x1959   :  { %6359 = vrot.lane.b32.xlu1 %v11223_v35, %s9165_s25 }
0x19b0   :  { %v5914_v23 = vpop.permute.xlu1 %5913  ;;  %v5911_v19 = vpop.permute.xlu0 %5910 }
0x19b1   :  { %v5919_v43 = vcombine.low %v5908_v2, %v5914_v23  ;;  %v5920_v27 = vcombine.high %v5908_v2, %v5914_v23  ;;  %v6793_v23 = vsel %vm1058_vm9, %v11214_v10, 0 }
0x19b3   :  { %v5927_v0 = vrot.slane %v5919_v43, %v9742_v56  ;;  %v5934_v21 = vrot.slane %v5920_v27, %v9742_v56 }
0x19b4   :  { %v5917_v50 = vpop.permute.xlu0 %5916 }
0x19b5   :  { %v5935_v4 = vcombine.low %v5911_v19, %v5917_v50  ;;  %v5936_v13 = vcombine.high %v5911_v19, %v5917_v50 }
0x19b7   :  { %v5943_v9 = vrot.slane %v5935_v4, %v9742_v56  ;;  %v5950_v6 = vrot.slane %v5936_v13, %v9742_v56 }
0x19b9   :  { %v5951_v54 = vcombine.low %v5927_v0, %v5943_v9  ;;  %v5952_v48 = vcombine.high %v5927_v0, %v5943_v9  ;;  %v5967_v44 = vcombine.low %v5934_v21, %v5950_v6  ;;  %v5968_v40 = vcombine.high %v5934_v21, %v5950_v6 }
0x19bb   :  { %v5959_v49 = vrot.slane %v5951_v54, %v9744_v63  ;;  %v5966_v61 = vrot.slane %v5952_v48, %v9744_v63  ;;  %v5975_v53 = vrot.slane %v5967_v44, %v9744_v63  ;;  %v5982_v41 = vrot.slane %v5968_v40, %v9744_v63 }
0x19bd   :  { %v5987_v14 = vcombine.low %v5959_v49, %v5966_v61  ;;  %v7984_v12 = vcombine.high %v5959_v49, %v5966_v61  ;;  %v6003_v25 = vcombine.low %v5975_v53, %v5982_v41  ;;  %v7985_v26 = vcombine.high %v5975_v53, %v5982_v41 }
0x19bf   :  { %v5994_v52 = vrot.slane %v5987_v14, %v9742_v56  ;;  %v6002_v42 = vrot.slane %v7984_v12, %v9742_v56  ;;  %v6010_v47 = vrot.slane %v6003_v25, %v9742_v56  ;;  %v6018_v62 = vrot.slane %v7985_v26, %v9742_v56 }
0x19c1   :  { %v6019_v39 = vcombine.low %v5994_v52, %v6002_v42  ;;  %v6035_v30 = vcombine.low %v6010_v47, %v6018_v62  ;;  %v6020_v31 = vcombine.high %v5994_v52, %v6002_v42  ;;  %v6036_v17 = vcombine.high %v6010_v47, %v6018_v62 }
0x19c3   :  { %v6027_v29 = vrot.slane %v6019_v39, %v9744_v63  ;;  %v6043_v15 = vrot.slane %v6035_v30, %v9744_v63  ;;  %v6034_v58 = vrot.slane %v6020_v31, %v9744_v63  ;;  %v6050_v32 = vrot.slane %v6036_v17, %v9744_v63 }
0x19c5   :  { %v6051_v2 = vcombine.low %v6027_v29, %v6043_v15  ;;  %v6052_v38 = vcombine.high %v6027_v29, %v6043_v15  ;;  %v6053_v19 = vcombine.low %v6034_v58, %v6050_v32  ;;  %v6054_v43 = vcombine.high %v6034_v58, %v6050_v32 }
0x19c7   :  { %v6055_v11 = vpack.c.bf16 %v6051_v2, %v6051_v2  ;;  %v6056_v33 = vpack.c.bf16 %v6052_v38, %v6052_v38  ;;  %v6057_v27 = vpack.c.bf16 %v6053_v19, %v6053_v19  ;;  %v6058_v50 = vpack.c.bf16 %v6054_v43, %v6054_v43 }
0x19c9   :  { %8415 = vmatmul.mubr.msk.bf16.vlgmr.msra.gmra.mrb[72].mxu0 %vm1058_vm9, %v6055_v11  ;;  %8421 = vmatmul.mubr.msk.bf16.vlgmr.msra.gmra.mrb[84].mxu1 %vm1058_vm9, %v6056_v33  ;;  %v6358_v52 = vpop.permute.xlu0 %6357 }
0x19ca   :  { %8425 = vmatpush3.bf16.xpose.msra.mxu0 %v6747_v57  ;;  %8431 = vmatpush3.bf16.xpose.msra.mxu1 %v6793_v23 }
0x19cb   :  { %8426 = vmatprep.mubr.msk.bf16.mxu0 %vm9163_vm0, %v11778_v36  ;;  %8432 = vmatprep.mubr.msk.bf16.mxu1 %vm9163_vm0, %v11778_v36  ;;  %v6360_v42 = vpop.permute.xlu1 %6359 }
0x19cc   :  { %8436 = vmatprep.subr.bf16.mxu0 %v11778_v36  ;;  %8442 = vmatprep.subr.bf16.mxu1 %v11778_v36 }
0x19d1   :  { %8427 = vmatmul.mubr.msk.bf16.vlgmr.msra.gmra.mrb[76].mxu0 %vm1058_vm9, %v6057_v27  ;;  %8433 = vmatmul.mubr.msk.bf16.vlgmr.msra.gmra.mrb[88].mxu1 %vm1058_vm9, %v6058_v50 }
0x19d2   :  { %8438 = vmatprep.mubr.msk.bf16.mxu0 %vm9163_vm0, %v11778_v36  ;;  %8444 = vmatprep.mubr.msk.bf16.mxu1 %vm9163_vm0, %v11778_v36 }
0x1a9c   :  { %v6691_v3 = vpop.f32.mrb[72].mxu0  ;;  %v6737_v10 = vpop.f32.mrb[84].mxu1 }
0x1a9d   :  { %v8416_v4 = vpop.f32.mrb[73].mxu0  ;;  %v8422_v13 = vpop.f32.mrb[85].mxu1  ;;  %v6835_v0 = vsel %vm1625_vm11, %v6691_v3, -inf  ;;  %v6838_v21 = vsel %vm1625_vm11, %v6737_v10, -inf }
0x1a9e   :  { %v6694_v9 = vpop.f32.mrb[74].mxu0  ;;  %6836 = vmax.xlane.f32.xlu1 %v6835_v0  ;;  %6839 = vmax.xlane.f32.xlu0 %v6838_v21  ;;  %v6740_v6 = vpop.f32.mrb[86].mxu1 }
0x1a9f   :  { %v8417_v54 = vpop.f32.mrb[75].mxu0  ;;  %v8423_v48 = vpop.f32.mrb[87].mxu1 }
0x1aa4   :  { %v6783_v44 = vpop.f32.mrb[76].mxu0  ;;  %v6829_v40 = vpop.f32.mrb[88].mxu1 }
0x1aa5   :  { %v8428_v49 = vpop.f32.mrb[77].mxu0  ;;  %v8434_v61 = vpop.f32.mrb[89].mxu1  ;;  %v6841_v53 = vsel %vm1625_vm11, %v6783_v44, -inf  ;;  %v6844_v41 = vsel %vm1625_vm11, %v6829_v40, -inf }
0x1aa6   :  { %v6786_v14 = vpop.f32.mrb[78].mxu0  ;;  %6842 = vmax.xlane.f32.xlu0 %v6841_v53  ;;  %6845 = vmax.xlane.f32.xlu1 %v6844_v41  ;;  %v6832_v12 = vpop.f32.mrb[90].mxu1 }
0x1aa7   :  { %v8429_v25 = vpop.f32.mrb[79].mxu0  ;;  %v8435_v26 = vpop.f32.mrb[91].mxu1 }
0x1ab7   :  { %6363 = vrot.lane.b32.xlu1 %v11221_v46, %s9167_s8 }
0x1abc   :  { %6365 = vrot.lane.b32.xlu0 %v11223_v35, %s9167_s8 }
0x1b2b   :  { %v6837_v47 = vpop.xlane.xlu1 %6836  ;;  %v6840_v62 = vpop.xlane.xlu0 %6839 }
0x1b2c   :  { %v6847_v39 = vsub.f32 %v6691_v3, %v6837_v47  ;;  %v6848_v30 = vsub.f32 %v6737_v10, %v6840_v62 }
0x1b2e   :  { %v6851_v31 = vmul.f32 1.442695, %v6847_v39  ;;  %v6853_v17 = vmul.f32 1.442695, %v6848_v30 }
0x1b30   :  { %8619 = vpow2.f32 %v6851_v31 }
0x1b31   :  { %8621 = vpow2.f32 %v6853_v17 }
0x1b33   :  { %v6846_v11 = vpop.xlane.xlu1 %6845  ;;  %v6843_v33 = vpop.xlane.xlu0 %6842 }
0x1b34   :  { %v6850_v58 = vsub.f32 %v6829_v40, %v6846_v11  ;;  %v6849_v32 = vsub.f32 %v6783_v44, %v6843_v33 }
0x1b36   :  { %v6857_v57 = vmul.f32 1.442695, %v6850_v58  ;;  %v6855_v23 = vmul.f32 1.442695, %v6849_v32 }
0x1b37   :  { %v6366_v3 = vpop.permute.xlu0 %6365  ;;  %v6364_v10 = vpop.permute.xlu1 %6363 }
0x1b38   :  { %8623 = vpow2.f32 %v6857_v57  ;;  %v6443_v0 = vcombine.low %v11223_v35, %v6366_v3  ;;  %v6444_v21 = vcombine.high %v11223_v35, %v6366_v3  ;;  %v6375_v9 = vcombine.low %v11221_v46, %v6364_v10 }
0x1b39   :  { %8625 = vpow2.f32 %v6855_v23  ;;  %v6376_v6 = vcombine.high %v11221_v46, %v6364_v10 }
0x1b3a   :  { %v11271_v29 = vpop.eup %8619  ;;  %v6451_v53 = vrot.slane %v6443_v0, %v9742_v56  ;;  %v6458_v41 = vrot.slane %v6444_v21, %v9742_v56 }
0x1b3b   :  { %v11273_v15 = vpop.eup %8621  ;;  %v6859_v2 = vsel %vm1625_vm11, %v11271_v29, 0.0  ;;  %v6390_v25 = vrot.slane %v6376_v6, %v9742_v56 }
0x1b3c   :  { %6860 = vadd.xlane.f32.xlu0 %v6859_v2  ;;  %v6862_v38 = vsel %vm1625_vm11, %v11273_v15, 0.0 }
0x1b3d   :  { %6863 = vadd.xlane.f32.xlu1 %v6862_v38 }
0x1b42   :  { %v11283_v19 = vpop.eup %8623 }
0x1b43   :  { %v11285_v43 = vpop.eup %8625  ;;  %v6868_v27 = vsel %vm1625_vm11, %v11283_v19, 0.0 }
0x1b44   :  { %v6865_v50 = vsel %vm1625_vm11, %v11285_v43, 0.0 }
0x1b4e   :  { %6369 = vrot.lane.b32.xlu1 %v11221_v46, %s9164_s16 }
0x1b52   :  { %6371 = vrot.lane.b32.xlu0 %v11223_v35, %s9164_s16  ;;  %v6383_v35 = vrot.slane %v6375_v9, %v9742_v56 }
0x1b71   :  { %6869 = vadd.xlane.f32.xlu0 %v6868_v27 }
0x1b72   :  { %6866 = vadd.xlane.f32.xlu1 %v6865_v50 }
0x1bc9   :  { %v6861_v4 = vpop.xlane.xlu0 %6860 }
0x1bca   :  { %v6864_v13 = vpop.xlane.xlu1 %6863  ;;  %8627 = vrcp.f32 %v6861_v4 }
0x1bcb   :  { %8629 = vrcp.f32 %v6864_v13 }
0x1bcd   :  { %v6372_v54 = vpop.permute.xlu0 %6371 }
0x1bce   :  { %v6459_v48 = vcombine.low %v6360_v42, %v6372_v54  ;;  %v6460_v44 = vcombine.high %v6360_v42, %v6372_v54  ;;  %v6370_v40 = vpop.permute.xlu1 %6369 }
0x1bcf   :  { %v6391_v49 = vcombine.low %v6358_v52, %v6370_v40  ;;  %v6392_v61 = vcombine.high %v6358_v52, %v6370_v40 }
0x1bd0   :  { %v6467_v14 = vrot.slane %v6459_v48, %v9742_v56  ;;  %v6474_v12 = vrot.slane %v6460_v44, %v9742_v56 }
0x1bd1   :  { %v6399_v46 = vrot.slane %v6391_v49, %v9742_v56  ;;  %v6406_v26 = vrot.slane %v6392_v61, %v9742_v56 }
0x1bd2   :  { %v6475_v42 = vcombine.low %v6451_v53, %v6467_v14  ;;  %v6476_v47 = vcombine.high %v6451_v53, %v6467_v14  ;;  %v6491_v62 = vcombine.low %v6458_v41, %v6474_v12  ;;  %v6492_v52 = vcombine.high %v6458_v41, %v6474_v12 }
0x1bd3   :  { %v6407_v39 = vcombine.low %v6383_v35, %v6399_v46  ;;  %v6408_v30 = vcombine.high %v6383_v35, %v6399_v46  ;;  %v6423_v31 = vcombine.low %v6390_v25, %v6406_v26  ;;  %v6424_v17 = vcombine.high %v6390_v25, %v6406_v26 }
0x1bd4   :  { %v6483_v2 = vrot.slane %v6475_v42, %v9744_v63  ;;  %v6490_v38 = vrot.slane %v6476_v47, %v9744_v63  ;;  %v6499_v11 = vrot.slane %v6491_v62, %v9744_v63  ;;  %v6506_v33 = vrot.slane %v6492_v52, %v9744_v63  ;;  %v8628_v52 = vpop.eup %8627 }
0x1bd5   :  { %v6415_v58 = vrot.slane %v6407_v39, %v9744_v63  ;;  %v6422_v32 = vrot.slane %v6408_v30, %v9744_v63  ;;  %v6431_v57 = vrot.slane %v6423_v31, %v9744_v63  ;;  %v6438_v10 = vrot.slane %v6424_v17, %v9744_v63  ;;  %v8630_v17 = vpop.eup %8629 }
0x1bd6   :  { %v6579_v23 = vcombine.low %v6483_v2, %v6490_v38  ;;  %v7992_v27 = vcombine.high %v6483_v2, %v6490_v38  ;;  %v6595_v50 = vcombine.low %v6499_v11, %v6506_v33  ;;  %v7993_v3 = vcombine.high %v6499_v11, %v6506_v33 }
0x1bd7   :  { %v6511_v0 = vcombine.low %v6415_v58, %v6422_v32  ;;  %v7990_v21 = vcombine.high %v6415_v58, %v6422_v32  ;;  %v6527_v44 = vcombine.low %v6431_v57, %v6438_v10  ;;  %v7991_v40 = vcombine.high %v6431_v57, %v6438_v10 }
0x1bd8   :  { %v6586_v9 = vrot.slane %v6579_v23, %v9742_v56  ;;  %v6594_v6 = vrot.slane %v7992_v27, %v9742_v56  ;;  %v6602_v4 = vrot.slane %v6595_v50, %v9742_v56  ;;  %v6610_v54 = vrot.slane %v7993_v3, %v9742_v56 }
0x1bd9   :  { %v6518_v48 = vrot.slane %v6511_v0, %v9742_v56  ;;  %v6526_v13 = vrot.slane %v7990_v21, %v9742_v56  ;;  %v6534_v53 = vrot.slane %v6527_v44, %v9742_v56  ;;  %v6542_v35 = vrot.slane %v7991_v40, %v9742_v56 }
0x1bda   :  { %v6611_v49 = vcombine.low %v6586_v9, %v6594_v6  ;;  %v6612_v61 = vcombine.high %v6586_v9, %v6594_v6  ;;  %v6627_v14 = vcombine.low %v6602_v4, %v6610_v54  ;;  %v6628_v46 = vcombine.high %v6602_v4, %v6610_v54 }
0x1bdb   :  { %v6543_v41 = vcombine.low %v6518_v48, %v6526_v13  ;;  %v6544_v12 = vcombine.high %v6518_v48, %v6526_v13  ;;  %v6559_v47 = vcombine.low %v6534_v53, %v6542_v35  ;;  %v6560_v62 = vcombine.high %v6534_v53, %v6542_v35 }
0x1bdc   :  { %v6619_v25 = vrot.slane %v6611_v49, %v9744_v63  ;;  %v6635_v26 = vrot.slane %v6627_v14, %v9744_v63  ;;  %v6626_v30 = vrot.slane %v6612_v61, %v9744_v63  ;;  %v6642_v31 = vrot.slane %v6628_v46, %v9744_v63 }
0x1bdd   :  { %v6551_v42 = vrot.slane %v6543_v41, %v9744_v63  ;;  %v6558_v39 = vrot.slane %v6544_v12, %v9744_v63  ;;  %v6567_v2 = vrot.slane %v6559_v47, %v9744_v63  ;;  %v6574_v33 = vrot.slane %v6560_v62, %v9744_v63 }
0x1bde   :  { %v6643_v38 = vcombine.low %v6619_v25, %v6635_v26  ;;  %v6644_v11 = vcombine.high %v6619_v25, %v6635_v26  ;;  %v6875_v57 = vmul.f32 %v8628_v52, %v11271_v29  ;;  %v6876_v23 = vmul.f32 %v8630_v17, %v11273_v15 }
0x1bdf   :  { %v6575_v58 = vcombine.low %v6551_v42, %v6567_v2  ;;  %v6576_v32 = vcombine.high %v6551_v42, %v6567_v2  ;;  %v6645_v27 = vcombine.low %v6626_v30, %v6642_v31  ;;  %v6646_v50 = vcombine.high %v6626_v30, %v6642_v31 }
0x1be0   :  { %v6577_v0 = vcombine.low %v6558_v39, %v6574_v33  ;;  %v6578_v21 = vcombine.high %v6558_v39, %v6574_v33  ;;  %v6879_v9 = vpack.c.bf16 %v6875_v57, %v6875_v57  ;;  %v6880_v6 = vpack.c.bf16 %v6876_v23, %v6876_v23 }
0x1be1   :  { %v6647_v3 = vpack.c.bf16 %v6643_v38, %v6575_v58  ;;  %v6648_v10 = vpack.c.bf16 %v6644_v11, %v6576_v32 }
0x1be2   :  { %v6649_v4 = vpack.c.bf16 %v6645_v27, %v6577_v0  ;;  %v6650_v54 = vpack.c.bf16 %v6646_v50, %v6578_v21 }
0x1be3   :  { %8437 = vmatpush3.bf16.msra.mxu0 %v6647_v3  ;;  %8443 = vmatpush3.bf16.msra.mxu1 %v6648_v10  ;;  %v8555_v3 = vld [vmem:[#allocation14] sm:$0xff]  }
0x1be4   :  { %8448 = vmatprep.subr.bf16.mxu0 %v11778_v36  ;;  %8454 = vmatprep.subr.bf16.mxu1 %v11778_v36 }
0x1be6   :  { %8439 = vmatmul.mubr.msk.bf16.vlgmr.msra.gmra.mrb[80].mxu0 %vm1625_vm11, %v6879_v9  ;;  %8445 = vmatmul.mubr.msk.bf16.vlgmr.msra.gmra.mrb[92].mxu1 %vm1625_vm11, %v6880_v6 }
0x1be7   :  { %8449 = vmatpush3.bf16.msra.mxu0 %v6649_v4  ;;  %8455 = vmatpush3.bf16.msra.mxu1 %v6650_v54 }
0x1be8   :  { %8450 = vmatprep.mubr.msk.bf16.mxu0 %vm9163_vm0, %v11778_v36  ;;  %8456 = vmatprep.mubr.msk.bf16.mxu1 %vm9163_vm0, %v11778_v36 }
0x1be9   :  { %8460 = vmatprep.subr.bf16.mxu0 %v11778_v36  ;;  %8468 = vmatprep.subr.bf16.mxu1 %v11778_v36 }
0x1bfe   :  { %v6870_v29 = vpop.xlane.xlu0 %6869 }
0x1bff   :  { %8631 = vrcp.f32 %v6870_v29  ;;  %v6867_v15 = vpop.xlane.xlu1 %6866 }
0x1c00   :  { %8633 = vrcp.f32 %v6867_v15 }
0x1c09   :  { %v8632_v48 = vpop.eup %8631 }
0x1c0a   :  { %v8634_v13 = vpop.eup %8633  ;;  %v6878_v44 = vmul.f32 %v8632_v48, %v11283_v19 }
0x1c0b   :  { %v6877_v40 = vmul.f32 %v8634_v13, %v11285_v43 }
0x1c0c   :  { %v6882_v49 = vpack.c.bf16 %v6878_v44, %v6878_v44 }
0x1c0d   :  { %v6881_v61 = vpack.c.bf16 %v6877_v40, %v6877_v40  ;;  %v8556_v40 = vld [vmem:[#allocation14 + $0x8] sm:$0xff]  }
0x1c0e   :  { %8457 = vmatmul.mubr.msk.bf16.vlgmr.msra.gmra.mrb[96].mxu1 %vm1625_vm11, %v6882_v49 }
0x1c0f   :  { %8451 = vmatmul.mubr.msk.bf16.vlgmr.msra.gmra.mrb[84].mxu0 %vm1625_vm11, %v6881_v61  ;;  %8472 = vmatprep.mubr.msk.bf16.mxu1 %vm9163_vm0, %v11778_v36 }
0x1c10   :  { %8464 = vmatprep.mubr.msk.bf16.mxu0 %vm9163_vm0, %v11778_v36  ;;  %8461 = vmatpush3.bf16.msra.mxu0 %v8555_v3 }
0x1c11   :  { %8462 = vmatprep.subr.bf16.mxu0 %v11778_v36 }
0x1c14   :  { %8463 = vmatpush3.bf16.msra.mxu0 %v8556_v40 }
0x1c15   :  { %8476 = vmatprep.subr.bf16.mxu0 %v11778_v36 }
0x1cb9   :  { %v6920_v53 = vpop.f32.mrb[80].mxu0  ;;  %v6963_v41 = vpop.f32.mrb[92].mxu1 }
0x1cba   :  { %v8440_v14 = vpop.f32.mrb[81].mxu0  ;;  %v8446_v12 = vpop.f32.mrb[93].mxu1 }
0x1cbb   :  { %v6923_v35 = vpop.f32.mrb[82].mxu0  ;;  %v6966_v19 = vpop.f32.mrb[94].mxu1 }
0x1cbc   :  { %v8441_v25 = vpop.f32.mrb[83].mxu0  ;;  %v8447_v43 = vpop.f32.mrb[95].mxu1 }
0x1ce1   :  { %v7049_v46 = vpop.f32.mrb[96].mxu1 }
0x1ce2   :  { %v7006_v26 = vpop.f32.mrb[84].mxu0  ;;  %v7071_v42 = vcombine.low %v6963_v41, %v7049_v46  ;;  %v7072_v47 = vcombine.high %v6963_v41, %v7049_v46  ;;  %v8458_v62 = vpop.f32.mrb[97].mxu1 }
0x1ce3   :  { %v7055_v52 = vcombine.low %v6920_v53, %v7006_v26  ;;  %v7056_v39 = vcombine.high %v6920_v53, %v7006_v26  ;;  %v8452_v30 = vpop.f32.mrb[85].mxu0  ;;  %v7052_v31 = vpop.f32.mrb[98].mxu1 }
0x1ce4   :  { %v7079_v17 = vrot.slane %v7071_v42, %v9742_v56  ;;  %v7086_v2 = vrot.slane %v7072_v47, %v9742_v56  ;;  %v7009_v38 = vpop.f32.mrb[86].mxu0  ;;  %v8459_v11 = vpop.f32.mrb[99].mxu1  ;;  %v7934_v30 = vld [vmem:[#allocation28] ss:$0 sm:$0xff] }
0x1ce5   :  { %v7063_v33 = vrot.slane %v7055_v52, %v9742_v56  ;;  %v7070_v58 = vrot.slane %v7056_v39, %v9742_v56  ;;  %v8453_v32 = vpop.f32.mrb[87].mxu0  ;;  %v3996_v31 = vadd.f32 %v7934_v30, %v10790_v55 }
0x1ce7   :  { %v7087_v57 = vcombine.low %v7063_v33, %v7079_v17  ;;  %v7088_v23 = vcombine.high %v7063_v33, %v7079_v17  ;;  %v7103_v27 = vcombine.low %v7070_v58, %v7086_v2  ;;  %v7104_v50 = vcombine.high %v7070_v58, %v7086_v2 }
0x1ce8   :  { %v4002_v17 = vrot.slane %v3996_v31, 1  ;;  %v4003_v2 = vrot.slane %v3996_v31, 2  ;;  %v4004_v33 = vrot.slane %v3996_v31, 3  ;;  %v11383_v32 = vadd.f32 %v3996_v31, %v10685_v7 }
0x1ce9   :  { %v7095_v10 = vrot.slane %v7087_v57, %v9744_v63  ;;  %v7102_v0 = vrot.slane %v7088_v23, %v9744_v63  ;;  %v7111_v21 = vrot.slane %v7103_v27, %v9744_v63  ;;  %v7118_v9 = vrot.slane %v7104_v50, %v9744_v63 }
0x1cea   :  { %v11376_v38 = vadd.f32 %v4002_v17, %v10687_v24  ;;  %v11379_v11 = vadd.f32 %v4003_v2, %v10689_v22  ;;  %v4005_v57 = vrot.slane %v3996_v31, 4  ;;  %v11387_v27 = vadd.f32 %v4004_v33, %v10691_v18 }
0x1ceb   :  { %v7123_v6 = vcombine.low %v7095_v10, %v7102_v0  ;;  %v8002_v4 = vcombine.high %v7095_v10, %v7102_v0  ;;  %v7139_v54 = vcombine.low %v7111_v21, %v7118_v9  ;;  %v8003_v29 = vcombine.high %v7111_v21, %v7118_v9  ;;  %v8004_v21 = vld [vmem:[#allocation20] ss:$0 sm:$0xff] }
0x1cec   :  { %v4035_v58 = vrot.slane %v11376_v38, 7  ;;  %v4037_v23 = vrot.slane %v11379_v11, 6  ;;  %v4006_v24 = vrot.slane %v3996_v31, 5  ;;  %v11392_v50 = vadd.f32 %v4005_v57, %v10693_v20 }
0x1ced   :  { %v7130_v15 = vrot.slane %v7123_v6, %v9742_v56  ;;  %v7138_v48 = vrot.slane %v8002_v4, %v9742_v56  ;;  %v7146_v13 = vrot.slane %v7139_v54, %v9742_v56  ;;  %v7154_v44 = vrot.slane %v8003_v29, %v9742_v56 }
0x1cee   :  { %v4036_v55 = vsel %vm416_vm1, %v4035_v58, %v11383_v32  ;;  %v4007_v3 = vrot.slane %v3996_v31, 6  ;;  %v4039_v10 = vrot.slane %v11387_v27, 5  ;;  %v11397_v7 = vadd.f32 %v4006_v24, %v10695_v60 }
0x1cef   :  { %v7156_v49 = vcombine.high %v7130_v15, %v7138_v48  ;;  %v7172_v61 = vcombine.high %v7146_v13, %v7154_v44  ;;  %v7155_v53 = vcombine.low %v7130_v15, %v7138_v48  ;;  %v7171_v41 = vcombine.low %v7146_v13, %v7154_v44 }
0x1cf0   :  { %v4038_v22 = vsel %vm419_vm2, %v4037_v23, %v4036_v55  ;;  %v4041_v18 = vrot.slane %v11392_v50, 4  ;;  %v4008_v9 = vrot.slane %v3996_v31, 7  ;;  %v11402_v6 = vadd.f32 %v4007_v3, %v10697_v51 }
0x1cf1   :  { %v7170_v14 = vrot.slane %v7156_v49, %v9744_v63  ;;  %v7186_v12 = vrot.slane %v7172_v61, %v9744_v63  ;;  %v7163_v35 = vrot.slane %v7155_v53, %v9744_v63  ;;  %v7179_v19 = vrot.slane %v7171_v41, %v9744_v63 }
0x1cf2   :  { %v4040_v0 = vsel %vm422_vm3, %v4039_v10, %v4038_v22  ;;  %v4043_v54 = vrot.slane %v11397_v7, 3  ;;  %v11407_v60 = vadd.f32 %v4008_v9, %v10699_v34  ;;  %v4045_v44 = vrot.slane %v11402_v6, 2 }
0x1cf3   :  { %v7189_v25 = vcombine.low %v7170_v14, %v7186_v12  ;;  %v7188_v43 = vcombine.high %v7163_v35, %v7179_v19  ;;  %v7190_v46 = vcombine.high %v7170_v14, %v7186_v12  ;;  %v7187_v56 = vcombine.low %v7163_v35, %v7179_v19 }
0x1cf4   :  { %v4042_v20 = vsel %vm425_vm4, %v4041_v18, %v4040_v0 }
0x1cf5   :  { %7196 = vrot.lane.b32.xlu1 %v7189_v25, %s9170_s14  ;;  %7192 = vrot.lane.b32.xlu0 %v7188_v43, %s9171_s1  ;;  %v4044_v13 = vsel %vm428_vm5, %v4043_v54, %v4042_v20 }
0x1cf9   :  { %7200 = vrot.lane.b32.xlu1 %v7190_v46, %s9172_s15  ;;  %v4046_v46 = vsel %vm431_vm6, %v4045_v44, %v4044_v13 }
0x1d67   :  { %v7197_v26 = vpop.permute.xlu1 %7196  ;;  %v7193_v42 = vpop.permute.xlu0 %7192 }
0x1d68   :  { %v7203_v47 = vsel %vm1058_vm9, %v7187_v56, %v7193_v42 }
0x1d69   :  { %v7204_v52 = vsel %vm1625_vm11, %v7203_v47, %v7197_v26 }
0x1d6b   :  { %v7201_v62 = vpop.permute.xlu1 %7200 }
0x1d6c   :  { %v7205_v39 = vsel %vm1627_vm12, %v7204_v52, %v7201_v62 }
0x1d6d   :  { %v7206_v63 = vpack.c.bf16 %v7205_v39, %v7205_v39 }
0x1d6f   :  { %8465 = vmatmul.mubr.msk.bf16.vlgmr.msra.gmra.mrb[88].mxu0 %vm449_vm8, %v7206_v63 }
0x1d70   :  { %8484 = vmatprep.mubr.msk.bf16.mxu0 %vm9163_vm0, %v11778_v36  ;;  %vm7818_vm0 = vcmask 1040384  }
0x1e42   :  { %v7267_v4 = vpop.f32.mrb[88].mxu0 }
0x1e43   :  { %v7268_v29 = vadd.f32 %v8004_v21, %v7267_v4  ;;  %v8466_v15 = vpop.f32.mrb[89].mxu0 }
0x1e44   :  { %v7270_v48 = vpop.f32.mrb[90].mxu0 }
0x1e45   :  { %v8467_v40 = vpop.f32.mrb[91].mxu0  ;;  %v7280_v49 = vrot.slane %v7268_v29, 6  ;;  %v7274_v61 = vrot.slane %v7268_v29, 7  ;;  %v7275_v51 = vrot.slane %v7268_v29, 1  ;;  %v7276_v53 = vrot.slane %v7268_v29, 2 }
0x1e46   :  { %v7277_v41 = vrot.slane %v7268_v29, 3  ;;  %v7278_v14 = vrot.slane %v7268_v29, 4  ;;  %v7279_v12 = vrot.slane %v7268_v29, 5  ;;  %v7290_v35 = vadd.f32 %v7268_v29, %v11083_v5 }
0x1e47   :  { %v7296_v19 = vadd.f32 %v7280_v49, %v11123_v28  ;;  %v7289_v25 = vadd.f32 %v7274_v61, %v11080_v1  ;;  %v7291_v34 = vadd.f32 %v7275_v51, %v11085_v8  ;;  %v7292_v43 = vadd.f32 %v7276_v53, %v11087_v37 }
0x1e48   :  { %v7293_v56 = vadd.f32 %v7277_v41, %v11089_v16  ;;  %v7294_v26 = vadd.f32 %v7278_v14, %v11091_v45  ;;  %v7307_v42 = vrot.slane %v7290_v35, 7  ;;  %v7295_v62 = vadd.f32 %v7279_v12, %v11093_v59 }
0x1e49   :  { %v7319_v47 = vrot.slane %v7296_v19, 1  ;;  %v7309_v52 = vrot.slane %v7291_v34, 6  ;;  %v7311_v5 = vrot.slane %v7292_v43, 5  ;;  %v4047_v28 = vrot.slane %v11407_v60, 1 }
0x1e4a   :  { %v7308_v1 = vsel %vm419_vm2, %v7307_v42, %v7289_v25  ;;  %v7313_v39 = vrot.slane %v7293_v56, 4  ;;  %v7315_v63 = vrot.slane %v7294_v26, 3  ;;  %v7317_v59 = vrot.slane %v7295_v62, 2 }
0x1e4b   :  { %v7325_v8 = vsel %vm5476_vm14, %v7319_v47, 0.0  ;;  %v7310_v37 = vsel %vm422_vm3, %v7309_v52, %v7308_v1  ;;  %v4048_v16 = vsel %vm434_vm7, %v4047_v28, %v4046_v46  ;;  %v8557_v1 = vld [vmem:[#allocation25] sm:$0xff]  }
0x1e4c   :  { %7326 = vadd.xlane.f32.xlu1 %v7325_v8  ;;  %v7312_v45 = vsel %vm425_vm4, %v7311_v5, %v7310_v37  ;;  %v4050_v17 = vsel %vm449_vm8, %v4048_v16, 0.0  ;;  %8469 = vmatpush3.bf16.msra.mxu1 %v8557_v1  ;;  %v8558_v8 = vld [vmem:[#allocation25 + $0x8] sm:$0xff]   ;;  %v8559_v37 = vld [vmem:[%s11784_s6] sm:$0xff]  }
0x1e4d   :  { %v7314_v30 = vsel %vm428_vm5, %v7313_v39, %v7312_v45  ;;  %8470 = vmatprep.subr.bf16.mxu1 %v11778_v36  ;;  %8477 = vmatpush3.bf16.msra.mxu0 %v8559_v37  ;;  %v8560_v39 = vld [vmem:[%s11784_s6 + $0x8] sm:$0xff]  }
0x1e4e   :  { %v7316_v31 = vsel %vm431_vm6, %v7315_v63, %v7314_v30  ;;  %8478 = vmatprep.subr.bf16.mxu0 %v11778_v36 }
0x1e4f   :  { %v7318_v2 = vsel %vm434_vm7, %v7317_v59, %v7316_v31 }
0x1e50   :  { %4051 = vadd.xlane.f32.xlu1 %v4050_v17  ;;  %v7322_v33 = vsel %vm5472_vm15, %v7318_v2, 0.0  ;;  %8471 = vmatpush3.bf16.msra.mxu1 %v8558_v8  ;;  %v8008_v2 = vld [vmem:[#allocation22] ss:$0 sm:$0xff] }
0x1e51   :  { %7323 = vadd.xlane.f32.xlu0 %v7322_v33  ;;  %8479 = vmatpush3.bf16.msra.mxu0 %v8560_v39 }
0x1e52   :  { %8480 = vmatprep.subr.bf16.mxu0 %v11778_v36 }
0x1ed9   :  { %v7327_v58 = vpop.xlane.xlu1 %7326 }
0x1eda   :  { %v7329_v57 = vmul.f32 0.03125, %v7327_v58 }
0x1edc   :  { %v7338_v0 = vrot.slane %v7329_v57, 7 }
0x1ede   :  { %v7324_v23 = vpop.xlane.xlu0 %7323  ;;  %v11431_v49 = vsub.f32 %v7296_v19, %v7338_v0 }
0x1edf   :  { %v7328_v55 = vmul.f32 0.03125, %v7324_v23 }
0x1ee1   :  { %v7332_v24 = vrot.slane %v7328_v55, 1  ;;  %v7333_v22 = vrot.slane %v7328_v55, 2  ;;  %v7334_v3 = vrot.slane %v7328_v55, 3  ;;  %v7335_v10 = vrot.slane %v7328_v55, 4 }
0x1ee2   :  { %v7336_v18 = vrot.slane %v7328_v55, 5  ;;  %v7337_v21 = vrot.slane %v7328_v55, 6  ;;  %v7347_v9 = vsub.f32 %v7289_v25, %v7328_v55 }
0x1ee3   :  { %v7348_v20 = vsub.f32 %v7290_v35, %v7332_v24  ;;  %v7349_v4 = vsub.f32 %v7291_v34, %v7333_v22  ;;  %v7350_v54 = vsub.f32 %v7292_v43, %v7334_v3  ;;  %v7351_v29 = vsub.f32 %v7293_v56, %v7335_v10  ;;  %v8009_v3 = vld [vmem:[#allocation23] ss:$0 sm:$0xff] }
0x1ee4   :  { %v7352_v15 = vsub.f32 %v7294_v26, %v7336_v18  ;;  %v7353_v48 = vsub.f32 %v7295_v62, %v7337_v21  ;;  %v7355_v51 = vmul.f32 %v7347_v9, %v7347_v9  ;;  %v7362_v26 = vmul.f32 %v11431_v49, %v11431_v49 }
0x1ee5   :  { %v7356_v13 = vmul.f32 %v7348_v20, %v7348_v20  ;;  %v7357_v44 = vmul.f32 %v7349_v4, %v7349_v4  ;;  %v7358_v40 = vmul.f32 %v7350_v54, %v7350_v54  ;;  %v7359_v61 = vmul.f32 %v7351_v29, %v7351_v29 }
0x1ee6   :  { %v7360_v53 = vmul.f32 %v7352_v15, %v7352_v15  ;;  %v7361_v12 = vmul.f32 %v7353_v48, %v7353_v48  ;;  %v7383_v5 = vrot.slane %v7362_v26, 1 }
0x1ee7   :  { %v7371_v41 = vrot.slane %v7356_v13, 7  ;;  %v7373_v14 = vrot.slane %v7357_v44, 6  ;;  %v7375_v25 = vrot.slane %v7358_v40, 5  ;;  %v7377_v34 = vrot.slane %v7359_v61, 4 }
0x1ee8   :  { %v7379_v56 = vrot.slane %v7360_v53, 3  ;;  %v7381_v42 = vrot.slane %v7361_v12, 2  ;;  %v7389_v28 = vsel %vm5476_vm14, %v7383_v5, 0.0 }
0x1ee9   :  { %v7372_v46 = vsel %vm419_vm2, %v7371_v41, %v7355_v51 }
0x1eea   :  { %v7374_v35 = vsel %vm422_vm3, %v7373_v14, %v7372_v46 }
0x1eeb   :  { %v7376_v43 = vsel %vm425_vm4, %v7375_v25, %v7374_v35 }
0x1eec   :  { %v7378_v19 = vsel %vm428_vm5, %v7377_v34, %v7376_v43 }
0x1eed   :  { %v7380_v47 = vsel %vm431_vm6, %v7379_v56, %v7378_v19 }
0x1eee   :  { %v7382_v62 = vsel %vm434_vm7, %v7381_v42, %v7380_v47 }
0x1eef   :  { %v7386_v52 = vsel %vm5472_vm15, %v7382_v62, 0.0 }
0x1ef0   :  { %7387 = vadd.xlane.f32.xlu0 %v7386_v52 }
0x1ef4   :  { %7390 = vadd.xlane.f32.xlu0 %v7389_v28 }
0x1f7d   :  { %v7388_v16 = vpop.xlane.xlu0 %7387 }
0x1f7e   :  { %v7392_v45 = vmul.f32 0.03125, %v7388_v16 }
0x1f80   :  { %v7394_v63 = vadd.f32 1e-05, %v7392_v45 }
0x1f81   :  { %v7391_v30 = vpop.xlane.xlu0 %7390 }
0x1f82   :  { %8635 = vrsqrt.f32 %v7394_v63  ;;  %v7393_v59 = vmul.f32 0.03125, %v7391_v30 }
0x1f84   :  { %v7395_v31 = vadd.f32 1e-05, %v7393_v59 }
0x1f86   :  { %8637 = vrsqrt.f32 %v7395_v31 }
0x1f8c   :  { %v8636_v17 = vpop.eup %8635 }
0x1f8d   :  { %v7400_v33 = vrot.slane %v8636_v17, 1  ;;  %v7401_v58 = vrot.slane %v8636_v17, 2  ;;  %v7402_v57 = vrot.slane %v8636_v17, 3  ;;  %v7403_v23 = vrot.slane %v8636_v17, 4 }
0x1f8e   :  { %v7404_v55 = vrot.slane %v8636_v17, 5  ;;  %v7405_v24 = vrot.slane %v8636_v17, 6  ;;  %v7415_v22 = vmul.f32 %v8636_v17, %v7347_v9 }
0x1f8f   :  { %v7416_v10 = vmul.f32 %v7400_v33, %v7348_v20  ;;  %v7417_v0 = vmul.f32 %v7401_v58, %v7349_v4  ;;  %v7418_v18 = vmul.f32 %v7402_v57, %v7350_v54  ;;  %v7419_v21 = vmul.f32 %v7403_v23, %v7351_v29 }
0x1f90   :  { %v8638_v13 = vpop.eup %8637  ;;  %v7420_v44 = vmul.f32 %v7404_v55, %v7352_v15  ;;  %v7421_v40 = vmul.f32 %v7405_v24, %v7353_v48  ;;  %v7429_v61 = vmul.f32 %v8008_v2, %v7415_v22 }
0x1f91   :  { %v7406_v51 = vrot.slane %v8638_v13, 7  ;;  %v7430_v53 = vmul.f32 %v8008_v2, %v7416_v10  ;;  %v7431_v41 = vmul.f32 %v8008_v2, %v7417_v0  ;;  %v7432_v14 = vmul.f32 %v8008_v2, %v7418_v18  ;;  %v8561_v0 = vld [vmem:[%s11784_s6 + $0x10] sm:$0xff]   ;;  %v8562_v18 = vld [vmem:[%s11784_s6 + $0x18] sm:$0xff]   ;;  %s9173_s6 = smov [#allocation32]  }
0x1f92   :  { %v7433_v12 = vmul.f32 %v8008_v2, %v7419_v21  ;;  %v7434_v46 = vmul.f32 %v8008_v2, %v7420_v44  ;;  %v7435_v25 = vmul.f32 %v8008_v2, %v7421_v40  ;;  %v11452_v35 = vadd.f32 %v8009_v3, %v7429_v61  ;;  %8481 = vmatpush3.bf16.msra.mxu0 %v8561_v0  ;;  %v8010_v21 = vld [vmem:[#allocation26] ss:$0 sm:$0xff]  ;;  %s7841_s27 = sshll.u32 %s9173_s6, 4  ;;  %s7842_s27 = int_to_ptr.vmem [resolvable:$true] %s7841_s27 }
0x1f93   :  { %v7422_v9 = vmul.f32 %v7406_v51, %v11431_v49  ;;  %v11455_v34 = vadd.f32 %v8009_v3, %v7430_v53  ;;  %v11457_v20 = vadd.f32 %v8009_v3, %v7431_v41  ;;  %v11459_v4 = vadd.f32 %v8009_v3, %v7432_v14  ;;  %8482 = vmatprep.subr.bf16.mxu0 %v11778_v36  ;;  %v4052_v14 = vpop.xlane.xlu1 %4051  ;;  %s9095_s30 = scalar_lea.vmem %s7842_s27, 256  ;;  %p9100_p13 = scmp.lt.s32.totalorder %s7842_s27, %s7842_s27 }
0x1f94   :  { %v11461_v54 = vadd.f32 %v8009_v3, %v7433_v12  ;;  %v11463_v29 = vadd.f32 %v8009_v3, %v7434_v46  ;;  %v11465_v15 = vadd.f32 %v8009_v3, %v7435_v25  ;;  %v7451_v48 = vpack.c.bf16 %v11452_v35, %v11452_v35  ;;  %p9096_p12 = scmp.ne.s32.totalorder %s7842_s27, %s9095_s30  ;;  %p9101_p0 = scmp.lt.s32.totalorder %s9095_s30, %s9095_s30 }
0x1f95   :  { %v7436_v43 = vmul.f32 %v8008_v2, %v7422_v9  ;;  %v7452_v56 = vpack.c.bf16 %v11455_v34, %v11455_v34  ;;  %v7453_v49 = vpack.c.bf16 %v11457_v20, %v11457_v20  ;;  %v7454_v26 = vpack.c.bf16 %v11459_v4, %v11459_v4 }
0x1f96   :  { %v7455_v19 = vpack.c.bf16 %v11461_v54, %v11461_v54  ;;  %v7456_v42 = vpack.c.bf16 %v11463_v29, %v11463_v29  ;;  %v7457_v47 = vpack.c.bf16 %v11465_v15, %v11465_v15  ;;  %v7478_v62 = vunpack.c.l.b16 %v7451_v48  ;;  %8483 = vmatpush3.bf16.msra.mxu0 %v8562_v18  ;;  %p9102_p1 = por %p9101_p0, %p9100_p13 }
0x1f97   :  { %v11481_v52 = vadd.f32 %v8009_v3, %v7436_v43  ;;  %v7479_v5 = vunpack.c.l.b16 %v7452_v56  ;;  %v7480_v28 = vunpack.c.l.b16 %v7453_v49  ;;  %v7481_v1 = vunpack.c.l.b16 %v7454_v26 }
0x1f98   :  { %v7482_v8 = vunpack.c.l.b16 %v7455_v19  ;;  %v7483_v37 = vunpack.c.l.b16 %v7456_v42  ;;  %v7486_v39 = vrot.slane %v7478_v62, 1  ;;  %v7484_v45 = vunpack.c.l.b16 %v7457_v47  ;;  %p9103_p2 = pnand %p9102_p1, %p9096_p12 }
0x1f99   :  { %v7458_v16 = vpack.c.bf16 %v11481_v52, %v11481_v52  ;;  %v7488_v63 = vrot.slane %v7480_v28, 7  ;;  %v7490_v30 = vrot.slane %v7481_v1, 6  ;;  %v4053_v12 = vmul.f32 0.03125, %v4052_v14 }
0x1f9a   :  { %v7487_v59 = vsel %vm416_vm1, %v7479_v5, %v7486_v39  ;;  %v7492_v2 = vrot.slane %v7482_v8, 5  ;;  %v7494_v58 = vrot.slane %v7483_v37, 4  ;;  %v7496_v55 = vrot.slane %v7484_v45, 3 }
0x1f9b   :  { %v7485_v31 = vunpack.c.l.b16 %v7458_v16  ;;  %v7489_v17 = vsel %vm419_vm2, %v7488_v63, %v7487_v59  ;;  %v4055_v46 = vrot.slane %v4053_v12, 1  ;;  %v4056_v25 = vrot.slane %v4053_v12, 2 }
0x1f9c   :  { %v7491_v33 = vsel %vm422_vm3, %v7490_v30, %v7489_v17  ;;  %v4057_v48 = vrot.slane %v4053_v12, 3  ;;  %v4058_v56 = vrot.slane %v4053_v12, 4  ;;  %v4059_v49 = vrot.slane %v4053_v12, 5 }
0x1f9d   :  { %v7498_v57 = vrot.slane %v7485_v31, 2  ;;  %v7493_v23 = vsel %vm425_vm4, %v7492_v2, %v7491_v33  ;;  %v11502_v36 = vsub.f32 %v11376_v38, %v4055_v46  ;;  %v11505_v9 = vsub.f32 %v11379_v11, %v4056_v25 }
0x1f9e   :  { %v7495_v24 = vsel %vm428_vm5, %v7494_v58, %v7493_v23  ;;  %v11510_v26 = vsub.f32 %v11383_v32, %v4053_v12  ;;  %v11515_v42 = vsub.f32 %v11387_v27, %v4057_v48  ;;  %v4060_v47 = vrot.slane %v4053_v12, 6  ;;  %v8014_v27 = vld [vmem:[#allocation28] ss:$0 sm:$0xff] }
0x1f9f   :  { %v7497_v22 = vsel %vm431_vm6, %v7496_v55, %v7495_v24  ;;  %v4079_v43 = vmul.f32 %v11502_v36, %v11502_v36  ;;  %v4080_v19 = vmul.f32 %v11505_v9, %v11505_v9  ;;  %v11518_v11 = vsub.f32 %v11392_v50, %v4058_v56 }
0x1fa0   :  { %v7499_v3 = vsel %vm434_vm7, %v7498_v57, %v7497_v22  ;;  %v11521_v62 = vsub.f32 %v11397_v7, %v4059_v49  ;;  %v4078_v5 = vmul.f32 %v11510_v26, %v11510_v26  ;;  %v4081_v32 = vmul.f32 %v11515_v42, %v11515_v42 }
0x1fa1   :  { %v7500_v10 = vpack.c.b16 %v7499_v3, %v7499_v3  ;;  %v4094_v38 = vrot.slane %v4079_v43, 7  ;;  %v4096_v28 = vrot.slane %v4080_v19, 6  ;;  %v4061_v8 = vrot.slane %v4053_v12, 7 }
0x1fa2   :  { %v11529_v37 = vsub.f32 %v11402_v6, %v4060_v47  ;;  %v4082_v50 = vmul.f32 %v11518_v11, %v11518_v11  ;;  %v4083_v7 = vmul.f32 %v11521_v62, %v11521_v62  ;;  %v4098_v45 = vrot.slane %v4081_v32, 5 }
0x1fa3   :  { %8473 = vmatmul.mubr.msk.bf16.vlgmr.msra.gmra.mrb[100].mxu1 %vm449_vm8, %v7500_v10  ;;  %v4095_v1 = vsel %vm416_vm1, %v4094_v38, %v4078_v5  ;;  %v11537_v59 = vsub.f32 %v11407_v60, %v4061_v8  ;;  %vm7827_vm1 = vcmask 254976  }
0x1fa4   :  { %v4097_v39 = vsel %vm419_vm2, %v4096_v28, %v4095_v1  ;;  %v4084_v6 = vmul.f32 %v11529_v37, %v11529_v37  ;;  %v4100_v2 = vrot.slane %v4082_v50, 4  ;;  %v4102_v33 = vrot.slane %v4083_v7, 3 }
0x1fa5   :  { %v4099_v17 = vsel %vm422_vm3, %v4098_v45, %v4097_v39 }
0x1fa6   :  { %v4104_v25 = vrot.slane %v4084_v6, 2 }
0x2076   :  { %v7550_v13 = vpop.f32.mrb[100].mxu1 }
0x2077   :  { %v7551_v44 = vadd.f32 %v8010_v21, %v7550_v13  ;;  %v8474_v40 = vpop.f32.mrb[101].mxu1 }
0x2078   :  { %v7553_v61 = vpop.f32.mrb[102].mxu1 }
0x2079   :  { %v7556_v51 = vmax.f32 %v7551_v44, 0.0  ;;  %v8475_v53 = vpop.f32.mrb[103].mxu1 }
0x207b   :  { %v7557_v41 = vpack.c.bf16 %v7556_v51, %v7556_v51  ;;  %v4101_v51 = vsel %vm425_vm4, %v4100_v2, %v4099_v17 }
0x207d   :  { %8485 = vmatmul.mubr.msk.bf16.vlgmr.msra.gmra.mrb[92].mxu0 %vm3957_vm13, %v7557_v41 }
0x2150   :  { %v7634_v16 = vpop.f32.mrb[92].mxu0 }
0x2151   :  { %v7635_v63 = vadd.f32 %v8014_v27, %v7634_v16  ;;  %v8486_v30 = vpop.f32.mrb[93].mxu0 }
0x2152   :  { %v7637_v31 = vpop.f32.mrb[94].mxu0 }
0x2153   :  { %v8487_v58 = vpop.f32.mrb[95].mxu0  ;;  %v7647_v57 = vrot.slane %v7635_v63, 6  ;;  %v7641_v23 = vrot.slane %v7635_v63, 7  ;;  %v7642_v55 = vrot.slane %v7635_v63, 1  ;;  %v7643_v24 = vrot.slane %v7635_v63, 2 }
0x2154   :  { %v7644_v22 = vrot.slane %v7635_v63, 3  ;;  %v7645_v3 = vrot.slane %v7635_v63, 4  ;;  %v7646_v10 = vrot.slane %v7635_v63, 5  ;;  %v7657_v0 = vadd.f32 %v7635_v63, %v11455_v34 }
0x2155   :  { %v7663_v60 = vadd.f32 %v7647_v57, %v11481_v52  ;;  %v7656_v18 = vadd.f32 %v7641_v23, %v11452_v35  ;;  %v7658_v21 = vadd.f32 %v7642_v55, %v11457_v20  ;;  %v7659_v13 = vadd.f32 %v7643_v24, %v11459_v4 }
0x2156   :  { %v7660_v44 = vadd.f32 %v7644_v22, %v11461_v54  ;;  %v7661_v40 = vadd.f32 %v7645_v3, %v11463_v29  ;;  %v7674_v61 = vrot.slane %v7657_v0, 7  ;;  %v7662_v41 = vadd.f32 %v7646_v10, %v11465_v15 }
0x2157   :  { %v7686_v53 = vrot.slane %v7663_v60, 1  ;;  %v7676_v14 = vrot.slane %v7658_v21, 6  ;;  %v7678_v34 = vrot.slane %v7659_v13, 5  ;;  %v4085_v35 = vmul.f32 %v11537_v59, %v11537_v59 }
0x2158   :  { %v7675_v52 = vsel %vm419_vm2, %v7674_v61, %v7656_v18  ;;  %v7680_v54 = vrot.slane %v7660_v44, 4  ;;  %v4103_v29 = vsel %vm428_vm5, %v4102_v33, %v4101_v51  ;;  %v7682_v46 = vrot.slane %v7661_v40, 3 }
0x2159   :  { %v7692_v20 = vsel %vm5476_vm14, %v7686_v53, 0.0  ;;  %v7677_v4 = vsel %vm422_vm3, %v7676_v14, %v7675_v52  ;;  %v7684_v48 = vrot.slane %v7662_v41, 2  ;;  %v4105_v56 = vsel %vm431_vm6, %v4104_v25, %v4103_v29 }
0x215a   :  { %7693 = vadd.xlane.f32.xlu1 %v7692_v20  ;;  %v7679_v12 = vsel %vm425_vm4, %v7678_v34, %v7677_v4  ;;  %v4106_v19 = vrot.slane %v4085_v35, 1 }
0x215b   :  { %v7681_v15 = vsel %vm428_vm5, %v7680_v54, %v7679_v12 }
0x215c   :  { %v7683_v43 = vsel %vm431_vm6, %v7682_v46, %v7681_v15  ;;  %v4107_v47 = vsel %vm434_vm7, %v4106_v19, %v4105_v56 }
0x215d   :  { %v7685_v49 = vsel %vm434_vm7, %v7684_v48, %v7683_v43  ;;  %v4109_v5 = vsel %vm449_vm8, %v4107_v47, 0.0 }
0x215e   :  { %v7689_v38 = vsel %vm5472_vm15, %v7685_v49, 0.0 }
0x215f   :  { %7690 = vadd.xlane.f32.xlu0 %v7689_v38 }
0x2163   :  { %4110 = vadd.xlane.f32.xlu0 %v4109_v5 }
0x21e7   :  { %v7694_v28 = vpop.xlane.xlu1 %7693 }
0x21e8   :  { %v7696_v32 = vmul.f32 0.03125, %v7694_v28 }
0x21ea   :  { %v7705_v1 = vrot.slane %v7696_v32, 7 }
0x21ec   :  { %v11565_v8 = vsub.f32 %v7663_v60, %v7705_v1  ;;  %v7691_v27 = vpop.xlane.xlu0 %7690 }
0x21ed   :  { %v7695_v50 = vmul.f32 0.03125, %v7691_v27  ;;  %v7940_v27 = vld [vmem:[#allocation29] ss:$0 sm:$0xff] }
0x21ee   :  { %v7729_v7 = vmul.f32 %v11565_v8, %v11565_v8 }
0x21ef   :  { %v7699_v39 = vrot.slane %v7695_v50, 1  ;;  %v7700_v16 = vrot.slane %v7695_v50, 2  ;;  %v7701_v45 = vrot.slane %v7695_v50, 3  ;;  %v7702_v63 = vrot.slane %v7695_v50, 4 }
0x21f0   :  { %v7750_v30 = vrot.slane %v7729_v7, 1  ;;  %v7703_v31 = vrot.slane %v7695_v50, 5  ;;  %v7704_v6 = vrot.slane %v7695_v50, 6  ;;  %v11569_v17 = vsub.f32 %v7656_v18, %v7695_v50  ;;  %v4111_v54 = vpop.xlane.xlu0 %4110 }
0x21f1   :  { %v11571_v2 = vsub.f32 %v7657_v0, %v7699_v39  ;;  %v11573_v33 = vsub.f32 %v7658_v21, %v7700_v16  ;;  %v11575_v58 = vsub.f32 %v7659_v13, %v7701_v45  ;;  %v11578_v23 = vsub.f32 %v7660_v44, %v7702_v63 }
0x21f2   :  { %v7756_v57 = vsel %vm5476_vm14, %v7750_v30, 0.0  ;;  %v11580_v55 = vsub.f32 %v7661_v40, %v7703_v31  ;;  %v11582_v24 = vsub.f32 %v7662_v41, %v7704_v6  ;;  %v7722_v60 = vmul.f32 %v11569_v17, %v11569_v17 }
0x21f3   :  { %7757 = vadd.xlane.f32.xlu0 %v7756_v57  ;;  %v7723_v22 = vmul.f32 %v11571_v2, %v11571_v2  ;;  %v7724_v3 = vmul.f32 %v11573_v33, %v11573_v33  ;;  %v7725_v10 = vmul.f32 %v11575_v58, %v11575_v58  ;;  %v7726_v0 = vmul.f32 %v11578_v23, %v11578_v23  ;;  %v7941_v57 = vld [vmem:[#allocation31] ss:$0 sm:$0xff] }
0x21f4   :  { %v7727_v18 = vmul.f32 %v11580_v55, %v11580_v55  ;;  %v7728_v44 = vmul.f32 %v11582_v24, %v11582_v24  ;;  %v4112_v29 = vmul.f32 0.03125, %v4111_v54 }
0x21f5   :  { %v7738_v21 = vrot.slane %v7723_v22, 7  ;;  %v7740_v13 = vrot.slane %v7724_v3, 6  ;;  %v7742_v61 = vrot.slane %v7725_v10, 5  ;;  %v7744_v53 = vrot.slane %v7726_v0, 4 }
0x21f6   :  { %v7746_v14 = vrot.slane %v7727_v18, 3  ;;  %v7748_v52 = vrot.slane %v7728_v44, 2  ;;  %v4113_v12 = vadd.f32 1e-05, %v4112_v29 }
0x21f7   :  { %v7739_v40 = vsel %vm419_vm2, %v7738_v21, %v7722_v60 }
0x21f8   :  { %v7741_v51 = vsel %vm422_vm3, %v7740_v13, %v7739_v40  ;;  %8639 = vrsqrt.f32 %v4113_v12 }
0x21f9   :  { %v7743_v41 = vsel %vm425_vm4, %v7742_v61, %v7741_v51 }
0x21fa   :  { %v7745_v34 = vsel %vm428_vm5, %v7744_v53, %v7743_v41 }
0x21fb   :  { %v7747_v35 = vsel %vm431_vm6, %v7746_v14, %v7745_v34 }
0x21fc   :  { %v7749_v20 = vsel %vm434_vm7, %v7748_v52, %v7747_v35 }
0x21fd   :  { %v7753_v4 = vsel %vm5472_vm15, %v7749_v20, 0.0 }
0x21fe   :  { %7754 = vadd.xlane.f32.xlu1 %v7753_v4 }
0x2202   :  { %v8640_v48 = vpop.eup %8639 }
0x2203   :  { %v4122_v43 = vrot.slane %v8640_v48, 7  ;;  %v4116_v47 = vrot.slane %v8640_v48, 1  ;;  %v4117_v5 = vrot.slane %v8640_v48, 2  ;;  %v4118_v1 = vrot.slane %v8640_v48, 3 }
0x2204   :  { %v4119_v50 = vrot.slane %v8640_v48, 4  ;;  %v4120_v7 = vrot.slane %v8640_v48, 5  ;;  %v4121_v39 = vrot.slane %v8640_v48, 6  ;;  %v4131_v16 = vmul.f32 %v8640_v48, %v11510_v26 }
0x2205   :  { %v4138_v19 = vmul.f32 %v4122_v43, %v11537_v59  ;;  %v4132_v30 = vmul.f32 %v4116_v47, %v11502_v36  ;;  %v4133_v59 = vmul.f32 %v4117_v5, %v11505_v9  ;;  %v4134_v6 = vmul.f32 %v4118_v1, %v11515_v42 }
0x2206   :  { %v4135_v22 = vmul.f32 %v4119_v50, %v11518_v11  ;;  %v4136_v3 = vmul.f32 %v4120_v7, %v11521_v62  ;;  %v4137_v10 = vmul.f32 %v4121_v39, %v11529_v37  ;;  %v4145_v26 = vmul.f32 %v7940_v27, %v4131_v16 }
0x2207   :  { %v4152_v45 = vmul.f32 %v7940_v27, %v4138_v19  ;;  %v4147_v18 = vmul.f32 %v7940_v27, %v4133_v59  ;;  %v4148_v9 = vmul.f32 %v7940_v27, %v4134_v6 }
0x2208   :  { %v4149_v21 = vmul.f32 %v7940_v27, %v4135_v22  ;;  %v4150_v13 = vmul.f32 %v7940_v27, %v4136_v3  ;;  %v4151_v44 = vmul.f32 %v7940_v27, %v4137_v10  ;;  %v4159_v40 = vadd.f32 %v7941_v57, %v4145_v26 }
0x2209   :  { %v4166_v0 = vadd.f32 %v7941_v57, %v4152_v45  ;;  %v4161_v61 = vadd.f32 %v7941_v57, %v4147_v18  ;;  %v4162_v41 = vadd.f32 %v7941_v57, %v4148_v9 }
0x220a   :  { %v4163_v29 = vadd.f32 %v7941_v57, %v4149_v21  ;;  %v4165_v47 = vadd.f32 %v7941_v57, %v4151_v44 }
0x2280   :  { %v7758_v46 = vpop.xlane.xlu0 %7757 }
0x2281   :  { %v7760_v25 = vmul.f32 0.03125, %v7758_v46 }
0x2283   :  { %v7762_v15 = vadd.f32 1e-05, %v7760_v25 }
0x2285   :  { %8641 = vrsqrt.f32 %v7762_v15 }
0x228b   :  { %v7755_v56 = vpop.xlane.xlu1 %7754 }
0x228c   :  { %v7759_v49 = vmul.f32 0.03125, %v7755_v56 }
0x228e   :  { %v7761_v38 = vadd.f32 1e-05, %v7759_v49  ;;  %v4164_v49 = vadd.f32 %v7941_v57, %v4150_v13 }
0x228f   :  { %v8642_v28 = vpop.eup %8641 }
0x2290   :  { %v7773_v32 = vrot.slane %v8642_v28, 7  ;;  %8643 = vrsqrt.f32 %v7761_v38 }
0x2292   :  { %v7789_v63 = vmul.f32 %v7773_v32, %v11565_v8  ;;  %v4146_v8 = vmul.f32 %v7940_v27, %v4132_v30 }
0x2294   :  { %v7803_v31 = vmul.f32 %v7940_v27, %v7789_v63  ;;  %v4160_v11 = vadd.f32 %v7941_v57, %v4146_v8 }
0x2296   :  { %v7817_v60 = vadd.f32 %v7941_v57, %v7803_v31 }
0x2298   :  { %v7826_v36 = vsel %vm7818_vm0, %v4166_v0, %v7817_v60 }
0x2299   :  { %7835 = vst.msk [vmem:[#allocation32 + $0xe] sm:$0x3] %vm7827_vm1, %v7826_v36 }
0x229a   :  { %v8644_v42 = vpop.eup %8643 }
0x229b   :  { %v7767_v62 = vrot.slane %v8644_v42, 1  ;;  %v7768_v51 = vrot.slane %v8644_v42, 2  ;;  %v7769_v37 = vrot.slane %v8644_v42, 3  ;;  %v7770_v53 = vrot.slane %v8644_v42, 4 }
0x229c   :  { %v7771_v14 = vrot.slane %v8644_v42, 5  ;;  %v7772_v34 = vrot.slane %v8644_v42, 6  ;;  %v7782_v52 = vmul.f32 %v8644_v42, %v11569_v17 }
0x229d   :  { %v7783_v35 = vmul.f32 %v7767_v62, %v11571_v2  ;;  %v7784_v20 = vmul.f32 %v7768_v51, %v11573_v33  ;;  %v7785_v4 = vmul.f32 %v7769_v37, %v11575_v58  ;;  %v7786_v54 = vmul.f32 %v7770_v53, %v11578_v23 }
0x229e   :  { %v7787_v12 = vmul.f32 %v7771_v14, %v11580_v55  ;;  %v7788_v46 = vmul.f32 %v7772_v34, %v11582_v24  ;;  %v7796_v25 = vmul.f32 %v7940_v27, %v7782_v52 }
0x229f   :  { %v7797_v15 = vmul.f32 %v7940_v27, %v7783_v35  ;;  %v7798_v48 = vmul.f32 %v7940_v27, %v7784_v20  ;;  %v7799_v43 = vmul.f32 %v7940_v27, %v7785_v4  ;;  %v7800_v56 = vmul.f32 %v7940_v27, %v7786_v54 }
0x22a0   :  { %v7801_v17 = vmul.f32 %v7940_v27, %v7787_v12  ;;  %v7802_v19 = vmul.f32 %v7940_v27, %v7788_v46  ;;  %v7810_v2 = vadd.f32 %v7941_v57, %v7796_v25 }
0x22a1   :  { %v7811_v33 = vadd.f32 %v7941_v57, %v7797_v15  ;;  %v7812_v58 = vadd.f32 %v7941_v57, %v7798_v48  ;;  %v7813_v38 = vadd.f32 %v7941_v57, %v7799_v43  ;;  %v7814_v23 = vadd.f32 %v7941_v57, %v7800_v56 }
0x22a2   :  { %v7815_v5 = vadd.f32 %v7941_v57, %v7801_v17  ;;  %v7816_v55 = vadd.f32 %v7941_v57, %v7802_v19  ;;  %v7819_v24 = vsel %vm7818_vm0, %v4159_v40, %v7810_v2 }
0x22a3   :  { %v7820_v28 = vsel %vm7818_vm0, %v4160_v11, %v7811_v33  ;;  %v7821_v32 = vsel %vm7818_vm0, %v4161_v61, %v7812_v58  ;;  %v7822_v1 = vsel %vm7818_vm0, %v4162_v41, %v7813_v38  ;;  %v7823_v27 = vsel %vm7818_vm0, %v4163_v29, %v7814_v23  ;;  %7828 = vst.msk [vmem:[#allocation32] sm:$0x3] %vm7827_vm1, %v7819_v24 }
0x22a4   :  { %v7824_v50 = vsel %vm7818_vm0, %v4164_v49, %v7815_v5  ;;  %v7825_v7 = vsel %vm7818_vm0, %v4165_v47, %v7816_v55  ;;  %7829 = vst.msk [vmem:[#allocation32 + $0x2] sm:$0x3] %vm7827_vm1, %v7820_v28  ;;  %7830 = vst.msk [vmem:[#allocation32 + $0x4] sm:$0x3] %vm7827_vm1, %v7821_v32 }
0x22a5   :  { %7831 = vst.msk [vmem:[#allocation32 + $0x6] sm:$0x3] %vm7827_vm1, %v7822_v1  ;;  %7832 = vst.msk [vmem:[#allocation32 + $0x8] sm:$0x3] %vm7827_vm1, %v7823_v27 }
0x22a6   :  { %7833 = vst.msk [vmem:[#allocation32 + $0xa] sm:$0x3] %vm7827_vm1, %v7824_v50  ;;  %7834 = vst.msk [vmem:[#allocation32 + $0xc] sm:$0x3] %vm7827_vm1, %v7825_v7 }
0x22a7   :  { %9106 = shalt.err (!%p9103_p2)
}
0x22a8   :  { %s11806_s12 = sld [smem:[#allocation84_spill]] }
0x22ae   :  { %s9107_s29 = scalar_lea.hbm %s11806_s12, 256 }
0x22af   :  { %p9108_p3 = scmp.ne.s32.totalorder %s11806_s12, %s9107_s29  ;;  %p9111_p4 = scmp.lt.u32.totalorder %s9107_s29, %s11806_s12 }
0x22b1   :  { %p9113_p5 = pnand %p9111_p4, %p9108_p3 }
0x22b3   :  { %9116 = shalt.err (!%p9113_p5)
}
0x22b4   :  { %7847 = dma.vmem_to_hbm [thread:$0]  %s7842_s27, 256, %s11806_s12, [#allocation4], %s9151_s26, %s9151_s26, %s9152_s3  }
0x22b5   :  { %9137 = dma.done.wait [#allocation4], 256  }
0x22b6   :  { %9138 = vsyncadd [#allocation4], 4294967040 }
0x22b7   :  { %7851 = vsyncpa [#allocation3], 1 }
0x22b8   :  { %7852 = vsyncpa [#allocation6], 1 }
0x22b9   :  { %7853 = vsyncpa [#allocation9], 1 }
0x22ba   :  { %7854 = vsyncpa [#allocation12], 1 }
0x22bb   :  { %7855 = vsyncpa [#allocation15], 1 }
0x22bc   :  { %7856 = vsyncpa [#allocation18], 1 }
0x22bd   :  { %7857 = vsyncpa [#allocation21], 1 }
0x22be   :  { %7858 = vsyncpa [#allocation24], 1 }
0x22bf   :  { %7859 = vsyncpa [#allocation27], 1 }
0x22c0   :  { %7860 = vsyncpa [#allocation30], 1 }
0x22c1   :  { %7861 = vsyncpa [#allocation4], 1 }

</bundles_post_ra>
